<compile_context>
chip_gen: v6e
topology: v6e:2x2x1
jax: 0.10.0
libtpu: 0.0.40
codegen_flags: <defaults>
</compile_context>

<pallas_src>
import functools

import numpy as np
import jax
import jax.numpy as jnp
from jax import lax
from jax.experimental import pallas as pl
from jax.experimental.pallas import tpu as pltpu

EPS = 1e-5                    # PyTorch BatchNorm default eps
MXU_DTYPE = jnp.bfloat16      # MXU operand dtype; set to jnp.float32 for parity checks
ACT_DTYPE = MXU_DTYPE         # inter-layer activation / tap-scratch dtype
CIN_PAD = 8                   # pad input_channels (1) up to a friendlier 8
PAD_OFF = 16                  # aligned row offset for scratch stores (f32 & bf16 tiles)
SCR_EXTRA = 24                # extra scratch rows (halo + alignment slack)


# ----------------------------------------------------------------------------
# In-kernel building blocks (values are (rows, channels))
# ----------------------------------------------------------------------------
def _seq_pos(nrows, seq):
    """Per-row position within its sequence (nrows merged rows, seq | nrows)."""
    row = lax.broadcasted_iota(jnp.int32, (nrows, 1), 0)
    if nrows == seq:
        return row
    assert seq & (seq - 1) == 0, "merged batch blocks need power-of-two lengths"
    return row & (seq - 1)


def _conv3(x, w_ref, b_ref, pad_ref, seq, *, relu, residual=None):
    """Conv1d k=3, stride=1, pad=1 as 3 accumulated MXU matmuls.

    x: (R, C) bf16 value (R = Bt merged sequences of length `seq`).
    w_ref: (3, C, Cout) bf16.  b_ref: (1, Cout) f32.
    pad_ref: (R + SCR_EXTRA, C) bf16 scratch: x is stored once at the aligned
    row offset PAD_OFF and the +/-1 taps are read back as contiguous slices;
    sequence-seam rows are masked (so merged batches never leak across seams).
    """
    R, C = x.shape
    pad_ref[pl.ds(PAD_OFF, R), :] = x                     # aligned full-tile store
    xm1 = pad_ref[pl.ds(PAD_OFF - 1, R), :]               # x[i-1]
    xp1 = pad_ref[pl.ds(PAD_OFF + 1, R), :]               # x[i+1]

    pos = _seq_pos(R, seq)
    zero = jnp.zeros((), x.dtype)
    xm1 = jnp.where(pos == 0, zero, xm1)
    xp1 = jnp.where(pos == seq - 1, zero, xp1)

    y = (jnp.dot(xm1, w_ref[0], preferred_element_type=jnp.float32)
         + jnp.dot(x,   w_ref[1], preferred_element_type=jnp.float32)
         + jnp.dot(xp1, w_ref[2], preferred_element_type=jnp.float32)
         + b_ref[...])
    if residual is not None:
        y = y + residual.astype(jnp.float32)              # pre-ReLU residual add
    if relu:
        y = jnp.maximum(y, 0.0)
    return y.astype(ACT_DTYPE)


def _conv4_s2(x, w_ref, b_ref, ds_ref, seq):
    """Conv1d k=4, stride=2, pad=1 as 4 accumulated MXU matmuls.

    x: (R, C) bf16.  w_ref: (4, C, Cout) bf16.  b_ref: (1, Cout) f32.
    ds_ref: (R + SCR_EXTRA, C) f32 scratch (f32 so the strided sublane reads
    never hit a packed dtype); x is stored once aligned, the 4 taps are read
    back as stride-2 slices and the boundary taps are seam-masked.
    """
    R, _ = x.shape
    R2, S2 = R // 2, seq // 2
    ds_ref[pl.ds(PAD_OFF, R), :] = x.astype(ds_ref.dtype)
    taps = [ds_ref[pl.ds(PAD_OFF - 1 + k, R2, stride=2), :] for k in range(4)]

    pos = _seq_pos(R2, S2)
    zero = jnp.zeros((), ds_ref.dtype)
    t0 = jnp.where(pos == 0, zero, taps[0])
    t3 = jnp.where(pos == S2 - 1, zero, taps[3])

    y = (jnp.dot(t0.astype(MXU_DTYPE),      w_ref[0], preferred_element_type=jnp.float32)
         + jnp.dot(taps[1].astype(MXU_DTYPE), w_ref[1], preferred_element_type=jnp.float32)
         + jnp.dot(taps[2].astype(MXU_DTYPE), w_ref[2], preferred_element_type=jnp.float32)
         + jnp.dot(t3.astype(MXU_DTYPE),      w_ref[3], preferred_element_type=jnp.float32)
         + b_ref[...])
    return y.astype(ACT_DTYPE)


def _resblock(x, w1, b1, w2, b2, pad_ref, seq):
    h = _conv3(x, w1, b1, pad_ref, seq, relu=True)
    return _conv3(h, w2, b2, pad_ref, seq, relu=True, residual=x)


# ----------------------------------------------------------------------------
# The single fused encoder kernel (grid = (batch // Bt,))
# ----------------------------------------------------------------------------
def _encoder_kernel(x_ref,
                    w_c1, b_c1,
                    w_r1a, b_r1a, w_r1b, b_r1b, w_d1, b_d1,
                    w_r2a, b_r2a, w_r2b, b_r2b, w_d2, b_d2,
                    w_r3a, b_r3a, w_r3b, b_r3b, w_d3, b_d3,
                    w_r4a, b_r4a, w_r4b, b_r4b,
                    w_out, b_out,
                    o_ref,
                    pad_c1, pad_b1, ds_s1, pad_b2, ds_s2, pad_b3, ds_s3, pad_b4,
                    *, seq_len):
    S = seq_len
    x = x_ref[0]                                                   # (R0, 8) bf16

    h = _conv3(x, w_c1, b_c1, pad_c1, S, relu=True)                # (R0, 16)
    h = _resblock(h, w_r1a, b_r1a, w_r1b, b_r1b, pad_b1, S)        # (R0, 16)
    h = _conv4_s2(h, w_d1, b_d1, ds_s1, S)                         # (R0/2, 32)
    h = _resblock(h, w_r2a, b_r2a, w_r2b, b_r2b, pad_b2, S // 2)   # (R0/2, 32)
    h = _conv4_s2(h, w_d2, b_d2, ds_s2, S // 2)                    # (R0/4, 64)
    h = _resblock(h, w_r3a, b_r3a, w_r3b, b_r3b, pad_b3, S // 4)   # (R0/4, 64)
    h = _conv4_s2(h, w_d3, b_d3, ds_s3, S // 4)                    # (R0/8, 128)
    h = _resblock(h, w_r4a, b_r4a, w_r4b, b_r4b, pad_b4, S // 8)   # (R0/8, 128)

    # conv_out: kernel_size=1 -> plain matmul; output lane-padded to 128.
    z = jnp.dot(h, w_out[0], preferred_element_type=jnp.float32) + b_out[...]
    o_ref[0] = z.astype(o_ref.dtype)


# ----------------------------------------------------------------------------
# Wrapper: fold BN, pack weights per-tap, launch the fused kernel
# ----------------------------------------------------------------------------
def _fold_bn(conv_p, bn_p):
    """Fold eval-mode BatchNorm + conv bias into (scaled weight, bias)."""
    s = bn_p["gamma"] / jnp.sqrt(bn_p["var"] + EPS)
    w = conv_p["w"] * s[:, None, None]                  # scale along Cout
    b = bn_p["beta"] + (conv_p["b"] - bn_p["mean"]) * s
    return w, b


def _pack(w_oik, b, pad_cin=None, pad_cout=None):
    """(Cout, Cin, K) weight + (Cout,) bias -> [(K, Cin, Cout) bf16, (1, Cout) f32]."""
    w = jnp.transpose(jnp.asarray(w_oik, jnp.float32), (2, 1, 0))   # (K, Cin, Cout)
    b = jnp.asarray(b, jnp.float32)
    if pad_cin is not None and pad_cin > w.shape[1]:
        w = jnp.pad(w, ((0, 0), (0, pad_cin - w.shape[1]), (0, 0)))
    if pad_cout is not None and pad_cout > w.shape[2]:
        w = jnp.pad(w, ((0, 0), (0, 0), (0, pad_cout - w.shape[2])))
        b = jnp.pad(b, (0, pad_cout - b.shape[0]))
    return [w.astype(MXU_DTYPE), b.reshape(1, -1)]


def _pick_batch_block(B, L):
    """Merge Bt sequences per grid step, keeping >= 2 parallel grid steps."""
    if (L & (L - 1)) != 0:          # seam masks need power-of-two lengths
        return 1
    bt = 1
    for cand in (2, 4):
        if B % cand == 0 and B // cand >= 2 and cand * L <= 4096:
            bt = cand
    return bt


def encoder_forward(params, x_ncl, *, batch_block=None):
    """x_ncl: (B, input_channels, L) as in PyTorch; returns (B, emb_dim, L // 8)."""
    B, Cin, L = x_ncl.shape
    assert L % 8 == 0 and L >= 8, "sequence length must be a multiple of 8"
    base = params["conv1"]["w"].shape[0]
    emb = params["conv_out"]["w"].shape[0]
    emb_pad = pl.cdiv(emb, 128) * 128                   # lane-dense output width
    L_out = L // 8

    Bt = batch_block or _pick_batch_block(B, L)
    assert B % Bt == 0
    G = B // Bt
    R0 = Bt * L

    # NCL -> NLC (channels on lanes), channel pad, bf16, merge Bt seqs per block.
    x = jnp.transpose(x_ncl, (0, 2, 1))
    x = jnp.pad(x, ((0, 0), (0, 0), (0, CIN_PAD - Cin)))
    x = x.astype(MXU_DTYPE).reshape(G, R0, CIN_PAD)

    # Pack (BN-folded) weights/biases in the exact order the kernel uses them.
    wb = []
    wb += _pack(params["conv1"]["w"], params["conv1"]["b"], pad_cin=CIN_PAD)
    for rb, dsn in (("rb1", "ds1"), ("rb2", "ds2"), ("rb3", "ds3")):
        p = params[rb]
        wb += _pack(*_fold_bn(p["conv1"], p["bn1"]))
        wb += _pack(*_fold_bn(p["conv2"], p["bn2"]))
        wb += _pack(params[dsn]["w"], params[dsn]["b"])
    p = params["rb4"]
    wb += _pack(*_fold_bn(p["conv1"], p["bn1"]))
    wb += _pack(*_fold_bn(p["conv2"], p["bn2"]))
    wb += _pack(params["conv_out"]["w"], params["conv_out"]["b"], pad_cout=emb_pad)

    # Weights/biases: constant index_maps -> DMA'd once, VMEM-resident.
    def _const_spec(a):
        if a.ndim == 3:
            return pl.BlockSpec(a.shape, lambda g: (0, 0, 0))
        return pl.BlockSpec(a.shape, lambda g: (0, 0))

    in_specs = [pl.BlockSpec((1, R0, CIN_PAD), lambda g: (g, 0, 0))]
    in_specs += [_const_spec(a) for a in wb]

    # Advisory cost estimate (flops summed over the 13 conv layers).
    louts = [L, L, L, L // 2, L // 2, L // 2, L // 4,
             L // 4, L // 4, L // 8, L // 8, L // 8, L // 8]
    flops = sum(2 * B * lo * int(np.prod(w.shape))
                for lo, w in zip(louts, wb[0::2]))
    bytes_accessed = (int(x.size) * 2 + B * L_out * emb_pad * 4
                      + sum(int(np.prod(a.shape)) * a.dtype.itemsize for a in wb))

    z = pl.pallas_call(
        functools.partial(_encoder_kernel, seq_len=L),
        out_shape=jax.ShapeDtypeStruct((G, Bt * L_out, emb_pad), jnp.float32),
        grid=(G,),
        in_specs=in_specs,
        out_specs=pl.BlockSpec((1, Bt * L_out, emb_pad), lambda g: (g, 0, 0)),
        scratch_shapes=[                     # per-stage tap / deinterleave buffers
            pltpu.VMEM((R0 + SCR_EXTRA, CIN_PAD), ACT_DTYPE),        # conv1 taps
            pltpu.VMEM((R0 + SCR_EXTRA, base), ACT_DTYPE),           # rb1 taps
            pltpu.VMEM((R0 + SCR_EXTRA, base), jnp.float32),         # ds1 strided taps
            pltpu.VMEM((R0 // 2 + SCR_EXTRA, base * 2), ACT_DTYPE),  # rb2 taps
            pltpu.VMEM((R0 // 2 + SCR_EXTRA, base * 2), jnp.float32),# ds2 strided taps
            pltpu.VMEM((R0 // 4 + SCR_EXTRA, base * 4), ACT_DTYPE),  # rb3 taps
            pltpu.VMEM((R0 // 4 + SCR_EXTRA, base * 4), jnp.float32),# ds3 strided taps
            pltpu.VMEM((R0 // 8 + SCR_EXTRA, base * 8), ACT_DTYPE),  # rb4 taps
        ],
        compiler_params=pltpu.CompilerParams(
            dimension_semantics=("parallel",),            # batch blocks over TCs
            vmem_limit_bytes=64 * 1024 * 1024),
        cost_estimate=pl.CostEstimate(flops=flops, transcendentals=0,
                                      bytes_accessed=bytes_accessed),
    )(x, *wb)

    # (G, Bt*L_out, emb_pad) -> (B, L_out, emb) -> NCL
    z = z.reshape(B, L_out, emb_pad)[:, :, :emb]
    return jnp.transpose(z, (0, 2, 1))


# ----------------------------------------------------------------------------
# Deterministic parameter initialization (shapes from Encoder.__init__)
# ----------------------------------------------------------------------------
def init_params(key, input_channels=1, base=16, emb=64):
    keys = iter(jax.random.split(key, 64))

    def conv(cout, cin, k):
        kw, kb = next(keys), next(keys)
        w = jax.random.normal(kw, (cout, cin, k), jnp.float32) * (cin * k) ** -0.5
        b = jax.random.normal(kb, (cout,), jnp.float32) * 0.05
        return {"w": w, "b": b}

    def bn(c):
        k1, k2, k3, k4 = (next(keys) for _ in range(4))
        return {"gamma": 1.0 + 0.1 * jax.random.normal(k1, (c,), jnp.float32),
                "beta": 0.1 * jax.random.normal(k2, (c,), jnp.float32),
                "mean": 0.1 * jax.random.normal(k3, (c,), jnp.float32),
                "var": 1.0 + 0.1 * jax.random.uniform(k4, (c,), jnp.float32)}

    def rb(c):
        return {"conv1": conv(c, c, 3), "bn1": bn(c),
                "conv2": conv(c, c, 3), "bn2": bn(c)}

    return {
        "conv1": conv(base, input_channels, 3),
        "rb1": rb(base),
        "ds1": conv(base * 2, base, 4),
        "rb2": rb(base * 2),
        "ds2": conv(base * 4, base * 2, 4),
        "rb3": rb(base * 4),
        "ds3": conv(base * 8, base * 4, 4),
        "rb4": rb(base * 8),
        "conv_out": conv(emb, base * 8, 1),
    }


# ----------------------------------------------------------------------------
# Pure-JAX (lax.conv) reference for validation
# ----------------------------------------------------------------------------
def ref_conv(x, p, stride, pad):
    y = lax.conv_general_dilated(x, p["w"], (stride,), [(pad, pad)],
                                 dimension_numbers=("NCH", "OIH", "NCH"))
    return y + p["b"][None, :, None]


def ref_bn(x, bn):
    return ((x - bn["mean"][None, :, None])
            / jnp.sqrt(bn["var"] + EPS)[None, :, None]
            * bn["gamma"][None, :, None] + bn["beta"][None, :, None])


def ref_resblock(x, p):
    h = jax.nn.relu(ref_bn(ref_conv(x, p["conv1"], 1, 1), p["bn1"]))
    o = ref_bn(ref_conv(h, p["conv2"], 1, 1), p["bn2"])
    return jax.nn.relu(o + x)


def ref_encoder(params, x):
    x = jax.nn.relu(ref_conv(x, params["conv1"], 1, 1))
    x = ref_resblock(x, params["rb1"])
    x = ref_conv(x, params["ds1"], 2, 1)
    x = ref_resblock(x, params["rb2"])
    x = ref_conv(x, params["ds2"], 2, 1)
    x = ref_resblock(x, params["rb3"])
    x = ref_conv(x, params["ds3"], 2, 1)
    x = ref_resblock(x, params["rb4"])
    return ref_conv(x, params["conv_out"], 1, 0)


if __name__ == "__main__":
    key = jax.random.PRNGKey(0)
    pkey, xkey = jax.random.split(key)

    B, C_in, L = 4, 1, 64            # small 64-point "PPG" -> (B, 64, 8)
    params = init_params(pkey, input_channels=C_in, base=16, emb=64)
    x = jax.random.normal(xkey, (B, C_in, L), jnp.float32)   # NCL like PyTorch

    z = jax.jit(encoder_forward)(params, x)                  # Bt=2, grid=(2,)
    z = jax.block_until_ready(z)
    assert z.shape == (B, 64, L // 8), z.shape

    ref = jax.block_until_ready(ref_encoder(params, x))
    # bf16 MXU operands / bf16 inter-layer activations vs f32 reference.
    tol = 2e-3 if MXU_DTYPE == jnp.float32 else 5e-2
    np.testing.assert_allclose(np.asarray(z), np.asarray(ref),
                               atol=tol, rtol=tol)
    print("KERNEL_OK")
</pallas_src>

<mosaic_0001>
module attributes {stable_mosaic.version = 11 : i64} {
  func.func @_encoder_kernel(%arg0: i32, %arg1: memref<1x128x8xbf16, #tpu.memory_space<vmem>>, %arg2: memref<3x8x16xbf16, #tpu.memory_space<vmem>>, %arg3: memref<1x16xf32, #tpu.memory_space<vmem>>, %arg4: memref<3x16x16xbf16, #tpu.memory_space<vmem>>, %arg5: memref<1x16xf32, #tpu.memory_space<vmem>>, %arg6: memref<3x16x16xbf16, #tpu.memory_space<vmem>>, %arg7: memref<1x16xf32, #tpu.memory_space<vmem>>, %arg8: memref<4x16x32xbf16, #tpu.memory_space<vmem>>, %arg9: memref<1x32xf32, #tpu.memory_space<vmem>>, %arg10: memref<3x32x32xbf16, #tpu.memory_space<vmem>>, %arg11: memref<1x32xf32, #tpu.memory_space<vmem>>, %arg12: memref<3x32x32xbf16, #tpu.memory_space<vmem>>, %arg13: memref<1x32xf32, #tpu.memory_space<vmem>>, %arg14: memref<4x32x64xbf16, #tpu.memory_space<vmem>>, %arg15: memref<1x64xf32, #tpu.memory_space<vmem>>, %arg16: memref<3x64x64xbf16, #tpu.memory_space<vmem>>, %arg17: memref<1x64xf32, #tpu.memory_space<vmem>>, %arg18: memref<3x64x64xbf16, #tpu.memory_space<vmem>>, %arg19: memref<1x64xf32, #tpu.memory_space<vmem>>, %arg20: memref<4x64x128xbf16, #tpu.memory_space<vmem>>, %arg21: memref<1x128xf32, #tpu.memory_space<vmem>>, %arg22: memref<3x128x128xbf16, #tpu.memory_space<vmem>>, %arg23: memref<1x128xf32, #tpu.memory_space<vmem>>, %arg24: memref<3x128x128xbf16, #tpu.memory_space<vmem>>, %arg25: memref<1x128xf32, #tpu.memory_space<vmem>>, %arg26: memref<1x128x128xbf16, #tpu.memory_space<vmem>>, %arg27: memref<1x128xf32, #tpu.memory_space<vmem>>, %arg28: memref<1x16x128xf32, #tpu.memory_space<vmem>>, %arg29: memref<152x8xbf16, #tpu.memory_space<vmem>>, %arg30: memref<152x16xbf16, #tpu.memory_space<vmem>>, %arg31: memref<152x16xf32, #tpu.memory_space<vmem>>, %arg32: memref<88x32xbf16, #tpu.memory_space<vmem>>, %arg33: memref<88x32xf32, #tpu.memory_space<vmem>>, %arg34: memref<56x64xbf16, #tpu.memory_space<vmem>>, %arg35: memref<56x64xf32, #tpu.memory_space<vmem>>, %arg36: memref<40x128xbf16, #tpu.memory_space<vmem>>) attributes {dimension_semantics = [#tpu.dimension_semantics<parallel>], iteration_bounds = array<i64: 2>, scalar_prefetch = 0 : i64, scratch_operands = 8 : i64, tpu.core_type = #tpu.core_type<tc>, window_params = [{transform_indices = @transform_0, window_bounds = array<i64: 1, 128, 8>}, {pipeline_mode = #tpu.pipeline_mode<synchronous>, transform_indices = @transform_1, window_bounds = array<i64: 3, 8, 16>}, {pipeline_mode = #tpu.pipeline_mode<synchronous>, transform_indices = @transform_2, window_bounds = array<i64: 1, 16>}, {pipeline_mode = #tpu.pipeline_mode<synchronous>, transform_indices = @transform_3, window_bounds = array<i64: 3, 16, 16>}, {pipeline_mode = #tpu.pipeline_mode<synchronous>, transform_indices = @transform_4, window_bounds = array<i64: 1, 16>}, {pipeline_mode = #tpu.pipeline_mode<synchronous>, transform_indices = @transform_5, window_bounds = array<i64: 3, 16, 16>}, {pipeline_mode = #tpu.pipeline_mode<synchronous>, transform_indices = @transform_6, window_bounds = array<i64: 1, 16>}, {pipeline_mode = #tpu.pipeline_mode<synchronous>, transform_indices = @transform_7, window_bounds = array<i64: 4, 16, 32>}, {pipeline_mode = #tpu.pipeline_mode<synchronous>, transform_indices = @transform_8, window_bounds = array<i64: 1, 32>}, {pipeline_mode = #tpu.pipeline_mode<synchronous>, transform_indices = @transform_9, window_bounds = array<i64: 3, 32, 32>}, {pipeline_mode = #tpu.pipeline_mode<synchronous>, transform_indices = @transform_10, window_bounds = array<i64: 1, 32>}, {pipeline_mode = #tpu.pipeline_mode<synchronous>, transform_indices = @transform_11, window_bounds = array<i64: 3, 32, 32>}, {pipeline_mode = #tpu.pipeline_mode<synchronous>, transform_indices = @transform_12, window_bounds = array<i64: 1, 32>}, {pipeline_mode = #tpu.pipeline_mode<synchronous>, transform_indices = @transform_13, window_bounds = array<i64: 4, 32, 64>}, {pipeline_mode = #tpu.pipeline_mode<synchronous>, transform_indices = @transform_14, window_bounds = array<i64: 1, 64>}, {pipeline_mode = #tpu.pipeline_mode<synchronous>, transform_indices = @transform_15, window_bounds = array<i64: 3, 64, 64>}, {pipeline_mode = #tpu.pipeline_mode<synchronous>, transform_indices = @transform_16, window_bounds = array<i64: 1, 64>}, {pipeline_mode = #tpu.pipeline_mode<synchronous>, transform_indices = @transform_17, window_bounds = array<i64: 3, 64, 64>}, {pipeline_mode = #tpu.pipeline_mode<synchronous>, transform_indices = @transform_18, window_bounds = array<i64: 1, 64>}, {pipeline_mode = #tpu.pipeline_mode<synchronous>, transform_indices = @transform_19, window_bounds = array<i64: 4, 64, 128>}, {pipeline_mode = #tpu.pipeline_mode<synchronous>, transform_indices = @transform_20, window_bounds = array<i64: 1, 128>}, {pipeline_mode = #tpu.pipeline_mode<synchronous>, transform_indices = @transform_21, window_bounds = array<i64: 3, 128, 128>}, {pipeline_mode = #tpu.pipeline_mode<synchronous>, transform_indices = @transform_22, window_bounds = array<i64: 1, 128>}, {pipeline_mode = #tpu.pipeline_mode<synchronous>, transform_indices = @transform_23, window_bounds = array<i64: 3, 128, 128>}, {pipeline_mode = #tpu.pipeline_mode<synchronous>, transform_indices = @transform_24, window_bounds = array<i64: 1, 128>}, {pipeline_mode = #tpu.pipeline_mode<synchronous>, transform_indices = @transform_25, window_bounds = array<i64: 1, 128, 128>}, {pipeline_mode = #tpu.pipeline_mode<synchronous>, transform_indices = @transform_26, window_bounds = array<i64: 1, 128>}, {transform_indices = @transform_27, window_bounds = array<i64: 1, 16, 128>}]} {
    %c0 = arith.constant 0 : index
    %c0_0 = arith.constant 0 : index
    %c0_1 = arith.constant 0 : index
    %0 = vector.load %arg1[%c0, %c0_0, %c0_1] : memref<1x128x8xbf16, #tpu.memory_space<vmem>>, vector<1x128x8xbf16>
    %1 = vector.shape_cast %0 : vector<1x128x8xbf16> to vector<128x8xbf16>
    %c16 = arith.constant 16 : index
    %c0_2 = arith.constant 0 : index
    %2 = vector.load %arg29[%c16, %c0_2] : memref<152x8xbf16, #tpu.memory_space<vmem>>, vector<128x8xbf16>
    tpu.vector_store %arg29[%c16, %c0_2], %1 {strides = array<i32>} : memref<152x8xbf16, #tpu.memory_space<vmem>>, vector<128x8xbf16>,
    %c15 = arith.constant 15 : index
    %c0_3 = arith.constant 0 : index
    %3 = vector.load %arg29[%c15, %c0_3] : memref<152x8xbf16, #tpu.memory_space<vmem>>, vector<128x8xbf16>
    %c17 = arith.constant 17 : index
    %c0_4 = arith.constant 0 : index
    %4 = vector.load %arg29[%c17, %c0_4] : memref<152x8xbf16, #tpu.memory_space<vmem>>, vector<128x8xbf16>
    %5 = tpu.iota {dimensions = array<i32: 0>} : vector<128x1xi32>
    %c63_i32 = arith.constant 63 : i32
    %6 = vector.broadcast %c63_i32 : i32 to vector<128x1xi32>
    %7 = arith.andi %5, %6 : vector<128x1xi32>
    %c0_i32 = arith.constant 0 : i32
    %8 = vector.broadcast %c0_i32 : i32 to vector<128x1xi32>
    %9 = arith.cmpi eq, %7, %8 : vector<128x1xi32>
    %cst = arith.constant 0.000000e+00 : bf16
    %10 = vector.shape_cast %9 : vector<128x1xi1> to vector<128x1xi1>
    %11 = vector.broadcast %10 : vector<128x1xi1> to vector<128x8xi1>
    %12 = vector.broadcast %cst : bf16 to vector<128x8xbf16>
    %13 = arith.select %11, %12, %3 : vector<128x8xi1>, vector<128x8xbf16>
    %c63_i32_5 = arith.constant 63 : i32
    %14 = vector.broadcast %c63_i32_5 : i32 to vector<128x1xi32>
    %15 = arith.cmpi eq, %7, %14 : vector<128x1xi32>
    %cst_6 = arith.constant 0.000000e+00 : bf16
    %16 = vector.shape_cast %15 : vector<128x1xi1> to vector<128x1xi1>
    %17 = vector.broadcast %16 : vector<128x1xi1> to vector<128x8xi1>
    %18 = vector.broadcast %cst_6 : bf16 to vector<128x8xbf16>
    %19 = arith.select %17, %18, %4 : vector<128x8xi1>, vector<128x8xbf16>
    %c0_7 = arith.constant 0 : index
    %c0_8 = arith.constant 0 : index
    %c0_9 = arith.constant 0 : index
    %20 = vector.load %arg2[%c0_7, %c0_8, %c0_9] : memref<3x8x16xbf16, #tpu.memory_space<vmem>>, vector<1x8x16xbf16>
    %21 = vector.shape_cast %20 : vector<1x8x16xbf16> to vector<8x16xbf16>
    %cst_10 = arith.constant dense<0.000000e+00> : vector<128x16xf32>
    %22 = tpu.matmul %13, %21, %cst_10 {dimension_numbers = #tpu.dot_dimension_numbers<[1], [0], [0], [1], [0, 0, 1, 1], [], []>} : vector<128x8xbf16>, vector<8x16xbf16>, vector<128x16xf32> -> vector<128x16xf32>
    %c1 = arith.constant 1 : index
    %c0_11 = arith.constant 0 : index
    %c0_12 = arith.constant 0 : index
    %23 = vector.load %arg2[%c1, %c0_11, %c0_12] : memref<3x8x16xbf16, #tpu.memory_space<vmem>>, vector<1x8x16xbf16>
    %24 = vector.shape_cast %23 : vector<1x8x16xbf16> to vector<8x16xbf16>
    %cst_13 = arith.constant dense<0.000000e+00> : vector<128x16xf32>
    %25 = tpu.matmul %1, %24, %cst_13 {dimension_numbers = #tpu.dot_dimension_numbers<[1], [0], [0], [1], [0, 0, 1, 1], [], []>} : vector<128x8xbf16>, vector<8x16xbf16>, vector<128x16xf32> -> vector<128x16xf32>
    %26 = arith.addf %22, %25 : vector<128x16xf32>
    %c2 = arith.constant 2 : index
    %c0_14 = arith.constant 0 : index
    %c0_15 = arith.constant 0 : index
    %27 = vector.load %arg2[%c2, %c0_14, %c0_15] : memref<3x8x16xbf16, #tpu.memory_space<vmem>>, vector<1x8x16xbf16>
    %28 = vector.shape_cast %27 : vector<1x8x16xbf16> to vector<8x16xbf16>
    %cst_16 = arith.constant dense<0.000000e+00> : vector<128x16xf32>
    %29 = tpu.matmul %19, %28, %cst_16 {dimension_numbers = #tpu.dot_dimension_numbers<[1], [0], [0], [1], [0, 0, 1, 1], [], []>} : vector<128x8xbf16>, vector<8x16xbf16>, vector<128x16xf32> -> vector<128x16xf32>
    %30 = arith.addf %26, %29 : vector<128x16xf32>
    %c0_17 = arith.constant 0 : index
    %c0_18 = arith.constant 0 : index
    %31 = vector.load %arg3[%c0_17, %c0_18] : memref<1x16xf32, #tpu.memory_space<vmem>>, vector<1x16xf32>
    %32 = vector.broadcast %31 : vector<1x16xf32> to vector<128x16xf32>
    %33 = arith.addf %30, %32 : vector<128x16xf32>
    %cst_19 = arith.constant 0.000000e+00 : f32
    %34 = vector.broadcast %cst_19 : f32 to vector<128x16xf32>
    %35 = arith.maximumf %33, %34 : vector<128x16xf32>
    %36 = arith.truncf %35 : vector<128x16xf32> to vector<128x16xbf16>
    %c16_20 = arith.constant 16 : index
    %c0_21 = arith.constant 0 : index
    %37 = vector.load %arg30[%c16_20, %c0_21] : memref<152x16xbf16, #tpu.memory_space<vmem>>, vector<128x16xbf16>
    tpu.vector_store %arg30[%c16_20, %c0_21], %36 {strides = array<i32>} : memref<152x16xbf16, #tpu.memory_space<vmem>>, vector<128x16xbf16>,
    %c15_22 = arith.constant 15 : index
    %c0_23 = arith.constant 0 : index
    %38 = vector.load %arg30[%c15_22, %c0_23] : memref<152x16xbf16, #tpu.memory_space<vmem>>, vector<128x16xbf16>
    %c17_24 = arith.constant 17 : index
    %c0_25 = arith.constant 0 : index
    %39 = vector.load %arg30[%c17_24, %c0_25] : memref<152x16xbf16, #tpu.memory_space<vmem>>, vector<128x16xbf16>
    %40 = tpu.iota {dimensions = array<i32: 0>} : vector<128x1xi32>
    %c63_i32_26 = arith.constant 63 : i32
    %41 = vector.broadcast %c63_i32_26 : i32 to vector<128x1xi32>
    %42 = arith.andi %40, %41 : vector<128x1xi32>
    %c0_i32_27 = arith.constant 0 : i32
    %43 = vector.broadcast %c0_i32_27 : i32 to vector<128x1xi32>
    %44 = arith.cmpi eq, %42, %43 : vector<128x1xi32>
    %cst_28 = arith.constant 0.000000e+00 : bf16
    %45 = vector.shape_cast %44 : vector<128x1xi1> to vector<128x1xi1>
    %46 = vector.broadcast %45 : vector<128x1xi1> to vector<128x16xi1>
    %47 = vector.broadcast %cst_28 : bf16 to vector<128x16xbf16>
    %48 = arith.select %46, %47, %38 : vector<128x16xi1>, vector<128x16xbf16>
    %c63_i32_29 = arith.constant 63 : i32
    %49 = vector.broadcast %c63_i32_29 : i32 to vector<128x1xi32>
    %50 = arith.cmpi eq, %42, %49 : vector<128x1xi32>
    %cst_30 = arith.constant 0.000000e+00 : bf16
    %51 = vector.shape_cast %50 : vector<128x1xi1> to vector<128x1xi1>
    %52 = vector.broadcast %51 : vector<128x1xi1> to vector<128x16xi1>
    %53 = vector.broadcast %cst_30 : bf16 to vector<128x16xbf16>
    %54 = arith.select %52, %53, %39 : vector<128x16xi1>, vector<128x16xbf16>
    %c0_31 = arith.constant 0 : index
    %c0_32 = arith.constant 0 : index
    %c0_33 = arith.constant 0 : index
    %55 = vector.load %arg4[%c0_31, %c0_32, %c0_33] : memref<3x16x16xbf16, #tpu.memory_space<vmem>>, vector<1x16x16xbf16>
    %56 = vector.shape_cast %55 : vector<1x16x16xbf16> to vector<16x16xbf16>
    %cst_34 = arith.constant dense<0.000000e+00> : vector<128x16xf32>
    %57 = tpu.matmul %48, %56, %cst_34 {dimension_numbers = #tpu.dot_dimension_numbers<[1], [0], [0], [1], [0, 0, 1, 1], [], []>} : vector<128x16xbf16>, vector<16x16xbf16>, vector<128x16xf32> -> vector<128x16xf32>
    %c1_35 = arith.constant 1 : index
    %c0_36 = arith.constant 0 : index
    %c0_37 = arith.constant 0 : index
    %58 = vector.load %arg4[%c1_35, %c0_36, %c0_37] : memref<3x16x16xbf16, #tpu.memory_space<vmem>>, vector<1x16x16xbf16>
    %59 = vector.shape_cast %58 : vector<1x16x16xbf16> to vector<16x16xbf16>
    %cst_38 = arith.constant dense<0.000000e+00> : vector<128x16xf32>
    %60 = tpu.matmul %36, %59, %cst_38 {dimension_numbers = #tpu.dot_dimension_numbers<[1], [0], [0], [1], [0, 0, 1, 1], [], []>} : vector<128x16xbf16>, vector<16x16xbf16>, vector<128x16xf32> -> vector<128x16xf32>
    %61 = arith.addf %57, %60 : vector<128x16xf32>
    %c2_39 = arith.constant 2 : index
    %c0_40 = arith.constant 0 : index
    %c0_41 = arith.constant 0 : index
    %62 = vector.load %arg4[%c2_39, %c0_40, %c0_41] : memref<3x16x16xbf16, #tpu.memory_space<vmem>>, vector<1x16x16xbf16>
    %63 = vector.shape_cast %62 : vector<1x16x16xbf16> to vector<16x16xbf16>
    %cst_42 = arith.constant dense<0.000000e+00> : vector<128x16xf32>
    %64 = tpu.matmul %54, %63, %cst_42 {dimension_numbers = #tpu.dot_dimension_numbers<[1], [0], [0], [1], [0, 0, 1, 1], [], []>} : vector<128x16xbf16>, vector<16x16xbf16>, vector<128x16xf32> -> vector<128x16xf32>
    %65 = arith.addf %61, %64 : vector<128x16xf32>
    %c0_43 = arith.constant 0 : index
    %c0_44 = arith.constant 0 : index
    %66 = vector.load %arg5[%c0_43, %c0_44] : memref<1x16xf32, #tpu.memory_space<vmem>>, vector<1x16xf32>
    %67 = vector.broadcast %66 : vector<1x16xf32> to vector<128x16xf32>
    %68 = arith.addf %65, %67 : vector<128x16xf32>
    %cst_45 = arith.constant 0.000000e+00 : f32
    %69 = vector.broadcast %cst_45 : f32 to vector<128x16xf32>
    %70 = arith.maximumf %68, %69 : vector<128x16xf32>
    %71 = arith.truncf %70 : vector<128x16xf32> to vector<128x16xbf16>
    %c16_46 = arith.constant 16 : index
    %c0_47 = arith.constant 0 : index
    %72 = vector.load %arg30[%c16_46, %c0_47] : memref<152x16xbf16, #tpu.memory_space<vmem>>, vector<128x16xbf16>
    tpu.vector_store %arg30[%c16_46, %c0_47], %71 {strides = array<i32>} : memref<152x16xbf16, #tpu.memory_space<vmem>>, vector<128x16xbf16>,
    %c15_48 = arith.constant 15 : index
    %c0_49 = arith.constant 0 : index
    %73 = vector.load %arg30[%c15_48, %c0_49] : memref<152x16xbf16, #tpu.memory_space<vmem>>, vector<128x16xbf16>
    %c17_50 = arith.constant 17 : index
    %c0_51 = arith.constant 0 : index
    %74 = vector.load %arg30[%c17_50, %c0_51] : memref<152x16xbf16, #tpu.memory_space<vmem>>, vector<128x16xbf16>
    %75 = tpu.iota {dimensions = array<i32: 0>} : vector<128x1xi32>
    %c63_i32_52 = arith.constant 63 : i32
    %76 = vector.broadcast %c63_i32_52 : i32 to vector<128x1xi32>
    %77 = arith.andi %75, %76 : vector<128x1xi32>
    %c0_i32_53 = arith.constant 0 : i32
    %78 = vector.broadcast %c0_i32_53 : i32 to vector<128x1xi32>
    %79 = arith.cmpi eq, %77, %78 : vector<128x1xi32>
    %cst_54 = arith.constant 0.000000e+00 : bf16
    %80 = vector.shape_cast %79 : vector<128x1xi1> to vector<128x1xi1>
    %81 = vector.broadcast %80 : vector<128x1xi1> to vector<128x16xi1>
    %82 = vector.broadcast %cst_54 : bf16 to vector<128x16xbf16>
    %83 = arith.select %81, %82, %73 : vector<128x16xi1>, vector<128x16xbf16>
    %c63_i32_55 = arith.constant 63 : i32
    %84 = vector.broadcast %c63_i32_55 : i32 to vector<128x1xi32>
    %85 = arith.cmpi eq, %77, %84 : vector<128x1xi32>
    %cst_56 = arith.constant 0.000000e+00 : bf16
    %86 = vector.shape_cast %85 : vector<128x1xi1> to vector<128x1xi1>
    %87 = vector.broadcast %86 : vector<128x1xi1> to vector<128x16xi1>
    %88 = vector.broadcast %cst_56 : bf16 to vector<128x16xbf16>
    %89 = arith.select %87, %88, %74 : vector<128x16xi1>, vector<128x16xbf16>
    %c0_57 = arith.constant 0 : index
    %c0_58 = arith.constant 0 : index
    %c0_59 = arith.constant 0 : index
    %90 = vector.load %arg6[%c0_57, %c0_58, %c0_59] : memref<3x16x16xbf16, #tpu.memory_space<vmem>>, vector<1x16x16xbf16>
    %91 = vector.shape_cast %90 : vector<1x16x16xbf16> to vector<16x16xbf16>
    %cst_60 = arith.constant dense<0.000000e+00> : vector<128x16xf32>
    %92 = tpu.matmul %83, %91, %cst_60 {dimension_numbers = #tpu.dot_dimension_numbers<[1], [0], [0], [1], [0, 0, 1, 1], [], []>} : vector<128x16xbf16>, vector<16x16xbf16>, vector<128x16xf32> -> vector<128x16xf32>
    %c1_61 = arith.constant 1 : index
    %c0_62 = arith.constant 0 : index
    %c0_63 = arith.constant 0 : index
    %93 = vector.load %arg6[%c1_61, %c0_62, %c0_63] : memref<3x16x16xbf16, #tpu.memory_space<vmem>>, vector<1x16x16xbf16>
    %94 = vector.shape_cast %93 : vector<1x16x16xbf16> to vector<16x16xbf16>
    %cst_64 = arith.constant dense<0.000000e+00> : vector<128x16xf32>
    %95 = tpu.matmul %71, %94, %cst_64 {dimension_numbers = #tpu.dot_dimension_numbers<[1], [0], [0], [1], [0, 0, 1, 1], [], []>} : vector<128x16xbf16>, vector<16x16xbf16>, vector<128x16xf32> -> vector<128x16xf32>
    %96 = arith.addf %92, %95 : vector<128x16xf32>
    %c2_65 = arith.constant 2 : index
    %c0_66 = arith.constant 0 : index
    %c0_67 = arith.constant 0 : index
    %97 = vector.load %arg6[%c2_65, %c0_66, %c0_67] : memref<3x16x16xbf16, #tpu.memory_space<vmem>>, vector<1x16x16xbf16>
    %98 = vector.shape_cast %97 : vector<1x16x16xbf16> to vector<16x16xbf16>
    %cst_68 = arith.constant dense<0.000000e+00> : vector<128x16xf32>
    %99 = tpu.matmul %89, %98, %cst_68 {dimension_numbers = #tpu.dot_dimension_numbers<[1], [0], [0], [1], [0, 0, 1, 1], [], []>} : vector<128x16xbf16>, vector<16x16xbf16>, vector<128x16xf32> -> vector<128x16xf32>
    %100 = arith.addf %96, %99 : vector<128x16xf32>
    %c0_69 = arith.constant 0 : index
    %c0_70 = arith.constant 0 : index
    %101 = vector.load %arg7[%c0_69, %c0_70] : memref<1x16xf32, #tpu.memory_space<vmem>>, vector<1x16xf32>
    %102 = vector.broadcast %101 : vector<1x16xf32> to vector<128x16xf32>
    %103 = arith.addf %100, %102 : vector<128x16xf32>
    %104 = arith.extf %36 : vector<128x16xbf16> to vector<128x16xf32>
    %105 = arith.addf %103, %104 : vector<128x16xf32>
    %cst_71 = arith.constant 0.000000e+00 : f32
    %106 = vector.broadcast %cst_71 : f32 to vector<128x16xf32>
    %107 = arith.maximumf %105, %106 : vector<128x16xf32>
    %108 = arith.truncf %107 : vector<128x16xf32> to vector<128x16xbf16>
    %109 = arith.extf %108 : vector<128x16xbf16> to vector<128x16xf32>
    %c16_72 = arith.constant 16 : index
    %c0_73 = arith.constant 0 : index
    %110 = vector.load %arg31[%c16_72, %c0_73] : memref<152x16xf32, #tpu.memory_space<vmem>>, vector<128x16xf32>
    tpu.vector_store %arg31[%c16_72, %c0_73], %109 {strides = array<i32>} : memref<152x16xf32, #tpu.memory_space<vmem>>, vector<128x16xf32>,
    %c15_74 = arith.constant 15 : index
    %c0_75 = arith.constant 0 : index
    %111 = tpu.strided_load %arg31[%c15_74, %c0_75] {strides = array<i32: 2, 1>} : memref<152x16xf32, #tpu.memory_space<vmem>>, vector<64x16xf32>
    %c16_76 = arith.constant 16 : index
    %c0_77 = arith.constant 0 : index
    %112 = tpu.strided_load %arg31[%c16_76, %c0_77] {strides = array<i32: 2, 1>} : memref<152x16xf32, #tpu.memory_space<vmem>>, vector<64x16xf32>
    %c17_78 = arith.constant 17 : index
    %c0_79 = arith.constant 0 : index
    %113 = tpu.strided_load %arg31[%c17_78, %c0_79] {strides = array<i32: 2, 1>} : memref<152x16xf32, #tpu.memory_space<vmem>>, vector<64x16xf32>
    %c18 = arith.constant 18 : index
    %c0_80 = arith.constant 0 : index
    %114 = tpu.strided_load %arg31[%c18, %c0_80] {strides = array<i32: 2, 1>} : memref<152x16xf32, #tpu.memory_space<vmem>>, vector<64x16xf32>
    %115 = tpu.iota {dimensions = array<i32: 0>} : vector<64x1xi32>
    %c31_i32 = arith.constant 31 : i32
    %116 = vector.broadcast %c31_i32 : i32 to vector<64x1xi32>
    %117 = arith.andi %115, %116 : vector<64x1xi32>
    %c0_i32_81 = arith.constant 0 : i32
    %118 = vector.broadcast %c0_i32_81 : i32 to vector<64x1xi32>
    %119 = arith.cmpi eq, %117, %118 : vector<64x1xi32>
    %cst_82 = arith.constant 0.000000e+00 : f32
    %120 = vector.shape_cast %119 : vector<64x1xi1> to vector<64x1xi1>
    %121 = vector.broadcast %120 : vector<64x1xi1> to vector<64x16xi1>
    %122 = vector.broadcast %cst_82 : f32 to vector<64x16xf32>
    %123 = arith.select %121, %122, %111 : vector<64x16xi1>, vector<64x16xf32>
    %c31_i32_83 = arith.constant 31 : i32
    %124 = vector.broadcast %c31_i32_83 : i32 to vector<64x1xi32>
    %125 = arith.cmpi eq, %117, %124 : vector<64x1xi32>
    %cst_84 = arith.constant 0.000000e+00 : f32
    %126 = vector.shape_cast %125 : vector<64x1xi1> to vector<64x1xi1>
    %127 = vector.broadcast %126 : vector<64x1xi1> to vector<64x16xi1>
    %128 = vector.broadcast %cst_84 : f32 to vector<64x16xf32>
    %129 = arith.select %127, %128, %114 : vector<64x16xi1>, vector<64x16xf32>
    %130 = arith.truncf %123 : vector<64x16xf32> to vector<64x16xbf16>
    %c0_85 = arith.constant 0 : index
    %c0_86 = arith.constant 0 : index
    %c0_87 = arith.constant 0 : index
    %131 = vector.load %arg8[%c0_85, %c0_86, %c0_87] : memref<4x16x32xbf16, #tpu.memory_space<vmem>>, vector<1x16x32xbf16>
    %132 = vector.shape_cast %131 : vector<1x16x32xbf16> to vector<16x32xbf16>
    %cst_88 = arith.constant dense<0.000000e+00> : vector<64x32xf32>
    %133 = tpu.matmul %130, %132, %cst_88 {dimension_numbers = #tpu.dot_dimension_numbers<[1], [0], [0], [1], [0, 0, 1, 1], [], []>} : vector<64x16xbf16>, vector<16x32xbf16>, vector<64x32xf32> -> vector<64x32xf32>
    %134 = arith.truncf %112 : vector<64x16xf32> to vector<64x16xbf16>
    %c1_89 = arith.constant 1 : index
    %c0_90 = arith.constant 0 : index
    %c0_91 = arith.constant 0 : index
    %135 = vector.load %arg8[%c1_89, %c0_90, %c0_91] : memref<4x16x32xbf16, #tpu.memory_space<vmem>>, vector<1x16x32xbf16>
    %136 = vector.shape_cast %135 : vector<1x16x32xbf16> to vector<16x32xbf16>
    %cst_92 = arith.constant dense<0.000000e+00> : vector<64x32xf32>
    %137 = tpu.matmul %134, %136, %cst_92 {dimension_numbers = #tpu.dot_dimension_numbers<[1], [0], [0], [1], [0, 0, 1, 1], [], []>} : vector<64x16xbf16>, vector<16x32xbf16>, vector<64x32xf32> -> vector<64x32xf32>
    %138 = arith.addf %133, %137 : vector<64x32xf32>
    %139 = arith.truncf %113 : vector<64x16xf32> to vector<64x16xbf16>
    %c2_93 = arith.constant 2 : index
    %c0_94 = arith.constant 0 : index
    %c0_95 = arith.constant 0 : index
    %140 = vector.load %arg8[%c2_93, %c0_94, %c0_95] : memref<4x16x32xbf16, #tpu.memory_space<vmem>>, vector<1x16x32xbf16>
    %141 = vector.shape_cast %140 : vector<1x16x32xbf16> to vector<16x32xbf16>
    %cst_96 = arith.constant dense<0.000000e+00> : vector<64x32xf32>
    %142 = tpu.matmul %139, %141, %cst_96 {dimension_numbers = #tpu.dot_dimension_numbers<[1], [0], [0], [1], [0, 0, 1, 1], [], []>} : vector<64x16xbf16>, vector<16x32xbf16>, vector<64x32xf32> -> vector<64x32xf32>
    %143 = arith.addf %138, %142 : vector<64x32xf32>
    %144 = arith.truncf %129 : vector<64x16xf32> to vector<64x16xbf16>
    %c3 = arith.constant 3 : index
    %c0_97 = arith.constant 0 : index
    %c0_98 = arith.constant 0 : index
    %145 = vector.load %arg8[%c3, %c0_97, %c0_98] : memref<4x16x32xbf16, #tpu.memory_space<vmem>>, vector<1x16x32xbf16>
    %146 = vector.shape_cast %145 : vector<1x16x32xbf16> to vector<16x32xbf16>
    %cst_99 = arith.constant dense<0.000000e+00> : vector<64x32xf32>
    %147 = tpu.matmul %144, %146, %cst_99 {dimension_numbers = #tpu.dot_dimension_numbers<[1], [0], [0], [1], [0, 0, 1, 1], [], []>} : vector<64x16xbf16>, vector<16x32xbf16>, vector<64x32xf32> -> vector<64x32xf32>
    %148 = arith.addf %143, %147 : vector<64x32xf32>
    %c0_100 = arith.constant 0 : index
    %c0_101 = arith.constant 0 : index
    %149 = vector.load %arg9[%c0_100, %c0_101] : memref<1x32xf32, #tpu.memory_space<vmem>>, vector<1x32xf32>
    %150 = vector.broadcast %149 : vector<1x32xf32> to vector<64x32xf32>
    %151 = arith.addf %148, %150 : vector<64x32xf32>
    %152 = arith.truncf %151 : vector<64x32xf32> to vector<64x32xbf16>
    %c16_102 = arith.constant 16 : index
    %c0_103 = arith.constant 0 : index
    %153 = vector.load %arg32[%c16_102, %c0_103] : memref<88x32xbf16, #tpu.memory_space<vmem>>, vector<64x32xbf16>
    tpu.vector_store %arg32[%c16_102, %c0_103], %152 {strides = array<i32>} : memref<88x32xbf16, #tpu.memory_space<vmem>>, vector<64x32xbf16>,
    %c15_104 = arith.constant 15 : index
    %c0_105 = arith.constant 0 : index
    %154 = vector.load %arg32[%c15_104, %c0_105] : memref<88x32xbf16, #tpu.memory_space<vmem>>, vector<64x32xbf16>
    %c17_106 = arith.constant 17 : index
    %c0_107 = arith.constant 0 : index
    %155 = vector.load %arg32[%c17_106, %c0_107] : memref<88x32xbf16, #tpu.memory_space<vmem>>, vector<64x32xbf16>
    %156 = tpu.iota {dimensions = array<i32: 0>} : vector<64x1xi32>
    %c31_i32_108 = arith.constant 31 : i32
    %157 = vector.broadcast %c31_i32_108 : i32 to vector<64x1xi32>
    %158 = arith.andi %156, %157 : vector<64x1xi32>
    %c0_i32_109 = arith.constant 0 : i32
    %159 = vector.broadcast %c0_i32_109 : i32 to vector<64x1xi32>
    %160 = arith.cmpi eq, %158, %159 : vector<64x1xi32>
    %cst_110 = arith.constant 0.000000e+00 : bf16
    %161 = vector.shape_cast %160 : vector<64x1xi1> to vector<64x1xi1>
    %162 = vector.broadcast %161 : vector<64x1xi1> to vector<64x32xi1>
    %163 = vector.broadcast %cst_110 : bf16 to vector<64x32xbf16>
    %164 = arith.select %162, %163, %154 : vector<64x32xi1>, vector<64x32xbf16>
    %c31_i32_111 = arith.constant 31 : i32
    %165 = vector.broadcast %c31_i32_111 : i32 to vector<64x1xi32>
    %166 = arith.cmpi eq, %158, %165 : vector<64x1xi32>
    %cst_112 = arith.constant 0.000000e+00 : bf16
    %167 = vector.shape_cast %166 : vector<64x1xi1> to vector<64x1xi1>
    %168 = vector.broadcast %167 : vector<64x1xi1> to vector<64x32xi1>
    %169 = vector.broadcast %cst_112 : bf16 to vector<64x32xbf16>
    %170 = arith.select %168, %169, %155 : vector<64x32xi1>, vector<64x32xbf16>
    %c0_113 = arith.constant 0 : index
    %c0_114 = arith.constant 0 : index
    %c0_115 = arith.constant 0 : index
    %171 = vector.load %arg10[%c0_113, %c0_114, %c0_115] : memref<3x32x32xbf16, #tpu.memory_space<vmem>>, vector<1x32x32xbf16>
    %172 = vector.shape_cast %171 : vector<1x32x32xbf16> to vector<32x32xbf16>
    %cst_116 = arith.constant dense<0.000000e+00> : vector<64x32xf32>
    %173 = tpu.matmul %164, %172, %cst_116 {dimension_numbers = #tpu.dot_dimension_numbers<[1], [0], [0], [1], [0, 0, 1, 1], [], []>} : vector<64x32xbf16>, vector<32x32xbf16>, vector<64x32xf32> -> vector<64x32xf32>
    %c1_117 = arith.constant 1 : index
    %c0_118 = arith.constant 0 : index
    %c0_119 = arith.constant 0 : index
    %174 = vector.load %arg10[%c1_117, %c0_118, %c0_119] : memref<3x32x32xbf16, #tpu.memory_space<vmem>>, vector<1x32x32xbf16>
    %175 = vector.shape_cast %174 : vector<1x32x32xbf16> to vector<32x32xbf16>
    %cst_120 = arith.constant dense<0.000000e+00> : vector<64x32xf32>
    %176 = tpu.matmul %152, %175, %cst_120 {dimension_numbers = #tpu.dot_dimension_numbers<[1], [0], [0], [1], [0, 0, 1, 1], [], []>} : vector<64x32xbf16>, vector<32x32xbf16>, vector<64x32xf32> -> vector<64x32xf32>
    %177 = arith.addf %173, %176 : vector<64x32xf32>
    %c2_121 = arith.constant 2 : index
    %c0_122 = arith.constant 0 : index
    %c0_123 = arith.constant 0 : index
    %178 = vector.load %arg10[%c2_121, %c0_122, %c0_123] : memref<3x32x32xbf16, #tpu.memory_space<vmem>>, vector<1x32x32xbf16>
    %179 = vector.shape_cast %178 : vector<1x32x32xbf16> to vector<32x32xbf16>
    %cst_124 = arith.constant dense<0.000000e+00> : vector<64x32xf32>
    %180 = tpu.matmul %170, %179, %cst_124 {dimension_numbers = #tpu.dot_dimension_numbers<[1], [0], [0], [1], [0, 0, 1, 1], [], []>} : vector<64x32xbf16>, vector<32x32xbf16>, vector<64x32xf32> -> vector<64x32xf32>
    %181 = arith.addf %177, %180 : vector<64x32xf32>
    %c0_125 = arith.constant 0 : index
    %c0_126 = arith.constant 0 : index
    %182 = vector.load %arg11[%c0_125, %c0_126] : memref<1x32xf32, #tpu.memory_space<vmem>>, vector<1x32xf32>
    %183 = vector.broadcast %182 : vector<1x32xf32> to vector<64x32xf32>
    %184 = arith.addf %181, %183 : vector<64x32xf32>
    %cst_127 = arith.constant 0.000000e+00 : f32
    %185 = vector.broadcast %cst_127 : f32 to vector<64x32xf32>
    %186 = arith.maximumf %184, %185 : vector<64x32xf32>
    %187 = arith.truncf %186 : vector<64x32xf32> to vector<64x32xbf16>
    %c16_128 = arith.constant 16 : index
    %c0_129 = arith.constant 0 : index
    %188 = vector.load %arg32[%c16_128, %c0_129] : memref<88x32xbf16, #tpu.memory_space<vmem>>, vector<64x32xbf16>
    tpu.vector_store %arg32[%c16_128, %c0_129], %187 {strides = array<i32>} : memref<88x32xbf16, #tpu.memory_space<vmem>>, vector<64x32xbf16>,
    %c15_130 = arith.constant 15 : index
    %c0_131 = arith.constant 0 : index
    %189 = vector.load %arg32[%c15_130, %c0_131] : memref<88x32xbf16, #tpu.memory_space<vmem>>, vector<64x32xbf16>
    %c17_132 = arith.constant 17 : index
    %c0_133 = arith.constant 0 : index
    %190 = vector.load %arg32[%c17_132, %c0_133] : memref<88x32xbf16, #tpu.memory_space<vmem>>, vector<64x32xbf16>
    %191 = tpu.iota {dimensions = array<i32: 0>} : vector<64x1xi32>
    %c31_i32_134 = arith.constant 31 : i32
    %192 = vector.broadcast %c31_i32_134 : i32 to vector<64x1xi32>
    %193 = arith.andi %191, %192 : vector<64x1xi32>
    %c0_i32_135 = arith.constant 0 : i32
    %194 = vector.broadcast %c0_i32_135 : i32 to vector<64x1xi32>
    %195 = arith.cmpi eq, %193, %194 : vector<64x1xi32>
    %cst_136 = arith.constant 0.000000e+00 : bf16
    %196 = vector.shape_cast %195 : vector<64x1xi1> to vector<64x1xi1>
    %197 = vector.broadcast %196 : vector<64x1xi1> to vector<64x32xi1>
    %198 = vector.broadcast %cst_136 : bf16 to vector<64x32xbf16>
    %199 = arith.select %197, %198, %189 : vector<64x32xi1>, vector<64x32xbf16>
    %c31_i32_137 = arith.constant 31 : i32
    %200 = vector.broadcast %c31_i32_137 : i32 to vector<64x1xi32>
    %201 = arith.cmpi eq, %193, %200 : vector<64x1xi32>
    %cst_138 = arith.constant 0.000000e+00 : bf16
    %202 = vector.shape_cast %201 : vector<64x1xi1> to vector<64x1xi1>
    %203 = vector.broadcast %202 : vector<64x1xi1> to vector<64x32xi1>
    %204 = vector.broadcast %cst_138 : bf16 to vector<64x32xbf16>
    %205 = arith.select %203, %204, %190 : vector<64x32xi1>, vector<64x32xbf16>
    %c0_139 = arith.constant 0 : index
    %c0_140 = arith.constant 0 : index
    %c0_141 = arith.constant 0 : index
    %206 = vector.load %arg12[%c0_139, %c0_140, %c0_141] : memref<3x32x32xbf16, #tpu.memory_space<vmem>>, vector<1x32x32xbf16>
    %207 = vector.shape_cast %206 : vector<1x32x32xbf16> to vector<32x32xbf16>
    %cst_142 = arith.constant dense<0.000000e+00> : vector<64x32xf32>
    %208 = tpu.matmul %199, %207, %cst_142 {dimension_numbers = #tpu.dot_dimension_numbers<[1], [0], [0], [1], [0, 0, 1, 1], [], []>} : vector<64x32xbf16>, vector<32x32xbf16>, vector<64x32xf32> -> vector<64x32xf32>
    %c1_143 = arith.constant 1 : index
    %c0_144 = arith.constant 0 : index
    %c0_145 = arith.constant 0 : index
    %209 = vector.load %arg12[%c1_143, %c0_144, %c0_145] : memref<3x32x32xbf16, #tpu.memory_space<vmem>>, vector<1x32x32xbf16>
    %210 = vector.shape_cast %209 : vector<1x32x32xbf16> to vector<32x32xbf16>
    %cst_146 = arith.constant dense<0.000000e+00> : vector<64x32xf32>
    %211 = tpu.matmul %187, %210, %cst_146 {dimension_numbers = #tpu.dot_dimension_numbers<[1], [0], [0], [1], [0, 0, 1, 1], [], []>} : vector<64x32xbf16>, vector<32x32xbf16>, vector<64x32xf32> -> vector<64x32xf32>
    %212 = arith.addf %208, %211 : vector<64x32xf32>
    %c2_147 = arith.constant 2 : index
    %c0_148 = arith.constant 0 : index
    %c0_149 = arith.constant 0 : index
    %213 = vector.load %arg12[%c2_147, %c0_148, %c0_149] : memref<3x32x32xbf16, #tpu.memory_space<vmem>>, vector<1x32x32xbf16>
    %214 = vector.shape_cast %213 : vector<1x32x32xbf16> to vector<32x32xbf16>
    %cst_150 = arith.constant dense<0.000000e+00> : vector<64x32xf32>
    %215 = tpu.matmul %205, %214, %cst_150 {dimension_numbers = #tpu.dot_dimension_numbers<[1], [0], [0], [1], [0, 0, 1, 1], [], []>} : vector<64x32xbf16>, vector<32x32xbf16>, vector<64x32xf32> -> vector<64x32xf32>
    %216 = arith.addf %212, %215 : vector<64x32xf32>
    %c0_151 = arith.constant 0 : index
    %c0_152 = arith.constant 0 : index
    %217 = vector.load %arg13[%c0_151, %c0_152] : memref<1x32xf32, #tpu.memory_space<vmem>>, vector<1x32xf32>
    %218 = vector.broadcast %217 : vector<1x32xf32> to vector<64x32xf32>
    %219 = arith.addf %216, %218 : vector<64x32xf32>
    %220 = arith.extf %152 : vector<64x32xbf16> to vector<64x32xf32>
    %221 = arith.addf %219, %220 : vector<64x32xf32>
    %cst_153 = arith.constant 0.000000e+00 : f32
    %222 = vector.broadcast %cst_153 : f32 to vector<64x32xf32>
    %223 = arith.maximumf %221, %222 : vector<64x32xf32>
    %224 = arith.truncf %223 : vector<64x32xf32> to vector<64x32xbf16>
    %225 = arith.extf %224 : vector<64x32xbf16> to vector<64x32xf32>
    %c16_154 = arith.constant 16 : index
    %c0_155 = arith.constant 0 : index
    %226 = vector.load %arg33[%c16_154, %c0_155] : memref<88x32xf32, #tpu.memory_space<vmem>>, vector<64x32xf32>
    tpu.vector_store %arg33[%c16_154, %c0_155], %225 {strides = array<i32>} : memref<88x32xf32, #tpu.memory_space<vmem>>, vector<64x32xf32>,
    %c15_156 = arith.constant 15 : index
    %c0_157 = arith.constant 0 : index
    %227 = tpu.strided_load %arg33[%c15_156, %c0_157] {strides = array<i32: 2, 1>} : memref<88x32xf32, #tpu.memory_space<vmem>>, vector<32x32xf32>
    %c16_158 = arith.constant 16 : index
    %c0_159 = arith.constant 0 : index
    %228 = tpu.strided_load %arg33[%c16_158, %c0_159] {strides = array<i32: 2, 1>} : memref<88x32xf32, #tpu.memory_space<vmem>>, vector<32x32xf32>
    %c17_160 = arith.constant 17 : index
    %c0_161 = arith.constant 0 : index
    %229 = tpu.strided_load %arg33[%c17_160, %c0_161] {strides = array<i32: 2, 1>} : memref<88x32xf32, #tpu.memory_space<vmem>>, vector<32x32xf32>
    %c18_162 = arith.constant 18 : index
    %c0_163 = arith.constant 0 : index
    %230 = tpu.strided_load %arg33[%c18_162, %c0_163] {strides = array<i32: 2, 1>} : memref<88x32xf32, #tpu.memory_space<vmem>>, vector<32x32xf32>
    %231 = tpu.iota {dimensions = array<i32: 0>} : vector<32x1xi32>
    %c15_i32 = arith.constant 15 : i32
    %232 = vector.broadcast %c15_i32 : i32 to vector<32x1xi32>
    %233 = arith.andi %231, %232 : vector<32x1xi32>
    %c0_i32_164 = arith.constant 0 : i32
    %234 = vector.broadcast %c0_i32_164 : i32 to vector<32x1xi32>
    %235 = arith.cmpi eq, %233, %234 : vector<32x1xi32>
    %cst_165 = arith.constant 0.000000e+00 : f32
    %236 = vector.shape_cast %235 : vector<32x1xi1> to vector<32x1xi1>
    %237 = vector.broadcast %236 : vector<32x1xi1> to vector<32x32xi1>
    %238 = vector.broadcast %cst_165 : f32 to vector<32x32xf32>
    %239 = arith.select %237, %238, %227 : vector<32x32xi1>, vector<32x32xf32>
    %c15_i32_166 = arith.constant 15 : i32
    %240 = vector.broadcast %c15_i32_166 : i32 to vector<32x1xi32>
    %241 = arith.cmpi eq, %233, %240 : vector<32x1xi32>
    %cst_167 = arith.constant 0.000000e+00 : f32
    %242 = vector.shape_cast %241 : vector<32x1xi1> to vector<32x1xi1>
    %243 = vector.broadcast %242 : vector<32x1xi1> to vector<32x32xi1>
    %244 = vector.broadcast %cst_167 : f32 to vector<32x32xf32>
    %245 = arith.select %243, %244, %230 : vector<32x32xi1>, vector<32x32xf32>
    %246 = arith.truncf %239 : vector<32x32xf32> to vector<32x32xbf16>
    %c0_168 = arith.constant 0 : index
    %c0_169 = arith.constant 0 : index
    %c0_170 = arith.constant 0 : index
    %247 = vector.load %arg14[%c0_168, %c0_169, %c0_170] : memref<4x32x64xbf16, #tpu.memory_space<vmem>>, vector<1x32x64xbf16>
    %248 = vector.shape_cast %247 : vector<1x32x64xbf16> to vector<32x64xbf16>
    %cst_171 = arith.constant dense<0.000000e+00> : vector<32x64xf32>
    %249 = tpu.matmul %246, %248, %cst_171 {dimension_numbers = #tpu.dot_dimension_numbers<[1], [0], [0], [1], [0, 0, 1, 1], [], []>} : vector<32x32xbf16>, vector<32x64xbf16>, vector<32x64xf32> -> vector<32x64xf32>
    %250 = arith.truncf %228 : vector<32x32xf32> to vector<32x32xbf16>
    %c1_172 = arith.constant 1 : index
    %c0_173 = arith.constant 0 : index
    %c0_174 = arith.constant 0 : index
    %251 = vector.load %arg14[%c1_172, %c0_173, %c0_174] : memref<4x32x64xbf16, #tpu.memory_space<vmem>>, vector<1x32x64xbf16>
    %252 = vector.shape_cast %251 : vector<1x32x64xbf16> to vector<32x64xbf16>
    %cst_175 = arith.constant dense<0.000000e+00> : vector<32x64xf32>
    %253 = tpu.matmul %250, %252, %cst_175 {dimension_numbers = #tpu.dot_dimension_numbers<[1], [0], [0], [1], [0, 0, 1, 1], [], []>} : vector<32x32xbf16>, vector<32x64xbf16>, vector<32x64xf32> -> vector<32x64xf32>
    %254 = arith.addf %249, %253 : vector<32x64xf32>
    %255 = arith.truncf %229 : vector<32x32xf32> to vector<32x32xbf16>
    %c2_176 = arith.constant 2 : index
    %c0_177 = arith.constant 0 : index
    %c0_178 = arith.constant 0 : index
    %256 = vector.load %arg14[%c2_176, %c0_177, %c0_178] : memref<4x32x64xbf16, #tpu.memory_space<vmem>>, vector<1x32x64xbf16>
    %257 = vector.shape_cast %256 : vector<1x32x64xbf16> to vector<32x64xbf16>
    %cst_179 = arith.constant dense<0.000000e+00> : vector<32x64xf32>
    %258 = tpu.matmul %255, %257, %cst_179 {dimension_numbers = #tpu.dot_dimension_numbers<[1], [0], [0], [1], [0, 0, 1, 1], [], []>} : vector<32x32xbf16>, vector<32x64xbf16>, vector<32x64xf32> -> vector<32x64xf32>
    %259 = arith.addf %254, %258 : vector<32x64xf32>
    %260 = arith.truncf %245 : vector<32x32xf32> to vector<32x32xbf16>
    %c3_180 = arith.constant 3 : index
    %c0_181 = arith.constant 0 : index
    %c0_182 = arith.constant 0 : index
    %261 = vector.load %arg14[%c3_180, %c0_181, %c0_182] : memref<4x32x64xbf16, #tpu.memory_space<vmem>>, vector<1x32x64xbf16>
    %262 = vector.shape_cast %261 : vector<1x32x64xbf16> to vector<32x64xbf16>
    %cst_183 = arith.constant dense<0.000000e+00> : vector<32x64xf32>
    %263 = tpu.matmul %260, %262, %cst_183 {dimension_numbers = #tpu.dot_dimension_numbers<[1], [0], [0], [1], [0, 0, 1, 1], [], []>} : vector<32x32xbf16>, vector<32x64xbf16>, vector<32x64xf32> -> vector<32x64xf32>
    %264 = arith.addf %259, %263 : vector<32x64xf32>
    %c0_184 = arith.constant 0 : index
    %c0_185 = arith.constant 0 : index
    %265 = vector.load %arg15[%c0_184, %c0_185] : memref<1x64xf32, #tpu.memory_space<vmem>>, vector<1x64xf32>
    %266 = vector.broadcast %265 : vector<1x64xf32> to vector<32x64xf32>
    %267 = arith.addf %264, %266 : vector<32x64xf32>
    %268 = arith.truncf %267 : vector<32x64xf32> to vector<32x64xbf16>
    %c16_186 = arith.constant 16 : index
    %c0_187 = arith.constant 0 : index
    %269 = vector.load %arg34[%c16_186, %c0_187] : memref<56x64xbf16, #tpu.memory_space<vmem>>, vector<32x64xbf16>
    tpu.vector_store %arg34[%c16_186, %c0_187], %268 {strides = array<i32>} : memref<56x64xbf16, #tpu.memory_space<vmem>>, vector<32x64xbf16>,
    %c15_188 = arith.constant 15 : index
    %c0_189 = arith.constant 0 : index
    %270 = vector.load %arg34[%c15_188, %c0_189] : memref<56x64xbf16, #tpu.memory_space<vmem>>, vector<32x64xbf16>
    %c17_190 = arith.constant 17 : index
    %c0_191 = arith.constant 0 : index
    %271 = vector.load %arg34[%c17_190, %c0_191] : memref<56x64xbf16, #tpu.memory_space<vmem>>, vector<32x64xbf16>
    %272 = tpu.iota {dimensions = array<i32: 0>} : vector<32x1xi32>
    %c15_i32_192 = arith.constant 15 : i32
    %273 = vector.broadcast %c15_i32_192 : i32 to vector<32x1xi32>
    %274 = arith.andi %272, %273 : vector<32x1xi32>
    %c0_i32_193 = arith.constant 0 : i32
    %275 = vector.broadcast %c0_i32_193 : i32 to vector<32x1xi32>
    %276 = arith.cmpi eq, %274, %275 : vector<32x1xi32>
    %cst_194 = arith.constant 0.000000e+00 : bf16
    %277 = vector.shape_cast %276 : vector<32x1xi1> to vector<32x1xi1>
    %278 = vector.broadcast %277 : vector<32x1xi1> to vector<32x64xi1>
    %279 = vector.broadcast %cst_194 : bf16 to vector<32x64xbf16>
    %280 = arith.select %278, %279, %270 : vector<32x64xi1>, vector<32x64xbf16>
    %c15_i32_195 = arith.constant 15 : i32
    %281 = vector.broadcast %c15_i32_195 : i32 to vector<32x1xi32>
    %282 = arith.cmpi eq, %274, %281 : vector<32x1xi32>
    %cst_196 = arith.constant 0.000000e+00 : bf16
    %283 = vector.shape_cast %282 : vector<32x1xi1> to vector<32x1xi1>
    %284 = vector.broadcast %283 : vector<32x1xi1> to vector<32x64xi1>
    %285 = vector.broadcast %cst_196 : bf16 to vector<32x64xbf16>
    %286 = arith.select %284, %285, %271 : vector<32x64xi1>, vector<32x64xbf16>
    %c0_197 = arith.constant 0 : index
    %c0_198 = arith.constant 0 : index
    %c0_199 = arith.constant 0 : index
    %287 = vector.load %arg16[%c0_197, %c0_198, %c0_199] : memref<3x64x64xbf16, #tpu.memory_space<vmem>>, vector<1x64x64xbf16>
    %288 = vector.shape_cast %287 : vector<1x64x64xbf16> to vector<64x64xbf16>
    %cst_200 = arith.constant dense<0.000000e+00> : vector<32x64xf32>
    %289 = tpu.matmul %280, %288, %cst_200 {dimension_numbers = #tpu.dot_dimension_numbers<[1], [0], [0], [1], [0, 0, 1, 1], [], []>} : vector<32x64xbf16>, vector<64x64xbf16>, vector<32x64xf32> -> vector<32x64xf32>
    %c1_201 = arith.constant 1 : index
    %c0_202 = arith.constant 0 : index
    %c0_203 = arith.constant 0 : index
    %290 = vector.load %arg16[%c1_201, %c0_202, %c0_203] : memref<3x64x64xbf16, #tpu.memory_space<vmem>>, vector<1x64x64xbf16>
    %291 = vector.shape_cast %290 : vector<1x64x64xbf16> to vector<64x64xbf16>
    %cst_204 = arith.constant dense<0.000000e+00> : vector<32x64xf32>
    %292 = tpu.matmul %268, %291, %cst_204 {dimension_numbers = #tpu.dot_dimension_numbers<[1], [0], [0], [1], [0, 0, 1, 1], [], []>} : vector<32x64xbf16>, vector<64x64xbf16>, vector<32x64xf32> -> vector<32x64xf32>
    %293 = arith.addf %289, %292 : vector<32x64xf32>
    %c2_205 = arith.constant 2 : index
    %c0_206 = arith.constant 0 : index
    %c0_207 = arith.constant 0 : index
    %294 = vector.load %arg16[%c2_205, %c0_206, %c0_207] : memref<3x64x64xbf16, #tpu.memory_space<vmem>>, vector<1x64x64xbf16>
    %295 = vector.shape_cast %294 : vector<1x64x64xbf16> to vector<64x64xbf16>
    %cst_208 = arith.constant dense<0.000000e+00> : vector<32x64xf32>
    %296 = tpu.matmul %286, %295, %cst_208 {dimension_numbers = #tpu.dot_dimension_numbers<[1], [0], [0], [1], [0, 0, 1, 1], [], []>} : vector<32x64xbf16>, vector<64x64xbf16>, vector<32x64xf32> -> vector<32x64xf32>
    %297 = arith.addf %293, %296 : vector<32x64xf32>
    %c0_209 = arith.constant 0 : index
    %c0_210 = arith.constant 0 : index
    %298 = vector.load %arg17[%c0_209, %c0_210] : memref<1x64xf32, #tpu.memory_space<vmem>>, vector<1x64xf32>
    %299 = vector.broadcast %298 : vector<1x64xf32> to vector<32x64xf32>
    %300 = arith.addf %297, %299 : vector<32x64xf32>
    %cst_211 = arith.constant 0.000000e+00 : f32
    %301 = vector.broadcast %cst_211 : f32 to vector<32x64xf32>
    %302 = arith.maximumf %300, %301 : vector<32x64xf32>
    %303 = arith.truncf %302 : vector<32x64xf32> to vector<32x64xbf16>
    %c16_212 = arith.constant 16 : index
    %c0_213 = arith.constant 0 : index
    %304 = vector.load %arg34[%c16_212, %c0_213] : memref<56x64xbf16, #tpu.memory_space<vmem>>, vector<32x64xbf16>
    tpu.vector_store %arg34[%c16_212, %c0_213], %303 {strides = array<i32>} : memref<56x64xbf16, #tpu.memory_space<vmem>>, vector<32x64xbf16>,
    %c15_214 = arith.constant 15 : index
    %c0_215 = arith.constant 0 : index
    %305 = vector.load %arg34[%c15_214, %c0_215] : memref<56x64xbf16, #tpu.memory_space<vmem>>, vector<32x64xbf16>
    %c17_216 = arith.constant 17 : index
    %c0_217 = arith.constant 0 : index
    %306 = vector.load %arg34[%c17_216, %c0_217] : memref<56x64xbf16, #tpu.memory_space<vmem>>, vector<32x64xbf16>
    %307 = tpu.iota {dimensions = array<i32: 0>} : vector<32x1xi32>
    %c15_i32_218 = arith.constant 15 : i32
    %308 = vector.broadcast %c15_i32_218 : i32 to vector<32x1xi32>
    %309 = arith.andi %307, %308 : vector<32x1xi32>
    %c0_i32_219 = arith.constant 0 : i32
    %310 = vector.broadcast %c0_i32_219 : i32 to vector<32x1xi32>
    %311 = arith.cmpi eq, %309, %310 : vector<32x1xi32>
    %cst_220 = arith.constant 0.000000e+00 : bf16
    %312 = vector.shape_cast %311 : vector<32x1xi1> to vector<32x1xi1>
    %313 = vector.broadcast %312 : vector<32x1xi1> to vector<32x64xi1>
    %314 = vector.broadcast %cst_220 : bf16 to vector<32x64xbf16>
    %315 = arith.select %313, %314, %305 : vector<32x64xi1>, vector<32x64xbf16>
    %c15_i32_221 = arith.constant 15 : i32
    %316 = vector.broadcast %c15_i32_221 : i32 to vector<32x1xi32>
    %317 = arith.cmpi eq, %309, %316 : vector<32x1xi32>
    %cst_222 = arith.constant 0.000000e+00 : bf16
    %318 = vector.shape_cast %317 : vector<32x1xi1> to vector<32x1xi1>
    %319 = vector.broadcast %318 : vector<32x1xi1> to vector<32x64xi1>
    %320 = vector.broadcast %cst_222 : bf16 to vector<32x64xbf16>
    %321 = arith.select %319, %320, %306 : vector<32x64xi1>, vector<32x64xbf16>
    %c0_223 = arith.constant 0 : index
    %c0_224 = arith.constant 0 : index
    %c0_225 = arith.constant 0 : index
    %322 = vector.load %arg18[%c0_223, %c0_224, %c0_225] : memref<3x64x64xbf16, #tpu.memory_space<vmem>>, vector<1x64x64xbf16>
    %323 = vector.shape_cast %322 : vector<1x64x64xbf16> to vector<64x64xbf16>
    %cst_226 = arith.constant dense<0.000000e+00> : vector<32x64xf32>
    %324 = tpu.matmul %315, %323, %cst_226 {dimension_numbers = #tpu.dot_dimension_numbers<[1], [0], [0], [1], [0, 0, 1, 1], [], []>} : vector<32x64xbf16>, vector<64x64xbf16>, vector<32x64xf32> -> vector<32x64xf32>
    %c1_227 = arith.constant 1 : index
    %c0_228 = arith.constant 0 : index
    %c0_229 = arith.constant 0 : index
    %325 = vector.load %arg18[%c1_227, %c0_228, %c0_229] : memref<3x64x64xbf16, #tpu.memory_space<vmem>>, vector<1x64x64xbf16>
    %326 = vector.shape_cast %325 : vector<1x64x64xbf16> to vector<64x64xbf16>
    %cst_230 = arith.constant dense<0.000000e+00> : vector<32x64xf32>
    %327 = tpu.matmul %303, %326, %cst_230 {dimension_numbers = #tpu.dot_dimension_numbers<[1], [0], [0], [1], [0, 0, 1, 1], [], []>} : vector<32x64xbf16>, vector<64x64xbf16>, vector<32x64xf32> -> vector<32x64xf32>
    %328 = arith.addf %324, %327 : vector<32x64xf32>
    %c2_231 = arith.constant 2 : index
    %c0_232 = arith.constant 0 : index
    %c0_233 = arith.constant 0 : index
    %329 = vector.load %arg18[%c2_231, %c0_232, %c0_233] : memref<3x64x64xbf16, #tpu.memory_space<vmem>>, vector<1x64x64xbf16>
    %330 = vector.shape_cast %329 : vector<1x64x64xbf16> to vector<64x64xbf16>
    %cst_234 = arith.constant dense<0.000000e+00> : vector<32x64xf32>
    %331 = tpu.matmul %321, %330, %cst_234 {dimension_numbers = #tpu.dot_dimension_numbers<[1], [0], [0], [1], [0, 0, 1, 1], [], []>} : vector<32x64xbf16>, vector<64x64xbf16>, vector<32x64xf32> -> vector<32x64xf32>
    %332 = arith.addf %328, %331 : vector<32x64xf32>
    %c0_235 = arith.constant 0 : index
    %c0_236 = arith.constant 0 : index
    %333 = vector.load %arg19[%c0_235, %c0_236] : memref<1x64xf32, #tpu.memory_space<vmem>>, vector<1x64xf32>
    %334 = vector.broadcast %333 : vector<1x64xf32> to vector<32x64xf32>
    %335 = arith.addf %332, %334 : vector<32x64xf32>
    %336 = arith.extf %268 : vector<32x64xbf16> to vector<32x64xf32>
    %337 = arith.addf %335, %336 : vector<32x64xf32>
    %cst_237 = arith.constant 0.000000e+00 : f32
    %338 = vector.broadcast %cst_237 : f32 to vector<32x64xf32>
    %339 = arith.maximumf %337, %338 : vector<32x64xf32>
    %340 = arith.truncf %339 : vector<32x64xf32> to vector<32x64xbf16>
    %341 = arith.extf %340 : vector<32x64xbf16> to vector<32x64xf32>
    %c16_238 = arith.constant 16 : index
    %c0_239 = arith.constant 0 : index
    %342 = vector.load %arg35[%c16_238, %c0_239] : memref<56x64xf32, #tpu.memory_space<vmem>>, vector<32x64xf32>
    tpu.vector_store %arg35[%c16_238, %c0_239], %341 {strides = array<i32>} : memref<56x64xf32, #tpu.memory_space<vmem>>, vector<32x64xf32>,
    %c15_240 = arith.constant 15 : index
    %c0_241 = arith.constant 0 : index
    %343 = tpu.strided_load %arg35[%c15_240, %c0_241] {strides = array<i32: 2, 1>} : memref<56x64xf32, #tpu.memory_space<vmem>>, vector<16x64xf32>
    %c16_242 = arith.constant 16 : index
    %c0_243 = arith.constant 0 : index
    %344 = tpu.strided_load %arg35[%c16_242, %c0_243] {strides = array<i32: 2, 1>} : memref<56x64xf32, #tpu.memory_space<vmem>>, vector<16x64xf32>
    %c17_244 = arith.constant 17 : index
    %c0_245 = arith.constant 0 : index
    %345 = tpu.strided_load %arg35[%c17_244, %c0_245] {strides = array<i32: 2, 1>} : memref<56x64xf32, #tpu.memory_space<vmem>>, vector<16x64xf32>
    %c18_246 = arith.constant 18 : index
    %c0_247 = arith.constant 0 : index
    %346 = tpu.strided_load %arg35[%c18_246, %c0_247] {strides = array<i32: 2, 1>} : memref<56x64xf32, #tpu.memory_space<vmem>>, vector<16x64xf32>
    %347 = tpu.iota {dimensions = array<i32: 0>} : vector<16x1xi32>
    %c7_i32 = arith.constant 7 : i32
    %348 = vector.broadcast %c7_i32 : i32 to vector<16x1xi32>
    %349 = arith.andi %347, %348 : vector<16x1xi32>
    %c0_i32_248 = arith.constant 0 : i32
    %350 = vector.broadcast %c0_i32_248 : i32 to vector<16x1xi32>
    %351 = arith.cmpi eq, %349, %350 : vector<16x1xi32>
    %cst_249 = arith.constant 0.000000e+00 : f32
    %352 = vector.shape_cast %351 : vector<16x1xi1> to vector<16x1xi1>
    %353 = vector.broadcast %352 : vector<16x1xi1> to vector<16x64xi1>
    %354 = vector.broadcast %cst_249 : f32 to vector<16x64xf32>
    %355 = arith.select %353, %354, %343 : vector<16x64xi1>, vector<16x64xf32>
    %c7_i32_250 = arith.constant 7 : i32
    %356 = vector.broadcast %c7_i32_250 : i32 to vector<16x1xi32>
    %357 = arith.cmpi eq, %349, %356 : vector<16x1xi32>
    %cst_251 = arith.constant 0.000000e+00 : f32
    %358 = vector.shape_cast %357 : vector<16x1xi1> to vector<16x1xi1>
    %359 = vector.broadcast %358 : vector<16x1xi1> to vector<16x64xi1>
    %360 = vector.broadcast %cst_251 : f32 to vector<16x64xf32>
    %361 = arith.select %359, %360, %346 : vector<16x64xi1>, vector<16x64xf32>
    %362 = arith.truncf %355 : vector<16x64xf32> to vector<16x64xbf16>
    %c0_252 = arith.constant 0 : index
    %c0_253 = arith.constant 0 : index
    %c0_254 = arith.constant 0 : index
    %363 = vector.load %arg20[%c0_252, %c0_253, %c0_254] : memref<4x64x128xbf16, #tpu.memory_space<vmem>>, vector<1x64x128xbf16>
    %364 = vector.shape_cast %363 : vector<1x64x128xbf16> to vector<64x128xbf16>
    %cst_255 = arith.constant dense<0.000000e+00> : vector<16x128xf32>
    %365 = tpu.matmul %362, %364, %cst_255 {dimension_numbers = #tpu.dot_dimension_numbers<[1], [0], [0], [1], [0, 0, 1, 1], [], []>} : vector<16x64xbf16>, vector<64x128xbf16>, vector<16x128xf32> -> vector<16x128xf32>
    %366 = arith.truncf %344 : vector<16x64xf32> to vector<16x64xbf16>
    %c1_256 = arith.constant 1 : index
    %c0_257 = arith.constant 0 : index
    %c0_258 = arith.constant 0 : index
    %367 = vector.load %arg20[%c1_256, %c0_257, %c0_258] : memref<4x64x128xbf16, #tpu.memory_space<vmem>>, vector<1x64x128xbf16>
    %368 = vector.shape_cast %367 : vector<1x64x128xbf16> to vector<64x128xbf16>
    %cst_259 = arith.constant dense<0.000000e+00> : vector<16x128xf32>
    %369 = tpu.matmul %366, %368, %cst_259 {dimension_numbers = #tpu.dot_dimension_numbers<[1], [0], [0], [1], [0, 0, 1, 1], [], []>} : vector<16x64xbf16>, vector<64x128xbf16>, vector<16x128xf32> -> vector<16x128xf32>
    %370 = arith.addf %365, %369 : vector<16x128xf32>
    %371 = arith.truncf %345 : vector<16x64xf32> to vector<16x64xbf16>
    %c2_260 = arith.constant 2 : index
    %c0_261 = arith.constant 0 : index
    %c0_262 = arith.constant 0 : index
    %372 = vector.load %arg20[%c2_260, %c0_261, %c0_262] : memref<4x64x128xbf16, #tpu.memory_space<vmem>>, vector<1x64x128xbf16>
    %373 = vector.shape_cast %372 : vector<1x64x128xbf16> to vector<64x128xbf16>
    %cst_263 = arith.constant dense<0.000000e+00> : vector<16x128xf32>
    %374 = tpu.matmul %371, %373, %cst_263 {dimension_numbers = #tpu.dot_dimension_numbers<[1], [0], [0], [1], [0, 0, 1, 1], [], []>} : vector<16x64xbf16>, vector<64x128xbf16>, vector<16x128xf32> -> vector<16x128xf32>
    %375 = arith.addf %370, %374 : vector<16x128xf32>
    %376 = arith.truncf %361 : vector<16x64xf32> to vector<16x64xbf16>
    %c3_264 = arith.constant 3 : index
    %c0_265 = arith.constant 0 : index
    %c0_266 = arith.constant 0 : index
    %377 = vector.load %arg20[%c3_264, %c0_265, %c0_266] : memref<4x64x128xbf16, #tpu.memory_space<vmem>>, vector<1x64x128xbf16>
    %378 = vector.shape_cast %377 : vector<1x64x128xbf16> to vector<64x128xbf16>
    %cst_267 = arith.constant dense<0.000000e+00> : vector<16x128xf32>
    %379 = tpu.matmul %376, %378, %cst_267 {dimension_numbers = #tpu.dot_dimension_numbers<[1], [0], [0], [1], [0, 0, 1, 1], [], []>} : vector<16x64xbf16>, vector<64x128xbf16>, vector<16x128xf32> -> vector<16x128xf32>
    %380 = arith.addf %375, %379 : vector<16x128xf32>
    %c0_268 = arith.constant 0 : index
    %c0_269 = arith.constant 0 : index
    %381 = vector.load %arg21[%c0_268, %c0_269] : memref<1x128xf32, #tpu.memory_space<vmem>>, vector<1x128xf32>
    %382 = vector.broadcast %381 : vector<1x128xf32> to vector<16x128xf32>
    %383 = arith.addf %380, %382 : vector<16x128xf32>
    %384 = arith.truncf %383 : vector<16x128xf32> to vector<16x128xbf16>
    %c16_270 = arith.constant 16 : index
    %c0_271 = arith.constant 0 : index
    %385 = vector.load %arg36[%c16_270, %c0_271] : memref<40x128xbf16, #tpu.memory_space<vmem>>, vector<16x128xbf16>
    tpu.vector_store %arg36[%c16_270, %c0_271], %384 {strides = array<i32>} : memref<40x128xbf16, #tpu.memory_space<vmem>>, vector<16x128xbf16>,
    %c15_272 = arith.constant 15 : index
    %c0_273 = arith.constant 0 : index
    %386 = vector.load %arg36[%c15_272, %c0_273] : memref<40x128xbf16, #tpu.memory_space<vmem>>, vector<16x128xbf16>
    %c17_274 = arith.constant 17 : index
    %c0_275 = arith.constant 0 : index
    %387 = vector.load %arg36[%c17_274, %c0_275] : memref<40x128xbf16, #tpu.memory_space<vmem>>, vector<16x128xbf16>
    %388 = tpu.iota {dimensions = array<i32: 0>} : vector<16x1xi32>
    %c7_i32_276 = arith.constant 7 : i32
    %389 = vector.broadcast %c7_i32_276 : i32 to vector<16x1xi32>
    %390 = arith.andi %388, %389 : vector<16x1xi32>
    %c0_i32_277 = arith.constant 0 : i32
    %391 = vector.broadcast %c0_i32_277 : i32 to vector<16x1xi32>
    %392 = arith.cmpi eq, %390, %391 : vector<16x1xi32>
    %cst_278 = arith.constant 0.000000e+00 : bf16
    %393 = vector.shape_cast %392 : vector<16x1xi1> to vector<16x1xi1>
    %394 = vector.broadcast %393 : vector<16x1xi1> to vector<16x128xi1>
    %395 = vector.broadcast %cst_278 : bf16 to vector<16x128xbf16>
    %396 = arith.select %394, %395, %386 : vector<16x128xi1>, vector<16x128xbf16>
    %c7_i32_279 = arith.constant 7 : i32
    %397 = vector.broadcast %c7_i32_279 : i32 to vector<16x1xi32>
    %398 = arith.cmpi eq, %390, %397 : vector<16x1xi32>
    %cst_280 = arith.constant 0.000000e+00 : bf16
    %399 = vector.shape_cast %398 : vector<16x1xi1> to vector<16x1xi1>
    %400 = vector.broadcast %399 : vector<16x1xi1> to vector<16x128xi1>
    %401 = vector.broadcast %cst_280 : bf16 to vector<16x128xbf16>
    %402 = arith.select %400, %401, %387 : vector<16x128xi1>, vector<16x128xbf16>
    %c0_281 = arith.constant 0 : index
    %c0_282 = arith.constant 0 : index
    %c0_283 = arith.constant 0 : index
    %403 = vector.load %arg22[%c0_281, %c0_282, %c0_283] : memref<3x128x128xbf16, #tpu.memory_space<vmem>>, vector<1x128x128xbf16>
    %404 = vector.shape_cast %403 : vector<1x128x128xbf16> to vector<128x128xbf16>
    %cst_284 = arith.constant dense<0.000000e+00> : vector<16x128xf32>
    %405 = tpu.matmul %396, %404, %cst_284 {dimension_numbers = #tpu.dot_dimension_numbers<[1], [0], [0], [1], [0, 0, 1, 1], [], []>} : vector<16x128xbf16>, vector<128x128xbf16>, vector<16x128xf32> -> vector<16x128xf32>
    %c1_285 = arith.constant 1 : index
    %c0_286 = arith.constant 0 : index
    %c0_287 = arith.constant 0 : index
    %406 = vector.load %arg22[%c1_285, %c0_286, %c0_287] : memref<3x128x128xbf16, #tpu.memory_space<vmem>>, vector<1x128x128xbf16>
    %407 = vector.shape_cast %406 : vector<1x128x128xbf16> to vector<128x128xbf16>
    %cst_288 = arith.constant dense<0.000000e+00> : vector<16x128xf32>
    %408 = tpu.matmul %384, %407, %cst_288 {dimension_numbers = #tpu.dot_dimension_numbers<[1], [0], [0], [1], [0, 0, 1, 1], [], []>} : vector<16x128xbf16>, vector<128x128xbf16>, vector<16x128xf32> -> vector<16x128xf32>
    %409 = arith.addf %405, %408 : vector<16x128xf32>
    %c2_289 = arith.constant 2 : index
    %c0_290 = arith.constant 0 : index
    %c0_291 = arith.constant 0 : index
    %410 = vector.load %arg22[%c2_289, %c0_290, %c0_291] : memref<3x128x128xbf16, #tpu.memory_space<vmem>>, vector<1x128x128xbf16>
    %411 = vector.shape_cast %410 : vector<1x128x128xbf16> to vector<128x128xbf16>
    %cst_292 = arith.constant dense<0.000000e+00> : vector<16x128xf32>
    %412 = tpu.matmul %402, %411, %cst_292 {dimension_numbers = #tpu.dot_dimension_numbers<[1], [0], [0], [1], [0, 0, 1, 1], [], []>} : vector<16x128xbf16>, vector<128x128xbf16>, vector<16x128xf32> -> vector<16x128xf32>
    %413 = arith.addf %409, %412 : vector<16x128xf32>
    %c0_293 = arith.constant 0 : index
    %c0_294 = arith.constant 0 : index
    %414 = vector.load %arg23[%c0_293, %c0_294] : memref<1x128xf32, #tpu.memory_space<vmem>>, vector<1x128xf32>
    %415 = vector.broadcast %414 : vector<1x128xf32> to vector<16x128xf32>
    %416 = arith.addf %413, %415 : vector<16x128xf32>
    %cst_295 = arith.constant 0.000000e+00 : f32
    %417 = vector.broadcast %cst_295 : f32 to vector<16x128xf32>
    %418 = arith.maximumf %416, %417 : vector<16x128xf32>
    %419 = arith.truncf %418 : vector<16x128xf32> to vector<16x128xbf16>
    %c16_296 = arith.constant 16 : index
    %c0_297 = arith.constant 0 : index
    %420 = vector.load %arg36[%c16_296, %c0_297] : memref<40x128xbf16, #tpu.memory_space<vmem>>, vector<16x128xbf16>
    tpu.vector_store %arg36[%c16_296, %c0_297], %419 {strides = array<i32>} : memref<40x128xbf16, #tpu.memory_space<vmem>>, vector<16x128xbf16>,
    %c15_298 = arith.constant 15 : index
    %c0_299 = arith.constant 0 : index
    %421 = vector.load %arg36[%c15_298, %c0_299] : memref<40x128xbf16, #tpu.memory_space<vmem>>, vector<16x128xbf16>
    %c17_300 = arith.constant 17 : index
    %c0_301 = arith.constant 0 : index
    %422 = vector.load %arg36[%c17_300, %c0_301] : memref<40x128xbf16, #tpu.memory_space<vmem>>, vector<16x128xbf16>
    %423 = tpu.iota {dimensions = array<i32: 0>} : vector<16x1xi32>
    %c7_i32_302 = arith.constant 7 : i32
    %424 = vector.broadcast %c7_i32_302 : i32 to vector<16x1xi32>
    %425 = arith.andi %423, %424 : vector<16x1xi32>
    %c0_i32_303 = arith.constant 0 : i32
    %426 = vector.broadcast %c0_i32_303 : i32 to vector<16x1xi32>
    %427 = arith.cmpi eq, %425, %426 : vector<16x1xi32>
    %cst_304 = arith.constant 0.000000e+00 : bf16
    %428 = vector.shape_cast %427 : vector<16x1xi1> to vector<16x1xi1>
    %429 = vector.broadcast %428 : vector<16x1xi1> to vector<16x128xi1>
    %430 = vector.broadcast %cst_304 : bf16 to vector<16x128xbf16>
    %431 = arith.select %429, %430, %421 : vector<16x128xi1>, vector<16x128xbf16>
    %c7_i32_305 = arith.constant 7 : i32
    %432 = vector.broadcast %c7_i32_305 : i32 to vector<16x1xi32>
    %433 = arith.cmpi eq, %425, %432 : vector<16x1xi32>
    %cst_306 = arith.constant 0.000000e+00 : bf16
    %434 = vector.shape_cast %433 : vector<16x1xi1> to vector<16x1xi1>
    %435 = vector.broadcast %434 : vector<16x1xi1> to vector<16x128xi1>
    %436 = vector.broadcast %cst_306 : bf16 to vector<16x128xbf16>
    %437 = arith.select %435, %436, %422 : vector<16x128xi1>, vector<16x128xbf16>
    %c0_307 = arith.constant 0 : index
    %c0_308 = arith.constant 0 : index
    %c0_309 = arith.constant 0 : index
    %438 = vector.load %arg24[%c0_307, %c0_308, %c0_309] : memref<3x128x128xbf16, #tpu.memory_space<vmem>>, vector<1x128x128xbf16>
    %439 = vector.shape_cast %438 : vector<1x128x128xbf16> to vector<128x128xbf16>
    %cst_310 = arith.constant dense<0.000000e+00> : vector<16x128xf32>
    %440 = tpu.matmul %431, %439, %cst_310 {dimension_numbers = #tpu.dot_dimension_numbers<[1], [0], [0], [1], [0, 0, 1, 1], [], []>} : vector<16x128xbf16>, vector<128x128xbf16>, vector<16x128xf32> -> vector<16x128xf32>
    %c1_311 = arith.constant 1 : index
    %c0_312 = arith.constant 0 : index
    %c0_313 = arith.constant 0 : index
    %441 = vector.load %arg24[%c1_311, %c0_312, %c0_313] : memref<3x128x128xbf16, #tpu.memory_space<vmem>>, vector<1x128x128xbf16>
    %442 = vector.shape_cast %441 : vector<1x128x128xbf16> to vector<128x128xbf16>
    %cst_314 = arith.constant dense<0.000000e+00> : vector<16x128xf32>
    %443 = tpu.matmul %419, %442, %cst_314 {dimension_numbers = #tpu.dot_dimension_numbers<[1], [0], [0], [1], [0, 0, 1, 1], [], []>} : vector<16x128xbf16>, vector<128x128xbf16>, vector<16x128xf32> -> vector<16x128xf32>
    %444 = arith.addf %440, %443 : vector<16x128xf32>
    %c2_315 = arith.constant 2 : index
    %c0_316 = arith.constant 0 : index
    %c0_317 = arith.constant 0 : index
    %445 = vector.load %arg24[%c2_315, %c0_316, %c0_317] : memref<3x128x128xbf16, #tpu.memory_space<vmem>>, vector<1x128x128xbf16>
    %446 = vector.shape_cast %445 : vector<1x128x128xbf16> to vector<128x128xbf16>
    %cst_318 = arith.constant dense<0.000000e+00> : vector<16x128xf32>
    %447 = tpu.matmul %437, %446, %cst_318 {dimension_numbers = #tpu.dot_dimension_numbers<[1], [0], [0], [1], [0, 0, 1, 1], [], []>} : vector<16x128xbf16>, vector<128x128xbf16>, vector<16x128xf32> -> vector<16x128xf32>
    %448 = arith.addf %444, %447 : vector<16x128xf32>
    %c0_319 = arith.constant 0 : index
    %c0_320 = arith.constant 0 : index
    %449 = vector.load %arg25[%c0_319, %c0_320] : memref<1x128xf32, #tpu.memory_space<vmem>>, vector<1x128xf32>
    %450 = vector.broadcast %449 : vector<1x128xf32> to vector<16x128xf32>
    %451 = arith.addf %448, %450 : vector<16x128xf32>
    %452 = arith.extf %384 : vector<16x128xbf16> to vector<16x128xf32>
    %453 = arith.addf %451, %452 : vector<16x128xf32>
    %cst_321 = arith.constant 0.000000e+00 : f32
    %454 = vector.broadcast %cst_321 : f32 to vector<16x128xf32>
    %455 = arith.maximumf %453, %454 : vector<16x128xf32>
    %456 = arith.truncf %455 : vector<16x128xf32> to vector<16x128xbf16>
    %c0_322 = arith.constant 0 : index
    %c0_323 = arith.constant 0 : index
    %c0_324 = arith.constant 0 : index
    %457 = vector.load %arg26[%c0_322, %c0_323, %c0_324] : memref<1x128x128xbf16, #tpu.memory_space<vmem>>, vector<1x128x128xbf16>
    %458 = vector.shape_cast %457 : vector<1x128x128xbf16> to vector<128x128xbf16>
    %cst_325 = arith.constant dense<0.000000e+00> : vector<16x128xf32>
    %459 = tpu.matmul %456, %458, %cst_325 {dimension_numbers = #tpu.dot_dimension_numbers<[1], [0], [0], [1], [0, 0, 1, 1], [], []>} : vector<16x128xbf16>, vector<128x128xbf16>, vector<16x128xf32> -> vector<16x128xf32>
    %c0_326 = arith.constant 0 : index
    %c0_327 = arith.constant 0 : index
    %460 = vector.load %arg27[%c0_326, %c0_327] : memref<1x128xf32, #tpu.memory_space<vmem>>, vector<1x128xf32>
    %461 = vector.broadcast %460 : vector<1x128xf32> to vector<16x128xf32>
    %462 = arith.addf %459, %461 : vector<16x128xf32>
    %c0_328 = arith.constant 0 : index
    %c0_329 = arith.constant 0 : index
    %c0_330 = arith.constant 0 : index
    %463 = vector.load %arg28[%c0_328, %c0_329, %c0_330] : memref<1x16x128xf32, #tpu.memory_space<vmem>>, vector<1x16x128xf32>
    %464 = vector.shape_cast %463 : vector<1x16x128xf32> to vector<16x128xf32>
    %465 = vector.shape_cast %462 : vector<16x128xf32> to vector<1x16x128xf32>
    tpu.vector_store %arg28[%c0_328, %c0_329, %c0_330], %465 {strides = array<i32>} : memref<1x16x128xf32, #tpu.memory_space<vmem>>, vector<1x16x128xf32>,
    return
  }
  func.func @transform_0(%arg0: i32) -> (i32, i32, i32) {
    %c0_i32 = arith.constant 0 : i32
    %c0_i32_0 = arith.constant 0 : i32
    %c0_i32_1 = arith.constant 0 : i32
    return %arg0, %c0_i32, %c0_i32_0 : i32, i32, i32
  }
  func.func @transform_1(%arg0: i32) -> (i32, i32, i32) {
    %c0_i32 = arith.constant 0 : i32
    %c0_i32_0 = arith.constant 0 : i32
    %c0_i32_1 = arith.constant 0 : i32
    %c0_i32_2 = arith.constant 0 : i32
    return %c0_i32, %c0_i32_0, %c0_i32_1 : i32, i32, i32
  }
  func.func @transform_2(%arg0: i32) -> (i32, i32) {
    %c0_i32 = arith.constant 0 : i32
    %c0_i32_0 = arith.constant 0 : i32
    %c0_i32_1 = arith.constant 0 : i32
    return %c0_i32, %c0_i32_0 : i32, i32
  }
  func.func @transform_3(%arg0: i32) -> (i32, i32, i32) {
    %c0_i32 = arith.constant 0 : i32
    %c0_i32_0 = arith.constant 0 : i32
    %c0_i32_1 = arith.constant 0 : i32
    %c0_i32_2 = arith.constant 0 : i32
    return %c0_i32, %c0_i32_0, %c0_i32_1 : i32, i32, i32
  }
  func.func @transform_4(%arg0: i32) -> (i32, i32) {
    %c0_i32 = arith.constant 0 : i32
    %c0_i32_0 = arith.constant 0 : i32
    %c0_i32_1 = arith.constant 0 : i32
    return %c0_i32, %c0_i32_0 : i32, i32
  }
  func.func @transform_5(%arg0: i32) -> (i32, i32, i32) {
    %c0_i32 = arith.constant 0 : i32
    %c0_i32_0 = arith.constant 0 : i32
    %c0_i32_1 = arith.constant 0 : i32
    %c0_i32_2 = arith.constant 0 : i32
    return %c0_i32, %c0_i32_0, %c0_i32_1 : i32, i32, i32
  }
  func.func @transform_6(%arg0: i32) -> (i32, i32) {
    %c0_i32 = arith.constant 0 : i32
    %c0_i32_0 = arith.constant 0 : i32
    %c0_i32_1 = arith.constant 0 : i32
    return %c0_i32, %c0_i32_0 : i32, i32
  }
  func.func @transform_7(%arg0: i32) -> (i32, i32, i32) {
    %c0_i32 = arith.constant 0 : i32
    %c0_i32_0 = arith.constant 0 : i32
    %c0_i32_1 = arith.constant 0 : i32
    %c0_i32_2 = arith.constant 0 : i32
    return %c0_i32, %c0_i32_0, %c0_i32_1 : i32, i32, i32
  }
  func.func @transform_8(%arg0: i32) -> (i32, i32) {
    %c0_i32 = arith.constant 0 : i32
    %c0_i32_0 = arith.constant 0 : i32
    %c0_i32_1 = arith.constant 0 : i32
    return %c0_i32, %c0_i32_0 : i32, i32
  }
  func.func @transform_9(%arg0: i32) -> (i32, i32, i32) {
    %c0_i32 = arith.constant 0 : i32
    %c0_i32_0 = arith.constant 0 : i32
    %c0_i32_1 = arith.constant 0 : i32
    %c0_i32_2 = arith.constant 0 : i32
    return %c0_i32, %c0_i32_0, %c0_i32_1 : i32, i32, i32
  }
  func.func @transform_10(%arg0: i32) -> (i32, i32) {
    %c0_i32 = arith.constant 0 : i32
    %c0_i32_0 = arith.constant 0 : i32
    %c0_i32_1 = arith.constant 0 : i32
    return %c0_i32, %c0_i32_0 : i32, i32
  }
  func.func @transform_11(%arg0: i32) -> (i32, i32, i32) {
    %c0_i32 = arith.constant 0 : i32
    %c0_i32_0 = arith.constant 0 : i32
    %c0_i32_1 = arith.constant 0 : i32
    %c0_i32_2 = arith.constant 0 : i32
    return %c0_i32, %c0_i32_0, %c0_i32_1 : i32, i32, i32
  }
  func.func @transform_12(%arg0: i32) -> (i32, i32) {
    %c0_i32 = arith.constant 0 : i32
    %c0_i32_0 = arith.constant 0 : i32
    %c0_i32_1 = arith.constant 0 : i32
    return %c0_i32, %c0_i32_0 : i32, i32
  }
  func.func @transform_13(%arg0: i32) -> (i32, i32, i32) {
    %c0_i32 = arith.constant 0 : i32
    %c0_i32_0 = arith.constant 0 : i32
    %c0_i32_1 = arith.constant 0 : i32
    %c0_i32_2 = arith.constant 0 : i32
    return %c0_i32, %c0_i32_0, %c0_i32_1 : i32, i32, i32
  }
  func.func @transform_14(%arg0: i32) -> (i32, i32) {
    %c0_i32 = arith.constant 0 : i32
    %c0_i32_0 = arith.constant 0 : i32
    %c0_i32_1 = arith.constant 0 : i32
    return %c0_i32, %c0_i32_0 : i32, i32
  }
  func.func @transform_15(%arg0: i32) -> (i32, i32, i32) {
    %c0_i32 = arith.constant 0 : i32
    %c0_i32_0 = arith.constant 0 : i32
    %c0_i32_1 = arith.constant 0 : i32
    %c0_i32_2 = arith.constant 0 : i32
    return %c0_i32, %c0_i32_0, %c0_i32_1 : i32, i32, i32
  }
  func.func @transform_16(%arg0: i32) -> (i32, i32) {
    %c0_i32 = arith.constant 0 : i32
    %c0_i32_0 = arith.constant 0 : i32
    %c0_i32_1 = arith.constant 0 : i32
    return %c0_i32, %c0_i32_0 : i32, i32
  }
  func.func @transform_17(%arg0: i32) -> (i32, i32, i32) {
    %c0_i32 = arith.constant 0 : i32
    %c0_i32_0 = arith.constant 0 : i32
    %c0_i32_1 = arith.constant 0 : i32
    %c0_i32_2 = arith.constant 0 : i32
    return %c0_i32, %c0_i32_0, %c0_i32_1 : i32, i32, i32
  }
  func.func @transform_18(%arg0: i32) -> (i32, i32) {
    %c0_i32 = arith.constant 0 : i32
    %c0_i32_0 = arith.constant 0 : i32
    %c0_i32_1 = arith.constant 0 : i32
    return %c0_i32, %c0_i32_0 : i32, i32
  }
  func.func @transform_19(%arg0: i32) -> (i32, i32, i32) {
    %c0_i32 = arith.constant 0 : i32
    %c0_i32_0 = arith.constant 0 : i32
    %c0_i32_1 = arith.constant 0 : i32
    %c0_i32_2 = arith.constant 0 : i32
    return %c0_i32, %c0_i32_0, %c0_i32_1 : i32, i32, i32
  }
  func.func @transform_20(%arg0: i32) -> (i32, i32) {
    %c0_i32 = arith.constant 0 : i32
    %c0_i32_0 = arith.constant 0 : i32
    %c0_i32_1 = arith.constant 0 : i32
    return %c0_i32, %c0_i32_0 : i32, i32
  }
  func.func @transform_21(%arg0: i32) -> (i32, i32, i32) {
    %c0_i32 = arith.constant 0 : i32
    %c0_i32_0 = arith.constant 0 : i32
    %c0_i32_1 = arith.constant 0 : i32
    %c0_i32_2 = arith.constant 0 : i32
    return %c0_i32, %c0_i32_0, %c0_i32_1 : i32, i32, i32
  }
  func.func @transform_22(%arg0: i32) -> (i32, i32) {
    %c0_i32 = arith.constant 0 : i32
    %c0_i32_0 = arith.constant 0 : i32
    %c0_i32_1 = arith.constant 0 : i32
    return %c0_i32, %c0_i32_0 : i32, i32
  }
  func.func @transform_23(%arg0: i32) -> (i32, i32, i32) {
    %c0_i32 = arith.constant 0 : i32
    %c0_i32_0 = arith.constant 0 : i32
    %c0_i32_1 = arith.constant 0 : i32
    %c0_i32_2 = arith.constant 0 : i32
    return %c0_i32, %c0_i32_0, %c0_i32_1 : i32, i32, i32
  }
  func.func @transform_24(%arg0: i32) -> (i32, i32) {
    %c0_i32 = arith.constant 0 : i32
    %c0_i32_0 = arith.constant 0 : i32
    %c0_i32_1 = arith.constant 0 : i32
    return %c0_i32, %c0_i32_0 : i32, i32
  }
  func.func @transform_25(%arg0: i32) -> (i32, i32, i32) {
    %c0_i32 = arith.constant 0 : i32
    %c0_i32_0 = arith.constant 0 : i32
    %c0_i32_1 = arith.constant 0 : i32
    %c0_i32_2 = arith.constant 0 : i32
    return %c0_i32, %c0_i32_0, %c0_i32_1 : i32, i32, i32
  }
  func.func @transform_26(%arg0: i32) -> (i32, i32) {
    %c0_i32 = arith.constant 0 : i32
    %c0_i32_0 = arith.constant 0 : i32
    %c0_i32_1 = arith.constant 0 : i32
    return %c0_i32, %c0_i32_0 : i32, i32
  }
  func.func @transform_27(%arg0: i32) -> (i32, i32, i32) {
    %c0_i32 = arith.constant 0 : i32
    %c0_i32_0 = arith.constant 0 : i32
    %c0_i32_1 = arith.constant 0 : i32
    return %arg0, %c0_i32, %c0_i32_0 : i32, i32, i32
  }
}

</mosaic_0001>

<bundles_post_ra>
// kernel: encoder_forward.1
= control target key start
LH: loop header
LB: loop body
LE: loop exit
PB: predicated region body
PF: predicated region fallthrough
CT: control target
= control target key end

     0   :  { %s12120_s0 = inlined_call_operand.vmem [shape: bf16[2,128,8], index: 0, kind: input, shape index: {}]   ;;  %s12121_s1 = inlined_call_operand.vmem [shape: bf16[3,8,16], index: 1, kind: input, shape index: {}]   ;;  %s12122_s2 = inlined_call_operand.vmem [shape: f32[1,16], index: 2, kind: input, shape index: {}]   ;;  %s12123_s3 = inlined_call_operand.vmem [shape: bf16[3,16,16], index: 3, kind: input, shape index: {}]   ;;  %s12124_s4 = inlined_call_operand.vmem [shape: f32[1,16], index: 4, kind: input, shape index: {}]   ;;  %s12125_s5 = inlined_call_operand.vmem [shape: bf16[3,16,16], index: 5, kind: input, shape index: {}]   ;;  %s12126_s6 = inlined_call_operand.vmem [shape: f32[1,16], index: 6, kind: input, shape index: {}]   ;;  %s12127_s7 = inlined_call_operand.vmem [shape: bf16[4,16,32], index: 7, kind: input, shape index: {}]   ;;  %s12128_s8 = inlined_call_operand.vmem [shape: f32[1,32], index: 8, kind: input, shape index: {}]   ;;  %s12129_s9 = inlined_call_operand.vmem [shape: bf16[3,32,32], index: 9, kind: input, shape index: {}]   ;;  %s12130_s10 = inlined_call_operand.vmem [shape: f32[1,32], index: 10, kind: input, shape index: {}]   ;;  %s12131_s11 = inlined_call_operand.vmem [shape: bf16[3,32,32], index: 11, kind: input, shape index: {}]   ;;  %s12132_s12 = inlined_call_operand.vmem [shape: f32[1,32], index: 12, kind: input, shape index: {}]   ;;  %s12133_s13 = inlined_call_operand.vmem [shape: bf16[4,32,64], index: 13, kind: input, shape index: {}]   ;;  %s12134_s14 = inlined_call_operand.vmem [shape: f32[1,64], index: 14, kind: input, shape index: {}]   ;;  %s12135_s15 = inlined_call_operand.vmem [shape: bf16[3,64,64], index: 15, kind: input, shape index: {}]   ;;  %s12136_s16 = inlined_call_operand.vmem [shape: f32[1,64], index: 16, kind: input, shape index: {}]   ;;  %s12137_s17 = inlined_call_operand.vmem [shape: bf16[3,64,64], index: 17, kind: input, shape index: {}]   ;;  %s12138_s18 = inlined_call_operand.vmem [shape: f32[1,64], index: 18, kind: input, shape index: {}]   ;;  %s12139_s19 = inlined_call_operand.vmem [shape: bf16[4,64,128], index: 19, kind: input, shape index: {}]   ;;  %s12140_s20 = inlined_call_operand.vmem [shape: f32[1,128], index: 20, kind: input, shape index: {}]   ;;  %s12141_s21 = inlined_call_operand.vmem [shape: bf16[3,128,128], index: 21, kind: input, shape index: {}]   ;;  %s12142_s22 = inlined_call_operand.vmem [shape: f32[1,128], index: 22, kind: input, shape index: {}]   ;;  %s12143_s23 = inlined_call_operand.vmem [shape: bf16[3,128,128], index: 23, kind: input, shape index: {}]   ;;  %s12144_s24 = inlined_call_operand.vmem [shape: f32[1,128], index: 24, kind: input, shape index: {}]   ;;  %s12145_s25 = inlined_call_operand.vmem [shape: bf16[1,128,128], index: 25, kind: input, shape index: {}]   ;;  %s12146_s26 = inlined_call_operand.vmem [shape: f32[1,128], index: 26, kind: input, shape index: {}]   ;;  %s12147_s27 = inlined_call_operand.vmem [shape: f32[2,16,128], index: 27, kind: output, shape index: {}]  }
   0x1   :  { %12173 = sst [smem:[#allocation14_spill]] %s12120_s0 }
   0x2   :  { %12174 = sst [smem:[#allocation15_spill]] %s12121_s1 }
   0x3   :  { %12175 = sst [smem:[#allocation16_spill]] %s12122_s2 }
   0x4   :  { %12176 = sst [smem:[#allocation17_spill]] %s12123_s3 }
   0x5   :  { %12177 = sst [smem:[#allocation18_spill]] %s12124_s4 }
   0x6   :  { %12178 = sst [smem:[#allocation19_spill]] %s12125_s5 }
   0x7   :  { %12179 = sst [smem:[#allocation20_spill]] %s12126_s6 }
   0x8   :  { %12180 = sst [smem:[#allocation21_spill]] %s12127_s7  ;;  %s10102_s7 = smov 0  }
   0x9   :  { %12181 = sst [smem:[#allocation22_spill]] %s12128_s8 }
   0xa   :  { %12182 = sst [smem:[#allocation23_spill]] %s12129_s9 }
   0xb   :  { %12183 = sst [smem:[#allocation24_spill]] %s12130_s10 }
   0xc   :  { %12184 = sst [smem:[#allocation25_spill]] %s12131_s11 }
   0xd LB: > { %s8284_s4 = sadd.s32 4294967295, %s9957_s7   ;;  %p8288_p0 = scmp.ge.s32.totalorder %s9957_s7, 1  ;;  %s9957_s7 = sphi %s10102_s7, %s37_s7  }
   0xe   : > { %p737_p1 = scmp.lt.s32.totalorder %s9957_s7, 3 }
  0x10   : > { %p738_p2 = pnand %p8288_p0, %p737_p1 }
  0x12   : > { %741 = sbr.rel (%p738_p2) target bundleno = 3108 (0xc24), region = 128 }
  0x17   : > { %s12185_s9 = sld [smem:[#allocation15_spill]]  ;;  %vm1510_vm0 = vcmask 1043456   ;;  %p809_p3 = scmp.lt.s32.totalorder %s8284_s4, 1  ;;  %v873_v1 = vlaneseq  ;;  %vm838_vm1 = vcmask 60416   ;;  %vm1485_vm2 = vcmask 64512  }
  0x18   : > { %vm12154_vm3 = vmmov 0   ;;  %v12158_v7 = vmov 0   ;;  %vm986_vm5 = vsmask.f32 3328  ;;  %vm987_vm6 = vsmask.f32 7440 }
  0x19   : > { %s12296_s4 = smov (!%p809_p3, %s8284_s4), 1  ;;  %vm955_vm4 = vmpackc.low %vm12154_vm3, %vm12154_vm3  ;;  %v10135_v9 = vshrl.u32 %v873_v1, 7  ;;  %vm1262_vm7 = vsmask.f32 256  ;;  %s12186_s11 = sld [smem:[#allocation14_spill]]  ;;  %v12188_v39 = vmov 0 }
  0x1a   : > { %v10133_v8 = vsel %vm955_vm4, 65537, %v12158_v7  ;;  %s8896_s29 = sshll.u32 %s12296_s4, 6  ;;  %vm1263_vm8 = vsmask.f32 4368  ;;  %vm10209_vm12 = vmor %vm986_vm5, %vm987_vm6  ;;  %v12192_v48 = vmov 0  ;;  %s12213_s30 = sld [smem:[#allocation17_spill]] }
  0x1b   : > { %v999_v10 = vshll.u32 %v10133_v8, 16  ;;  %v1003_v11 = vshrl.u32 %v10133_v8, 16  ;;  %v890_v12 = vand.u32 63, %v10135_v9  ;;  %v10147_v13 = vadd.s32 56, %v10135_v9  ;;  %vm10191_vm9 = vmor %vm1262_vm7, %vm1263_vm8  ;;  %s12214_s6 = sld [smem:[#allocation16_spill]] }
  0x1c   : > { %v12189_v39 = vsel %vm10191_vm9, 4294967295, %v12188_v39  ;;  %v10203_v44 = vadd.s32 64, %v10135_v9  ;;  %v12193_v48 = vsel %vm10209_vm12, 4294967295, %v12192_v48  ;;  %vm1904_vm15 = vsmask.f32 7424  ;;  %s12217_s3 = sld [smem:[#allocation19_spill]] }
  0x1d   : > { %v8293_v0 = vld [vmem:[%s12185_s9 + $0x4] sm:$0xf]  ;;  %v1442_v3 = vld [vmem:[%s12185_s9] sm:$0xf]  ;;  %v8327_v4 = vld [vmem:[%s12185_s9 + $0x8] sm:$0xf] }
  0x1e   : > { %9810 = vmatprep.subr.msk.bf16.mxu0 %vm1510_vm0, %v8293_v0  ;;  %9811 = vmatprep.subr.msk.bf16.mxu1 %vm1510_vm0, %v8293_v0  ;;  %v1512_v2 = vsel %vm1510_vm0, %v8293_v0, 0  ;;  %v10125_v5 = vsel %vm1510_vm0, %v1442_v3, 0  ;;  %v1998_v6 = vsel %vm1510_vm0, %v8327_v4, 0  ;;  %v10184_v36 = vrot.slane %v999_v10, 5  ;;  %12190 = vst [vmem:[#allocation11_spill] sm:$0xff] %v12189_v39  ;;  %12194 = vst [vmem:[#allocation13_spill] sm:$0xff] %v12193_v48 }
  0x1f   : > { %9243 = vmatpush3.bf16.msra.mxu0 %v1512_v2  ;;  %9809 = vmatpush3.bf16.msra.mxu1 %v1512_v2  ;;  %s10142_s2 = scalar_lea.vmem %s12186_s11, %s8896_s29  ;;  %v1005_v37 = vrot.slane %v1003_v11, 4  ;;  %v1268_v38 = vrot.slane %v1003_v11, 7  ;;  %vm906_vm10 = vcmp.eq.s32.totalorder %v890_v12, 0  ;;  %v897_v40 = vand.u32 63, %v10147_v13  ;;  %v855_v11 = vld [vmem:[#allocation2 + $0x4] sm:$0x8] }
  0x20   : > { %9812 = vmatprep.subr.msk.bf16.mxu1 %vm1510_vm0, %v1442_v3  ;;  %9813 = vmatprep.subr.msk.bf16.mxu0 %vm1510_vm0, %v8327_v4  ;;  %v822_v14 = vld [vmem:[%s10142_s2] sm:$0xf]  ;;  %v823_v15 = vld [vmem:[%s10142_s2 + $0x4] sm:$0xf]  ;;  %v824_v19 = vld [vmem:[%s10142_s2 + $0x8] sm:$0xf] }
  0x21   : > { %v830_v16 = vld [vmem:[%s10142_s2 + $0x20] sm:$0xf]  ;;  %839 = vst.msk [vmem:[#allocation2 + $0x8] sm:$0xf] %vm838_vm1, %v822_v14  ;;  %840 = vst.msk [vmem:[#allocation2 + $0xc] sm:$0xf] %vm838_vm1, %v823_v15  ;;  %v8294_v17 = vcombine.low %v822_v14, %v823_v15  ;;  %v1006_v41 = vor.u32 %v1005_v37, %v10184_v36  ;;  %v10198_v42 = vor.u32 %v1268_v38, %v999_v10 }
  0x22   : > { %v831_v18 = vld [vmem:[%s10142_s2 + $0x24] sm:$0xf]  ;;  %847 = vst.msk [vmem:[#allocation2 + $0x28] sm:$0xf] %vm838_vm1, %v830_v16  ;;  %v825_v20 = vld [vmem:[%s10142_s2 + $0xc] sm:$0xf]  ;;  %vm954_vm11 = vmpackc.low %vm906_vm10, %vm906_vm10 }
  0x23   : > { %848 = vst.msk [vmem:[#allocation2 + $0x2c] sm:$0xf] %vm838_vm1, %v831_v18  ;;  %v8298_v21 = vcombine.low %v830_v16, %v831_v18  ;;  %841 = vst.msk [vmem:[#allocation2 + $0x10] sm:$0xf] %vm838_vm1, %v824_v19  ;;  %v8295_v22 = vcombine.low %v824_v19, %v825_v20  ;;  %v832_v23 = vld [vmem:[%s10142_s2 + $0x28] sm:$0xf]  ;;  %9244 = vmatprep.mubr.msk.bf16.mxu0 %vm1485_vm2, %v8294_v17 }
  0x24   : > { %842 = vst.msk [vmem:[#allocation2 + $0x14] sm:$0xf] %vm838_vm1, %v825_v20  ;;  %v833_v24 = vld [vmem:[%s10142_s2 + $0x2c] sm:$0xf]  ;;  %v826_v25 = vld [vmem:[%s10142_s2 + $0x10] sm:$0xf] }
  0x25   : > { %849 = vst.msk [vmem:[#allocation2 + $0x30] sm:$0xf] %vm838_vm1, %v832_v23  ;;  %850 = vst.msk [vmem:[#allocation2 + $0x34] sm:$0xf] %vm838_vm1, %v833_v24  ;;  %v8299_v26 = vcombine.low %v832_v23, %v833_v24  ;;  %v827_v27 = vld [vmem:[%s10142_s2 + $0x14] sm:$0xf]  ;;  %9252 = vmatprep.mubr.msk.bf16.mxu1 %vm1485_vm2, %v8298_v21  ;;  %9245 = vmatmul.mubr.msk.bf16.vlgmr.msra.gmra.mxu0 %vm1485_vm2, %v8295_v22 }
  0x26   : > { %843 = vst.msk [vmem:[#allocation2 + $0x18] sm:$0xf] %vm838_vm1, %v826_v25  ;;  %v834_v28 = vld [vmem:[%s10142_s2 + $0x30] sm:$0xf]  ;;  %v835_v29 = vld [vmem:[%s10142_s2 + $0x34] sm:$0xf]  ;;  %v8296_v30 = vcombine.low %v826_v25, %v827_v27  ;;  %9279 = vmatpush3.bf16.msra.mxu0 %v1998_v6 }
  0x27   : > { %844 = vst.msk [vmem:[#allocation2 + $0x1c] sm:$0xf] %vm838_vm1, %v827_v27  ;;  %851 = vst.msk [vmem:[#allocation2 + $0x38] sm:$0xf] %vm838_vm1, %v834_v28  ;;  %v8300_v31 = vcombine.low %v834_v28, %v835_v29  ;;  %v828_v32 = vld [vmem:[%s10142_s2 + $0x18] sm:$0xf]  ;;  %9253 = vmatmul.mubr.msk.bf16.vlgmr.msra.gmra.mxu1 %vm1485_vm2, %v8299_v26 }
  0x28   : > { %852 = vst.msk [vmem:[#allocation2 + $0x3c] sm:$0xf] %vm838_vm1, %v835_v29  ;;  %v829_v33 = vld [vmem:[%s10142_s2 + $0x1c] sm:$0xf]  ;;  %v836_v34 = vld [vmem:[%s10142_s2 + $0x38] sm:$0xf]  ;;  %9261 = vmatpush3.bf16.msra.mxu1 %v10125_v5  ;;  %9248 = vmatprep.mubr.msk.bf16.mxu0 %vm1485_vm2, %v8296_v30 }
  0x29   : > { %845 = vst.msk [vmem:[#allocation2 + $0x20] sm:$0xf] %vm838_vm1, %v828_v32  ;;  %846 = vst.msk [vmem:[#allocation2 + $0x24] sm:$0xf] %vm838_vm1, %v829_v33  ;;  %v837_v35 = vld [vmem:[%s10142_s2 + $0x3c] sm:$0xf]  ;;  %9256 = vmatprep.mubr.msk.bf16.mxu1 %vm1485_vm2, %v8300_v31  ;;  %v8297_v45 = vcombine.low %v828_v32, %v829_v33 }
  0x2a   : > { %853 = vst.msk [vmem:[#allocation2 + $0x40] sm:$0xf] %vm838_vm1, %v836_v34  ;;  %12187 = vst [vmem:[#allocation10_spill] sm:$0xff] %v10184_v36  ;;  %v10200_v43 = vrot.slane %v1268_v38, 4  ;;  %v10205_v46 = vld [vmem:[#allocation2 + $0x8] sm:$0xf]  ;;  %v8301_v51 = vcombine.low %v836_v34, %v837_v35 }
  0x2b   : > { %854 = vst.msk [vmem:[#allocation2 + $0x44] sm:$0xf] %vm838_vm1, %v837_v35  ;;  %v857_v47 = vld [vmem:[#allocation2 + $0xc] sm:$0xf]  ;;  %v970_v49 = vsel %vm954_vm11, 65537, %v12158_v7  ;;  %vm10214_vm13 = vcmp.eq.s32.totalorder %v897_v40, 63 }
  0x2c   : > { %12191 = vst [vmem:[#allocation12_spill] sm:$0xff] %v10200_v43  ;;  %v858_v52 = vld [vmem:[#allocation2 + $0x10] sm:$0xf]  ;;  %v859_v53 = vld [vmem:[#allocation2 + $0x14] sm:$0xf]  ;;  %v10218_v54 = vrot.slane %v1006_v41, 4  ;;  %v1280_v55 = vsel %vm10191_vm9, %v10200_v43, %v10198_v42  ;;  %vm1237_vm6 = vmpackc.low %vm10214_vm13, %vm10214_vm13 }
  0x2d   : > { %vm12160_vm14 = vcmp.ne.s16.totalorder %v10198_v42, 0  ;;  %v860_v56 = vld [vmem:[#allocation2 + $0x18] sm:$0xf]  ;;  %vm10225_vm0 = vcmp.ne.s16.totalorder %v1280_v55, 0  ;;  %v990_v59 = vshll.u32 %v970_v49, 16  ;;  %v993_v60 = vshrl.u32 %v970_v49, 16  ;;  %9249 = vmatmul.mubr.msk.bf16.gmra.mxu0 %vm1485_vm2, %v8297_v45 }
  0x2e   : > { %v1425_v58 = vsel %vm12160_vm14, 0, %v10205_v46  ;;  %v1012_v61 = vsel %vm10209_vm12, %v10218_v54, %v10184_v36  ;;  %v1426_v62 = vsel %vm10225_vm0, 0, %v857_v47  ;;  %v1427_v63 = vsel %vm10225_vm0, 0, %v858_v52  ;;  %v10242_v1 = vld [vmem:[#allocation2 + $0x1c] sm:$0xf]  ;;  %s12218_s1 = sld [smem:[#allocation18_spill]] }
  0x2f   : > { %v1428_v0 = vsel %vm10225_vm0, 0, %v859_v53  ;;  %vm10245_vm1 = vcmp.ne.s16.totalorder %v1012_v61, 0  ;;  %v8328_v3 = vcombine.low %v1425_v58, %v1426_v62  ;;  %v1429_v5 = vsel %vm10225_vm0, 0, %v860_v56  ;;  %9257 = vmatmul.mubr.msk.bf16.gmra.mxu1 %vm1485_vm2, %v8301_v51  ;;  %v10273_v40 = vld [vmem:[#allocation2 + $0x2c] sm:$0xf]  ;;  %s12222_s2 = sld [smem:[#allocation21_spill]] }
  0x30   : > { %v8329_v4 = vcombine.low %v1427_v63, %v1428_v0  ;;  %v1169_v6 = vsel %vm10245_vm1, 0, %v859_v53  ;;  %v1170_v8 = vsel %vm10245_vm1, 0, %v860_v56  ;;  %v1430_v10 = vsel %vm10225_vm0, 0, %v10242_v1  ;;  %v862_v33 = vld [vmem:[#allocation2 + $0x20] sm:$0xf]  ;;  %s12232_s28 = sld [smem:[#allocation23_spill]] }
  0x31   : > { %v10259_v12 = vrot.slane %v990_v59, 5  ;;  %v8312_v14 = vcombine.low %v1169_v6, %v1170_v8  ;;  %v1906_v15 = vshrl.u32 %v8328_v3, 16  ;;  %v1908_v16 = vshll.u32 %v8328_v3, 16  ;;  %v10295_v6 = vld [vmem:[#allocation2 + $0x28] sm:$0xf]  ;;  %s12234_s0 = sld [smem:[#allocation22_spill]] }
  0x32   : > { %v1913_v17 = vshll.u32 %v8329_v4, 16  ;;  %v1917_v18 = vshrl.u32 %v8329_v4, 16  ;;  %v8330_v19 = vcombine.low %v1429_v5, %v1430_v10  ;;  %v995_v20 = vrot.slane %v993_v60, 4  ;;  %v10286_v60 = vld [vmem:[#allocation2 + $0x30] sm:$0xf]  ;;  %s12253_s11 = sld [smem:[#allocation25_spill]] }
  0x33   : > { %vm1148_vm4 = vcmp.ne.s16.totalorder %v10259_v12, 0  ;;  %vm1654_vm5 = vsmask.f32 4352  ;;  %v1910_v21 = vrot.slane %v1908_v16, 1  ;;  %v1167_v24 = vsel %vm10245_vm1, 0, %v857_v47  ;;  %s12254_s5 = sld [smem:[#allocation24_spill]] }
  0x34   : > { %v1915_v22 = vrot.slane %v1913_v17, 1  ;;  %v1165_v23 = vsel %vm1148_vm4, 0, %v855_v11  ;;  %v1921_v25 = vshll.u32 %v8330_v19, 16  ;;  %v996_v26 = vor.u32 %v995_v20, %v10259_v12  ;;  %v10293_v5 = vld [vmem:[#allocation2 + $0x24] sm:$0xf] }
  0x35   : > { %v1168_v27 = vsel %vm10245_vm1, 0, %v858_v52  ;;  %v1673_v28 = vshrl.u32 %v8312_v14, 16  ;;  %v1911_v29 = vor.u32 %v1910_v21, %v1906_v15  ;;  %v1676_v32 = vshll.u32 %v8312_v14, 16  ;;  %v10306_v20 = vld [vmem:[#allocation2 + $0x34] sm:$0xf] }
  0x36   : > { %v1919_v30 = vor.u32 %v1917_v18, %v1915_v22  ;;  %v8311_v31 = vcombine.low %v1167_v24, %v1168_v27  ;;  %v1923_v34 = vrot.slane %v1921_v25, 1  ;;  %v997_v35 = vrot.slane %v996_v26, 4  ;;  %v10308_v21 = vld [vmem:[#allocation2 + $0x38] sm:$0xf] }
  0x37   : > { %v1675_v37 = vrot.slane %v1673_v28, 3  ;;  %v1253_v38 = vsel %vm1237_vm6, 65537, %v12158_v7  ;;  %v1916_v41 = vsel %vm1904_vm15, %v1911_v29, %v1915_v22  ;;  %v1678_v49 = vrot.slane %v1676_v32, 4 }
  0x38   : > { %v1664_v45 = vshrl.u32 %v8311_v31, 16  ;;  %v1667_v47 = vshll.u32 %v8311_v31, 16  ;;  %9280 = vmatprep.mubr.msk.bf16.mxu0 %vm1485_vm2, %v1916_v41  ;;  %v1924_v50 = vsel %vm1904_vm15, %v1919_v30, %v1923_v34  ;;  %v1002_v51 = vsel %vm10209_vm12, %v997_v35, %v10184_v36 }
  0x39   : > { %v1328_v52 = vshrl.u32 %v1253_v38, 16  ;;  %v1331_v53 = vshll.u32 %v1253_v38, 16  ;;  %9281 = vmatmul.mubr.msk.bf16.vlgmr.msra.gmra.mxu0 %vm1485_vm2, %v1924_v50  ;;  %vm10282_vm7 = vcmp.ne.s16.totalorder %v1002_v51, 0  ;;  %v1679_v59 = vor.u32 %v1678_v49, %v1675_v37 }
  0x3a   : > { %v1666_v56 = vrot.slane %v1664_v45, 3  ;;  %v1669_v58 = vrot.slane %v1667_v47, 4  ;;  %v1166_v61 = vsel %vm10282_vm7, 0, %v10205_v46  ;;  %v1431_v63 = vsel %vm10225_vm0, 0, %v862_v33 }
  0x3b   : > { %v1330_v62 = vrot.slane %v1328_v52, 7  ;;  %v1925_v0 = vshrl.u32 %v8330_v19, 16  ;;  %v8310_v3 = vcombine.low %v1165_v23, %v1166_v61  ;;  %v1434_v8 = vsel %vm10225_vm0, 0, %v10273_v40 }
  0x3c   : > { %v1670_v4 = vor.u32 %v1669_v58, %v1666_v56  ;;  %v1171_v10 = vsel %vm10245_vm1, 0, %v10242_v1  ;;  %v1172_v15 = vsel %vm10245_vm1, 0, %v862_v33  ;;  %v898_v23 = vand.u32 63, %v10203_v44 }
  0x3d   : > { %v1333_v46 = vor.u32 %v1331_v53, %v1330_v62  ;;  %v1927_v11 = vor.u32 %v1925_v0, %v1923_v34  ;;  %v1335_v14 = vrot.slane %v1330_v62, 4  ;;  %v1656_v16 = vshrl.u32 %v8310_v3, 16  ;;  %v10333_v34 = vld [vmem:[#allocation2 + $0x3c] sm:$0xf] }
  0x3e   : > { %v1659_v17 = vshll.u32 %v8310_v3, 16  ;;  %v1680_v18 = vsel %vm1654_vm5, %v1670_v4, %v1679_v59  ;;  %v8313_v19 = vcombine.low %v1171_v10, %v1172_v15  ;;  %v1435_v24 = vsel %vm10225_vm0, 0, %v10286_v60 }
  0x3f   : > { %v1334_v22 = vsel %vm10191_vm9, %v10200_v43, %v1333_v46  ;;  %v10316_v1 = vsel %vm10191_vm9, %v1335_v14, %v10198_v42  ;;  %v1658_v25 = vrot.slane %v1656_v16, 3  ;;  %vm914_vm11 = vcmp.eq.s32.totalorder %v898_v23, 0 }
  0x40   : > { %v1661_v26 = vrot.slane %v1659_v17, 4  ;;  %vm10322_vm8 = vcmp.ne.s16.totalorder %v1334_v22, 0  ;;  %vm12156_vm10 = vcmp.ne.s16.totalorder %v10316_v1, 0  ;;  %v1682_v29 = vshrl.u32 %v8313_v19, 16  ;;  %vm962_vm13 = vmpackc.low %vm914_vm11, %vm914_vm11 }
  0x41   : > { %v1432_v28 = vsel %vm10322_vm8, 0, %v10293_v5  ;;  %v1433_v44 = vsel %vm12156_vm10, 0, %v10295_v6  ;;  %v1685_v30 = vshll.u32 %v8313_v19, 16  ;;  %v1436_v38 = vsel %vm10225_vm0, 0, %v10306_v20 }
  0x42   : > { %v1662_v31 = vor.u32 %v1661_v26, %v1658_v25  ;;  %v8331_v32 = vcombine.low %v1431_v63, %v1432_v28  ;;  %v8332_v33 = vcombine.low %v1433_v44, %v1434_v8  ;;  %v1684_v35 = vrot.slane %v1682_v29, 3 }
  0x43   : > { %v1687_v37 = vrot.slane %v1685_v30, 4  ;;  %v1437_v41 = vsel %vm10225_vm0, 0, %v10308_v21  ;;  %v978_v52 = vsel %vm962_vm13, 65537, %v12158_v7  ;;  %v8333_v53 = vcombine.low %v1435_v24, %v1436_v38 }
  0x44   : > { %v1671_v45 = vsel %vm1654_vm5, %v1662_v31, %v1670_v4  ;;  %v1929_v47 = vshll.u32 %v8331_v32, 16  ;;  %v1933_v49 = vshrl.u32 %v8331_v32, 16  ;;  %v1937_v50 = vshll.u32 %v8332_v33, 16 }
  0x45   : > { %9262 = vmatprep.mubr.msk.bf16.mxu1 %vm1485_vm2, %v1671_v45  ;;  %v10343_v51 = vor.u32 %v1687_v37, %v1684_v35  ;;  %v1941_v56 = vshrl.u32 %v8332_v33, 16  ;;  %v1069_v62 = vshll.u32 %v978_v52, 16  ;;  %v1073_v63 = vshrl.u32 %v978_v52, 16 }
  0x46   : > { %9263 = vmatmul.mubr.msk.bf16.vlgmr.msra.gmra.mxu1 %vm1485_vm2, %v1680_v18  ;;  %v1931_v58 = vrot.slane %v1929_v47, 1  ;;  %v1939_v61 = vrot.slane %v1937_v50, 1  ;;  %v1945_v3 = vshll.u32 %v8333_v53, 16  ;;  %v1438_v4 = vsel %vm10225_vm0, 0, %v10333_v34 }
  0x47   : > { %v1689_v0 = vsel %vm1654_vm5, %v1679_v59, %v10343_v51  ;;  %v1949_v8 = vshrl.u32 %v8333_v53, 16  ;;  %v1071_v14 = vrot.slane %v1069_v62, 5  ;;  %v1075_v15 = vrot.slane %v1073_v63, 4 }
  0x48   : > { %v1932_v10 = vsel %vm1904_vm15, %v1927_v11, %v1931_v58  ;;  %v1935_v46 = vor.u32 %v1933_v49, %v1931_v58  ;;  %9266 = vmatprep.mubr.msk.bf16.mxu1 %vm1485_vm2, %v1689_v0  ;;  %v1943_v16 = vor.u32 %v1941_v56, %v1939_v61  ;;  %v1947_v17 = vrot.slane %v1945_v3, 1  ;;  %v871_v58 = vld [vmem:[#allocation2 + $0x44] sm:$0xf] }
  0x49   : > { %9284 = vmatprep.mubr.msk.bf16.mxu0 %vm1485_vm2, %v1932_v10  ;;  %v10355_v18 = vcombine.low %v1437_v41, %v1438_v4  ;;  %v1175_v59 = vsel %vm10245_vm1, 0, %v10273_v40  ;;  %v1072_v11 = vsel %vm10209_vm12, %v10218_v54, %v1071_v14  ;;  %v1076_v22 = vor.u32 %v1075_v15, %v1071_v14  ;;  %v870_v41 = vld [vmem:[#allocation2 + $0x40] sm:$0xf] }
  0x4a   : > { %v1940_v19 = vsel %vm1904_vm15, %v1935_v46, %v1939_v61  ;;  %v1176_v23 = vsel %vm10245_vm1, 0, %v10286_v60  ;;  %vm10368_vm6 = vcmp.ne.s16.totalorder %v1072_v11, 0  ;;  %v1948_v25 = vsel %vm1904_vm15, %v1943_v16, %v1947_v17 }
  0x4b   : > { %9285 = vmatmul.mubr.msk.bf16.gmra.mxu0 %vm1485_vm2, %v1940_v19  ;;  %v1951_v40 = vor.u32 %v1949_v8, %v1947_v17  ;;  %v1953_v26 = vshll.u32 %v10355_v18, 16  ;;  %v1077_v28 = vrot.slane %v1076_v22, 4  ;;  %v8315_v44 = vcombine.low %v1175_v59, %v1176_v23  ;;  %v872_v17 = vld [vmem:[#allocation2 + $0x48] sm:$0x1] }
  0x4c   : > { %9288 = vmatprep.mubr.msk.bf16.mxu0 %vm1485_vm2, %v1948_v25  ;;  %v1177_v29 = vsel %vm10245_vm1, 0, %v10306_v20  ;;  %v1173_v60 = vsel %vm10368_vm6, 0, %v10293_v5  ;;  %v1178_v31 = vsel %vm10245_vm1, 0, %v10308_v21  ;;  %v889_v32 = vadd.s32 120, %v10135_v9 }
  0x4d   : > { %v10381_v30 = vrot.slane %v1953_v26, 1  ;;  %v1082_v33 = vsel %vm10209_vm12, %v1077_v28, %v10184_v36  ;;  %v1700_v35 = vshrl.u32 %v8315_v44, 16  ;;  %v1703_v37 = vshll.u32 %v8315_v44, 16 }
  0x4e   : > { %v8316_v38 = vcombine.low %v1177_v29, %v1178_v31  ;;  %vm10390_vm11 = vcmp.ne.s16.totalorder %v1082_v33, 0  ;;  %v905_v45 = vand.u32 63, %v889_v32  ;;  %v1179_v61 = vsel %vm10245_vm1, 0, %v10333_v34 }
  0x4f   : > { %v1956_v5 = vsel %vm1904_vm15, %v1951_v40, %v10381_v30  ;;  %v1174_v21 = vsel %vm10390_vm11, 0, %v10295_v6  ;;  %v1702_v47 = vrot.slane %v1700_v35, 3  ;;  %v1705_v49 = vrot.slane %v1703_v37, 4 }
  0x50   : > { %v1709_v50 = vshrl.u32 %v8316_v38, 16  ;;  %v8314_v52 = vcombine.low %v1173_v60, %v1174_v21  ;;  %v1712_v53 = vshll.u32 %v8316_v38, 16  ;;  %vm1197_vm13 = vcmp.eq.s32.totalorder %v905_v45, 63 }
  0x51   : > { %v1706_v56 = vor.u32 %v1705_v49, %v1702_v47  ;;  %vm1245_vm3 = vmpackc.low %vm1197_vm13, %vm1197_vm13  ;;  %v1180_v62 = vsel %vm10245_vm1, 0, %v870_v41  ;;  %vm12157_vm10 = vcmp.ne.s16.totalorder %v10218_v54, 0  ;;  %v1439_v29 = vsel %vm10225_vm0, 0, %v870_v41 }
  0x52   : > { %v1691_v63 = vshrl.u32 %v8314_v52, 16  ;;  %v1694_v0 = vshll.u32 %v8314_v52, 16  ;;  %v1711_v6 = vrot.slane %v1709_v50, 3  ;;  %v1261_v3 = vsel %vm1245_vm3, 65537, %v12158_v7 }
  0x53   : > { %9289 = vmatmul.mubr.msk.bf16.gmra.mxu0 %vm1485_vm2, %v1956_v5  ;;  %v1400_v4 = vshrl.u32 %v1261_v3, 16  ;;  %v1403_v8 = vshll.u32 %v1261_v3, 16  ;;  %v8317_v10 = vcombine.low %v1179_v61, %v1180_v62  ;;  %v1714_v15 = vrot.slane %v1712_v53, 4 }
  0x54   : > { %v1693_v46 = vrot.slane %v1691_v63, 3  ;;  %v1696_v14 = vrot.slane %v1694_v0, 4  ;;  %v1181_v34 = vsel %vm12157_vm10, 0, %v871_v58  ;;  %v1957_v37 = vshrl.u32 %v10355_v18, 16 }
  0x55   : > { %v1402_v16 = vrot.slane %v1400_v4, 7  ;;  %v1718_v59 = vshrl.u32 %v8317_v10, 16  ;;  %v1721_v19 = vshll.u32 %v8317_v10, 16  ;;  %v8318_v11 = vcombine.low %v1181_v34, %v1181_v34  ;;  %v9825_v4 = vld [vmem:[%s12213_s30 + $0x8] sm:$0xff]   ;;  %v10452_v10 = vld [vmem:[%s12213_s30 + $0x10] sm:$0xff]  }
  0x56   : > { %v1697_v22 = vor.u32 %v1696_v14, %v1693_v46  ;;  %v1959_v53 = vor.u32 %v1957_v37, %v10381_v30  ;;  %9296 = vmatprep.subr.bf16.mxu1 %v9825_v4  ;;  %vm2296_vm10 = vcmask 130048  }
  0x57   : > { %v1405_v23 = vor.u32 %v1403_v8, %v1402_v16  ;;  %v1407_v25 = vrot.slane %v1402_v16, 4  ;;  %v1720_v40 = vrot.slane %v1718_v59, 3  ;;  %v1723_v26 = vrot.slane %v1721_v19, 4  ;;  %9297 = vmatpush3.bf16.msra.mxu1 %v9825_v4  ;;  %v9826_v8 = vld [vmem:[%s12213_s30] sm:$0xff]  }
  0x58   : > { %v1698_v28 = vsel %vm1654_vm5, %v10343_v51, %v1697_v22  ;;  %v1707_v44 = vsel %vm1654_vm5, %v1697_v22, %v1706_v56  ;;  %v1727_v60 = vshrl.u32 %v8318_v11, 16  ;;  %v1730_v33 = vshll.u32 %v8318_v11, 16  ;;  %9314 = vmatprep.subr.bf16.mxu0 %v9826_v8  ;;  %9332 = vmatprep.subr.bf16.mxu1 %v10452_v10 }
  0x59   : > { %9267 = vmatmul.mubr.msk.bf16.gmra.mxu1 %vm1485_vm2, %v1698_v28  ;;  %v1406_v31 = vsel %vm10191_vm9, %v10200_v43, %v1405_v23  ;;  %vm10418_vm3 = vcmp.ne.s16.totalorder %v1407_v25, 0  ;;  %v1715_v51 = vor.u32 %v1714_v15, %v1711_v6  ;;  %v1724_v45 = vor.u32 %v1723_v26, %v1720_v40  ;;  %9315 = vmatpush3.bf16.msra.mxu0 %v9826_v8 }
  0x5a   : > { %9270 = vmatprep.mubr.msk.bf16.mxu1 %vm1485_vm2, %v1707_v44  ;;  %vm10423_vm13 = vcmp.ne.s16.totalorder %v1406_v31, 0  ;;  %v1441_v38 = vsel %vm10418_vm3, 0, %v872_v17  ;;  %v1729_v21 = vrot.slane %v1727_v60, 3  ;;  %v1732_v50 = vrot.slane %v1730_v33, 4 }
  0x5b   : > { %v1440_v5 = vsel %vm10423_vm13, 0, %v871_v58  ;;  %v8336_v41 = vcombine.low %v1441_v38, %v1441_v38  ;;  %v1716_v52 = vsel %vm1654_vm5, %v1706_v56, %v1715_v51  ;;  %v1725_v18 = vsel %vm1654_vm5, %v1715_v51, %v1724_v45  ;;  %v10480_v38 = vld [vmem:[%s12214_s6] ss:$0 sm:$0xff] }
  0x5c   : > { %v8335_v47 = vcombine.low %v1439_v29, %v1440_v5  ;;  %v1733_v3 = vor.u32 %v1732_v50, %v1729_v21 }
  0x5d   : > { %v1969_v49 = vshll.u32 %v8336_v41, 16 }
  0x5e   : > { %v1961_v61 = vshll.u32 %v8335_v47, 16  ;;  %v1965_v62 = vshrl.u32 %v8335_v47, 16  ;;  %v1734_v30 = vsel %vm1654_vm5, %v1724_v45, %v1733_v3 }
  0x5f   : > { %v1971_v0 = vrot.slane %v1969_v49, 1 }
  0x60   : > { %v1963_v63 = vrot.slane %v1961_v61, 1 }
  0x61   : > { %9271 = vmatmul.mubr.msk.bf16.gmra.mxu1 %vm1485_vm2, %v1716_v52 }
  0x62   : > { %v1964_v58 = vsel %vm1904_vm15, %v1959_v53, %v1963_v63  ;;  %v1967_v6 = vor.u32 %v1965_v62, %v1963_v63  ;;  %9274 = vmatprep.mubr.msk.bf16.mxu1 %vm1485_vm2, %v1725_v18 }
  0x63   : > { %9292 = vmatprep.mubr.msk.bf16.mxu0 %vm1485_vm2, %v1964_v58 }
  0x64   : > { %v1972_v56 = vsel %vm1904_vm15, %v1967_v6, %v1971_v0 }
  0x65   : > { %9293 = vmatmul.mubr.msk.bf16.gmra.mxu0 %vm1485_vm2, %v1972_v56 }
  0x69   : > { %9275 = vmatmul.mubr.msk.bf16.gmra.mxu1 %vm1485_vm2, %v1734_v30  ;;  %vm2216_vm2 = vcmask 125952  }
  0xe5   : > { %v9246_v46 = vpop.f32.mrf.mxu0 }
  0xe7   : > { %v10455_v14 = vpop.f32.mrf.mxu1  ;;  %v1548_v15 = vpop.f32.mrf.mxu0 }
  0xe9   : > { %v10457_v34 = vpop.f32.mrf.mxu1  ;;  %v9247_v16 = vpop.f32.mrf.mxu0 }
  0xeb   : > { %v1551_v17 = vpop.f32.mrf.mxu0  ;;  %v10459_v59 = vpop.f32.mrf.mxu1 }
  0xed   : > { %v9250_v19 = vpop.f32.mrf.mxu0  ;;  %v10463_v22 = vpop.f32.mrf.mxu1 }
  0xef   : > { %v10461_v11 = vpop.f32.mrf.mxu0  ;;  %v10469_v40 = vpop.f32.mrf.mxu1 }
  0xf1   : > { %v10465_v23 = vpop.f32.mrf.mxu0  ;;  %v10471_v28 = vpop.f32.mrf.mxu1 }
  0xf3   : > { %v10467_v25 = vpop.f32.mrf.mxu0  ;;  %v10473_v29 = vpop.f32.mrf.mxu1 }
  0xf5   : > { %v10475_v31 = vpop.f32.mrf.mxu1 }
  0xf9   : > { %v9282_v26 = vpop.f32.mrf.mxu0 }
  0xfb   : > { %v2034_v44 = vpop.f32.mrf.mxu0 }
  0xfd   : > { %v9283_v60 = vpop.f32.mrf.mxu0 }
  0xff   : > { %v2037_v37 = vpop.f32.mrf.mxu0 }
 0x106   : > { %v9264_v33 = vpop.f32.mrf.mxu1 }
 0x107   : > { %v1805_v51 = vadd.f32 %v9264_v33, %v9246_v46  ;;  %v2233_v33 = vld [vmem:[#allocation3 + $0x4] sm:$0x8] }
 0x108   : > { %v1796_v5 = vpop.f32.mrf.mxu1 }
 0x109   : > { %v2099_v41 = vadd.f32 %v9282_v26, %v1805_v51  ;;  %v1797_v45 = vadd.f32 %v1796_v5, %v1548_v15 }
 0x10a   : > { %v9265_v21 = vpop.f32.mrf.mxu1 }
 0x10b   : > { %v2122_v47 = vadd.f32 %v10480_v38, %v2099_v41  ;;  %v2097_v49 = vadd.f32 %v2034_v44, %v1797_v45  ;;  %v1808_v50 = vadd.f32 %v9265_v21, %v9247_v16  ;;  %v9286_v52 = vpop.f32.mrf.mxu0 }
 0x10c   : > { %v1799_v53 = vpop.f32.mrf.mxu1 }
 0x10d   : > { %v2138_v61 = vmax.f32 %v2122_v47, 0.0  ;;  %v2120_v62 = vadd.f32 %v10480_v38, %v2097_v49  ;;  %v2100_v18 = vadd.f32 %v9283_v60, %v1808_v50  ;;  %v1800_v63 = vadd.f32 %v1799_v53, %v1551_v17  ;;  %v2050_v0 = vpop.f32.mrf.mxu0 }
 0x10f   : > { %v8900_v58 = vpack.c.bf16 %v2138_v61, %v2138_v61  ;;  %v2136_v6 = vmax.f32 %v2120_v62, 0.0  ;;  %v2123_v3 = vadd.f32 %v10480_v38, %v2100_v18  ;;  %v2098_v56 = vadd.f32 %v2037_v37, %v1800_v63  ;;  %v9287_v30 = vpop.f32.mrf.mxu0 }
 0x110   : > { %v2251_v37 = vsel %vm1148_vm4, 0, %v2233_v33 }
 0x111   : > { %2219 = vst.msk [vmem:[#allocation3 + $0x10] sm:$0xf] %vm2216_vm2, %v8900_v58  ;;  %v8898_v4 = vpack.c.bf16 %v2136_v6, %v2136_v6  ;;  %v2139_v8 = vmax.f32 %v2123_v3, 0.0  ;;  %v2121_v46 = vadd.f32 %v10480_v38, %v2098_v56  ;;  %v2053_v26 = vpop.f32.mrf.mxu0 }
 0x113   : > { %2217 = vst.msk [vmem:[#allocation3 + $0x8] sm:$0xf] %vm2216_vm2, %v8898_v4  ;;  %v8901_v15 = vpack.c.bf16 %v2139_v8, %v2139_v8  ;;  %v2137_v16 = vmax.f32 %v2121_v46, 0.0  ;;  %v10491_v60 = vpack.c.bf16 %v2139_v8, %v2138_v61  ;;  %v9290_v51 = vpop.f32.mrf.mxu0 }
 0x115   : > { %2220 = vst.msk [vmem:[#allocation3 + $0x14] sm:$0xf] %vm2216_vm2, %v8901_v15  ;;  %v8899_v17 = vpack.c.bf16 %v2137_v16, %v2137_v16  ;;  %v10489_v44 = vpack.c.bf16 %v2137_v16, %v2136_v6  ;;  %v2066_v47 = vpop.f32.mrf.mxu0 }
 0x117   : > { %2218 = vst.msk [vmem:[#allocation3 + $0xc] sm:$0xf] %vm2216_vm2, %v8899_v17  ;;  %9298 = vmatprep.mubr.msk.bf16.mxu1 %vm2296_vm10, %v10489_v44  ;;  %v9291_v8 = vpop.f32.mrf.mxu0 }
 0x118   : > { %9299 = vmatmul.mubr.msk.bf16.vlgmr.msra.gmra.mxu1 %vm2296_vm10, %v10491_v60  ;;  %v2236_v45 = vld [vmem:[#allocation3 + $0x10] sm:$0xf] }
 0x119   : > { %9333 = vmatpush3.bf16.msra.mxu1 %v10452_v10  ;;  %v9268_v5 = vpop.f32.mrf.mxu1  ;;  %v2254_v18 = vsel %vm10245_vm1, 0, %v2236_v45  ;;  %v2270_v56 = vsel %vm10225_vm0, 0, %v2236_v45 }
 0x11a   : > { %v2234_v41 = vld [vmem:[#allocation3 + $0x8] sm:$0xf]  ;;  %v1821_v21 = vadd.f32 %v9268_v5, %v9250_v19 }
 0x11b   : > { %v2252_v49 = vsel %vm10282_vm7, 0, %v2234_v41  ;;  %v1812_v50 = vpop.f32.mrf.mxu1  ;;  %v2268_v19 = vsel %vm12160_vm14, 0, %v2234_v41  ;;  %vm12215_vm14 = vcmp.ne.s16.totalorder %v10316_v1, 0 }
 0x11c   : > { %v8373_v53 = vcombine.low %v2251_v37, %v2252_v49  ;;  %v2103_v61 = vadd.f32 %v9286_v52, %v1821_v21  ;;  %v1813_v62 = vadd.f32 %v1812_v50, %v10461_v11  ;;  %v10506_v10 = vld [vmem:[#allocation3 + $0x14] sm:$0xf] }
 0x11d   : > { %v9269_v63 = vpop.f32.mrf.mxu1  ;;  %v2271_v37 = vsel %vm10225_vm0, 0, %v10506_v10 }
 0x11e   : > { %v2235_v58 = vld [vmem:[#allocation3 + $0xc] sm:$0xf]  ;;  %v2462_v6 = vshrl.u32 %v8373_v53, 16  ;;  %v2465_v3 = vshll.u32 %v8373_v53, 16  ;;  %v2126_v4 = vadd.f32 %v10480_v38, %v2103_v61  ;;  %v2101_v52 = vadd.f32 %v2050_v0, %v1813_v62 }
 0x11f   : > { %v1824_v11 = vadd.f32 %v9269_v63, %v10465_v23  ;;  %v2253_v46 = vsel %vm10245_vm1, 0, %v2235_v58  ;;  %v1815_v15 = vpop.f32.mrf.mxu1  ;;  %v2269_v33 = vsel %vm10225_vm0, 0, %v2235_v58  ;;  %v2069_v58 = vpop.f32.mrf.mxu0 }
 0x120   : > { %v8374_v16 = vcombine.low %v2253_v46, %v2254_v18  ;;  %v2464_v17 = vrot.slane %v2462_v6, 3  ;;  %v2142_v5 = vmax.f32 %v2126_v4, 0.0  ;;  %v2124_v41 = vadd.f32 %v10480_v38, %v2101_v52 }
 0x121   : > { %v2104_v0 = vadd.f32 %v9287_v30, %v1824_v11  ;;  %v1816_v23 = vadd.f32 %v1815_v15, %v10467_v25  ;;  %v9272_v45 = vpop.f32.mrf.mxu1  ;;  %v2467_v21 = vrot.slane %v2465_v3, 4  ;;  %v8393_v53 = vcombine.low %v2268_v19, %v2269_v33 }
 0x122   : > { %v2470_v49 = vshrl.u32 %v8374_v16, 16  ;;  %v2473_v50 = vshll.u32 %v8374_v16, 16  ;;  %v8904_v61 = vpack.c.bf16 %v2142_v5, %v2142_v5  ;;  %v2140_v62 = vmax.f32 %v2124_v41, 0.0 }
 0x123   : > { %v2127_v18 = vadd.f32 %v10480_v38, %v2104_v0  ;;  %v2102_v63 = vadd.f32 %v2053_v26, %v1816_v23  ;;  %v1837_v6 = vadd.f32 %v9272_v45, %v10455_v14  ;;  %v1828_v46 = vpop.f32.mrf.mxu1  ;;  %v10525_v52 = vcombine.low %v2270_v56, %v2271_v37 }
 0x124   : > { %v2472_v4 = vrot.slane %v2470_v49, 3  ;;  %v2475_v7 = vrot.slane %v2473_v50, 4  ;;  %2223 = vst.msk [vmem:[#allocation3 + $0x20] sm:$0xf] %vm2216_vm2, %v8904_v61  ;;  %v8902_v25 = vpack.c.bf16 %v2140_v62, %v2140_v62  ;;  %v1829_v19 = vadd.f32 %v1828_v46, %v10457_v34 }
 0x125   : > { %v2143_v30 = vmax.f32 %v2127_v18, 0.0  ;;  %v2125_v3 = vadd.f32 %v10480_v38, %v2102_v63  ;;  %v2107_v11 = vadd.f32 %v9290_v51, %v1837_v6  ;;  %v9273_v15 = vpop.f32.mrf.mxu1  ;;  %v2468_v16 = vor.u32 %v2467_v21, %v2464_v17  ;;  %v9294_v37 = vpop.f32.mrf.mxu0 }
 0x126   : > { %v10530_v26 = vor.u32 %v2475_v7, %v2472_v4  ;;  %v2717_v33 = vshll.u32 %v8393_v53, 16  ;;  %2221 = vst.msk [vmem:[#allocation3 + $0x18] sm:$0xf] %vm2216_vm2, %v8902_v25  ;;  %v2105_v56 = vadd.f32 %v2066_v47, %v1829_v19  ;;  %v2715_v0 = vshrl.u32 %v8393_v53, 16 }
 0x127   : > { %v8905_v14 = vpack.c.bf16 %v2143_v30, %v2143_v30  ;;  %v2141_v41 = vmax.f32 %v2125_v3, 0.0  ;;  %v2130_v23 = vadd.f32 %v10480_v38, %v2107_v11  ;;  %v1840_v45 = vadd.f32 %v9273_v15, %v10459_v59  ;;  %v1831_v49 = vpop.f32.mrf.mxu1  ;;  %v2082_v46 = vpop.f32.mrf.mxu0 }
 0x128   : > { %v2477_v34 = vsel %vm1654_vm5, %v2468_v16, %v10530_v26  ;;  %v2719_v51 = vrot.slane %v2717_v33, 1  ;;  %v2128_v17 = vadd.f32 %v10480_v38, %v2105_v56  ;;  %v1832_v21 = vadd.f32 %v1831_v49, %v10463_v22 }
 0x129   : > { %2224 = vst.msk [vmem:[#allocation3 + $0x24] sm:$0xf] %vm2216_vm2, %v8905_v14  ;;  %v8903_v7 = vpack.c.bf16 %v2141_v41, %v2141_v41  ;;  %v10540_v50 = vpack.c.bf16 %v2141_v41, %v2140_v62  ;;  %9316 = vmatprep.mubr.msk.bf16.mxu0 %vm2296_vm10, %v2477_v34  ;;  %v10543_v47 = vpack.c.bf16 %v2143_v30, %v2142_v5  ;;  %v2146_v53 = vmax.f32 %v2130_v23, 0.0  ;;  %v9276_v61 = vpop.f32.mrf.mxu1  ;;  %v9295_v56 = vpop.f32.mrf.mxu0 }
 0x12a   : > { %v2108_v59 = vadd.f32 %v9291_v8, %v1840_v45  ;;  %v2722_v18 = vshll.u32 %v10525_v52, 16  ;;  %v2144_v63 = vmax.f32 %v2128_v17, 0.0  ;;  %v2106_v6 = vadd.f32 %v2069_v58, %v1832_v21 }
 0x12b   : > { %2222 = vst.msk [vmem:[#allocation3 + $0x1c] sm:$0xf] %vm2216_vm2, %v8903_v7  ;;  %v1853_v4 = vadd.f32 %v9276_v61, %v10469_v40  ;;  %9302 = vmatprep.mubr.msk.bf16.mxu1 %vm2296_vm10, %v10540_v50  ;;  %v8908_v22 = vpack.c.bf16 %v2146_v53, %v2146_v53  ;;  %v1844_v5 = vpop.f32.mrf.mxu1  ;;  %v2255_v8 = vsel %vm10245_vm1, 0, %v10506_v10  ;;  %v10556_v25 = vld [vmem:[#allocation3 + $0x20] sm:$0xf]  ;;  %v10558_v58 = vor.u32 %v2719_v51, %v2715_v0 }
 0x12c   : > { %v2131_v62 = vadd.f32 %v10480_v38, %v2108_v59  ;;  %9303 = vmatmul.mubr.msk.bf16.gmra.mxu1 %vm2296_vm10, %v10543_v47  ;;  %v8906_v30 = vpack.c.bf16 %v2144_v63, %v2144_v63  ;;  %v2129_v40 = vadd.f32 %v10480_v38, %v2106_v6  ;;  %v1845_v19 = vadd.f32 %v1844_v5, %v10471_v28 }
 0x12d   : > { %v2111_v3 = vadd.f32 %v9294_v37, %v1853_v4  ;;  %2227 = vst.msk [vmem:[#allocation3 + $0x30] sm:$0xf] %vm2216_vm2, %v8908_v22  ;;  %v9277_v15 = vpop.f32.mrf.mxu1  ;;  %v2238_v16 = vld [vmem:[#allocation3 + $0x18] sm:$0xf]  ;;  %v2258_v33 = vsel %vm10245_vm1, 0, %v10556_v25  ;;  %v10566_v10 = vrot.slane %v2722_v18, 1 }
 0x12e   : > { %v2147_v11 = vmax.f32 %v2131_v62, 0.0  ;;  %v2274_v14 = vsel %vm10225_vm0, 0, %v10556_v25  ;;  %2225 = vst.msk [vmem:[#allocation3 + $0x28] sm:$0xf] %vm2216_vm2, %v8906_v30  ;;  %v2145_v41 = vmax.f32 %v2129_v40, 0.0  ;;  %v2109_v37 = vadd.f32 %v2082_v46, %v1845_v19  ;;  %v2085_v62 = vpop.f32.mrf.mxu0 }
 0x12f   : > { %v2134_v28 = vadd.f32 %v10480_v38, %v2111_v3  ;;  %v1856_v0 = vadd.f32 %v9277_v15, %v10473_v29  ;;  %v1847_v49 = vpop.f32.mrf.mxu1  ;;  %v2256_v34 = vsel %vm10245_vm1, 0, %v2238_v16  ;;  %v2272_v7 = vsel %vm10225_vm0, 0, %v2238_v16 }
 0x130   : > { %v10574_v23 = vpack.c.bf16 %v2147_v11, %v2146_v53  ;;  %v8909_v45 = vpack.c.bf16 %v2147_v11, %v2147_v11  ;;  %v2241_v51 = vld [vmem:[#allocation3 + $0x24] sm:$0xf]  ;;  %v8907_v17 = vpack.c.bf16 %v2145_v41, %v2145_v41  ;;  %v2132_v59 = vadd.f32 %v10480_v38, %v2109_v37 }
 0x131   : > { %v2150_v21 = vmax.f32 %v2134_v28, 0.0  ;;  %v2112_v61 = vadd.f32 %v9295_v56, %v1856_v0  ;;  %v1848_v29 = vadd.f32 %v1847_v49, %v10475_v31  ;;  %v10583_v53 = vpack.c.bf16 %v2145_v41, %v2144_v63 }
 0x132   : > { %2228 = vst.msk [vmem:[#allocation3 + $0x34] sm:$0xf] %vm2216_vm2, %v8909_v45  ;;  %v8375_v18 = vcombine.low %v2255_v8, %v2256_v34  ;;  %v2239_v6 = vld [vmem:[#allocation3 + $0x1c] sm:$0xf]  ;;  %v2259_v46 = vsel %vm10368_vm6, 0, %v2241_v51  ;;  %v2148_v22 = vmax.f32 %v2132_v59, 0.0 }
 0x133   : > { %2226 = vst.msk [vmem:[#allocation3 + $0x2c] sm:$0xf] %vm2216_vm2, %v8907_v17  ;;  %v8912_v4 = vpack.c.bf16 %v2150_v21, %v2150_v21  ;;  %v2135_v5 = vadd.f32 %v10480_v38, %v2112_v61  ;;  %v2257_v25 = vsel %vm10245_vm1, 0, %v2239_v6  ;;  %v2110_v30 = vadd.f32 %v2085_v62, %v1848_v29  ;;  %9306 = vmatprep.mubr.msk.bf16.mxu1 %vm2296_vm10, %v10583_v53 }
 0x134   : > { %v2479_v31 = vshrl.u32 %v8375_v18, 16  ;;  %v2482_v63 = vshll.u32 %v8375_v18, 16  ;;  %v8376_v8 = vcombine.low %v2257_v25, %v2258_v33  ;;  %v8910_v40 = vpack.c.bf16 %v2148_v22, %v2148_v22  ;;  %9307 = vmatmul.mubr.msk.bf16.gmra.mxu1 %vm2296_vm10, %v10574_v23  ;;  %v10598_v11 = vld [vmem:[#allocation3 + $0x30] sm:$0xf] }
 0x135   : > { %2231 = vst.msk [vmem:[#allocation3 + $0x40] sm:$0xf] %vm2216_vm2, %v8912_v4  ;;  %v2151_v3 = vmax.f32 %v2135_v5, 0.0  ;;  %v2273_v19 = vsel %vm10225_vm0, 0, %v2239_v6  ;;  %v2275_v15 = vsel %vm10322_vm8, 0, %v2241_v51  ;;  %v2133_v16 = vadd.f32 %v10480_v38, %v2110_v30 }
 0x136   : > { %v2481_v41 = vrot.slane %v2479_v31, 3  ;;  %v2484_v28 = vrot.slane %v2482_v63, 4  ;;  %v2488_v33 = vshrl.u32 %v8376_v8, 16  ;;  %v2242_v56 = vld [vmem:[#allocation3 + $0x28] sm:$0xf]  ;;  %v2491_v45 = vshll.u32 %v8376_v8, 16 }
 0x137   : > { %2229 = vst.msk [vmem:[#allocation3 + $0x38] sm:$0xf] %vm2216_vm2, %v8910_v40  ;;  %v10604_v37 = vpack.c.bf16 %v2151_v3, %v2150_v21  ;;  %v8913_v0 = vpack.c.bf16 %v2151_v3, %v2151_v3  ;;  %v2260_v49 = vsel %vm10390_vm11, 0, %v2242_v56  ;;  %v2149_v34 = vmax.f32 %v2133_v16, 0.0 }
 0x138   : > { %v2485_v17 = vor.u32 %v2484_v28, %v2481_v41  ;;  %v2490_v59 = vrot.slane %v2488_v33, 3  ;;  %v8377_v61 = vcombine.low %v2259_v46, %v2260_v49  ;;  %v2493_v38 = vrot.slane %v2491_v45, 4 }
 0x139   : > { %2232 = vst.msk [vmem:[#allocation3 + $0x44] sm:$0xf] %vm2216_vm2, %v8913_v0  ;;  %v8395_v51 = vcombine.low %v2272_v7, %v2273_v19  ;;  %v2262_v29 = vsel %vm10245_vm1, 0, %v10598_v11  ;;  %v10612_v18 = vcombine.low %v2274_v14, %v2275_v15  ;;  %v8911_v21 = vpack.c.bf16 %v2149_v34, %v2149_v34  ;;  %v2245_v63 = vld [vmem:[#allocation3 + $0x34] sm:$0xf] }
 0x13a   : > { %v2486_v6 = vsel %vm1654_vm5, %v10530_v26, %v2485_v17  ;;  %v10616_v4 = vpack.c.bf16 %v2149_v34, %v2148_v22  ;;  %v2497_v62 = vshrl.u32 %v8377_v61, 16  ;;  %v2243_v5 = vld [vmem:[#allocation3 + $0x2c] sm:$0xf]  ;;  %v2494_v46 = vor.u32 %v2493_v38, %v2490_v59 }
 0x13b   : > { %9317 = vmatmul.mubr.msk.bf16.vlgmr.msra.gmra.mxu0 %vm2296_vm10, %v2486_v6  ;;  %v2500_v25 = vshll.u32 %v8377_v61, 16  ;;  %v2730_v30 = vshll.u32 %v8395_v51, 16  ;;  %v2261_v7 = vsel %vm10245_vm1, 0, %v2243_v5  ;;  %2230 = vst.msk [vmem:[#allocation3 + $0x3c] sm:$0xf] %vm2216_vm2, %v8911_v21  ;;  %v2725_v26 = vsel %vm1904_vm15, %v10558_v58, %v10566_v10 }
 0x13c   : > { %9310 = vmatprep.mubr.msk.bf16.mxu1 %vm2296_vm10, %v10616_v4  ;;  %v2726_v14 = vshrl.u32 %v10525_v52, 16  ;;  %v2499_v22 = vrot.slane %v2497_v62, 3  ;;  %v8378_v31 = vcombine.low %v2261_v7, %v2262_v29  ;;  %v2495_v8 = vsel %vm1654_vm5, %v2485_v17, %v2494_v46  ;;  %v2248_v59 = vld [vmem:[#allocation3 + $0x40] sm:$0xf] }
 0x13d   : > { %9311 = vmatmul.mubr.msk.bf16.gmra.mxu1 %vm2296_vm10, %v10604_v37  ;;  %v2502_v40 = vrot.slane %v2500_v25, 4  ;;  %v2732_v3 = vrot.slane %v2730_v30, 1  ;;  %v2738_v19 = vshll.u32 %v10612_v18, 16  ;;  %9320 = vmatprep.mubr.msk.bf16.mxu0 %vm2296_vm10, %v2495_v8  ;;  %v2734_v16 = vshrl.u32 %v8395_v51, 16 }
 0x13e   : > { %v2728_v15 = vor.u32 %v2726_v14, %v10566_v10  ;;  %9334 = vmatprep.mubr.msk.bf16.mxu1 %vm2296_vm10, %v2725_v26  ;;  %v2506_v58 = vshrl.u32 %v8378_v31, 16  ;;  %v2509_v52 = vshll.u32 %v8378_v31, 16  ;;  %v2246_v41 = vld [vmem:[#allocation3 + $0x38] sm:$0xf]  ;;  %v2263_v33 = vsel %vm10245_vm1, 0, %v2245_v63 }
 0x13f   : > { %v2503_v28 = vor.u32 %v2502_v40, %v2499_v22  ;;  %v2264_v0 = vsel %vm10245_vm1, 0, %v2246_v41  ;;  %v2276_v45 = vsel %vm12215_vm14, 0, %v2242_v56  ;;  %v2277_v10 = vsel %vm10225_vm0, 0, %v2243_v5 }
 0x140   : > { %v2508_v49 = vrot.slane %v2506_v58, 3  ;;  %v2511_v34 = vrot.slane %v2509_v52, 4  ;;  %v8379_v17 = vcombine.low %v2263_v33, %v2264_v0  ;;  %v2736_v38 = vor.u32 %v2734_v16, %v2732_v3  ;;  %v2249_v30 = vld [vmem:[#allocation3 + $0x44] sm:$0xf] }
 0x141   : > { %v2504_v61 = vsel %vm1654_vm5, %v2494_v46, %v2503_v28  ;;  %v2740_v51 = vrot.slane %v2738_v19, 1  ;;  %v8397_v29 = vcombine.low %v2276_v45, %v2277_v10  ;;  %v2733_v21 = vsel %vm1904_vm15, %v2728_v15, %v2732_v3  ;;  %v2250_v10 = vld [vmem:[#allocation3 + $0x48] sm:$0x1] }
 0x142   : > { %v2512_v6 = vor.u32 %v2511_v34, %v2508_v49  ;;  %v2515_v62 = vshrl.u32 %v8379_v17, 16  ;;  %v2518_v25 = vshll.u32 %v8379_v17, 16  ;;  %v2247_v7 = vld [vmem:[#allocation3 + $0x3c] sm:$0xf]  ;;  %v2266_v26 = vsel %vm10245_vm1, 0, %v2248_v59 }
 0x143   : > { %9321 = vmatmul.mubr.msk.bf16.gmra.mxu0 %vm2296_vm10, %v2504_v61  ;;  %v2746_v56 = vshll.u32 %v8397_v29, 16  ;;  %v2278_v5 = vsel %vm10225_vm0, 0, %v10598_v11  ;;  %v2279_v46 = vsel %vm10225_vm0, 0, %v2245_v63  ;;  %v2265_v8 = vsel %vm10245_vm1, 0, %v2247_v7 }
 0x144   : > { %v2513_v14 = vsel %vm1654_vm5, %v2503_v28, %v2512_v6  ;;  %v2517_v22 = vrot.slane %v2515_v62, 3  ;;  %v2520_v31 = vrot.slane %v2518_v25, 4  ;;  %v2741_v40 = vsel %vm1904_vm15, %v2736_v38, %v2740_v51 }
 0x145   : > { %9335 = vmatmul.mubr.msk.bf16.vlgmr.msra.gmra.mxu1 %vm2296_vm10, %v2733_v21  ;;  %9324 = vmatprep.mubr.msk.bf16.mxu0 %vm2296_vm10, %v2513_v14  ;;  %v2748_v3 = vrot.slane %v2746_v56, 1  ;;  %v8380_v19 = vcombine.low %v2265_v8, %v2266_v26  ;;  %v8398_v15 = vcombine.low %v2278_v5, %v2279_v46  ;;  %v2742_v63 = vshrl.u32 %v10612_v18, 16 }
 0x146   : > { %9338 = vmatprep.mubr.msk.bf16.mxu1 %vm2296_vm10, %v2741_v40  ;;  %v2521_v11 = vor.u32 %v2520_v31, %v2517_v22  ;;  %vm12216_vm14 = vcmp.ne.s16.totalorder %v10218_v54, 0  ;;  %v2281_v52 = vsel %vm10225_vm0, 0, %v2247_v7  ;;  %v2750_v33 = vshrl.u32 %v8397_v29, 16 }
 0x147   : > { %v2267_v58 = vsel %vm12216_vm14, 0, %v2249_v30  ;;  %v2524_v16 = vshrl.u32 %v8380_v19, 16  ;;  %v2527_v28 = vshll.u32 %v8380_v19, 16  ;;  %v2280_v0 = vsel %vm10225_vm0, 0, %v2246_v41 }
 0x148   : > { %v2522_v45 = vsel %vm1654_vm5, %v2512_v6, %v2521_v11  ;;  %v2754_v49 = vshll.u32 %v8398_v15, 16  ;;  %v8381_v34 = vcombine.low %v2267_v58, %v2267_v58  ;;  %v8399_v17 = vcombine.low %v2280_v0, %v2281_v52 }
 0x149   : > { %v2526_v61 = vrot.slane %v2524_v16, 3  ;;  %v2529_v18 = vrot.slane %v2527_v28, 4  ;;  %v2752_v38 = vor.u32 %v2750_v33, %v2748_v3  ;;  %v2744_v21 = vor.u32 %v2742_v63, %v2740_v51 }
 0x14a   : > { %v2533_v62 = vshrl.u32 %v8381_v34, 16  ;;  %v2536_v25 = vshll.u32 %v8381_v34, 16  ;;  %v2762_v56 = vshll.u32 %v8399_v17, 16  ;;  %v2756_v29 = vrot.slane %v2754_v49, 1  ;;  %v9828_v34 = vld [vmem:[%s12217_s3 + $0x8] sm:$0xff]  }
 0x14b   : > { %9325 = vmatmul.mubr.msk.bf16.gmra.mxu0 %vm2296_vm10, %v2522_v45  ;;  %v2530_v7 = vor.u32 %v2529_v18, %v2526_v61  ;;  %v2283_v41 = vsel %vm10423_vm13, 0, %v2249_v30  ;;  %v2284_v6 = vsel %vm10418_vm3, 0, %v2250_v10  ;;  %v2749_v26 = vsel %vm1904_vm15, %v2744_v21, %v2748_v3  ;;  %9350 = vmatprep.subr.bf16.mxu0 %v9828_v34  ;;  %v10698_v10 = vld [vmem:[%s12217_s3 + $0x10] sm:$0xff]  }
 0x14c   : > { %v2535_v5 = vrot.slane %v2533_v62, 3  ;;  %v2538_v46 = vrot.slane %v2536_v25, 4  ;;  %v2282_v51 = vsel %vm10225_vm0, 0, %v2248_v59  ;;  %v2757_v22 = vsel %vm1904_vm15, %v2752_v38, %v2756_v29  ;;  %9351 = vmatpush3.bf16.msra.mxu0 %v9828_v34 }
 0x14d   : > { %9339 = vmatmul.mubr.msk.bf16.gmra.mxu1 %vm2296_vm10, %v2749_v26  ;;  %v2531_v14 = vsel %vm1654_vm5, %v2521_v11, %v2530_v7  ;;  %v2764_v31 = vrot.slane %v2762_v56, 1  ;;  %v8400_v8 = vcombine.low %v2282_v51, %v2283_v41  ;;  %v2766_v30 = vshrl.u32 %v8399_v17, 16  ;;  %v9829_v17 = vld [vmem:[%s12217_s3] sm:$0xff]   ;;  %9386 = vmatprep.subr.bf16.mxu0 %v10698_v10 }
 0x14e   : > { %9328 = vmatprep.mubr.msk.bf16.mxu0 %vm2296_vm10, %v2531_v14  ;;  %9342 = vmatprep.mubr.msk.bf16.mxu1 %vm2296_vm10, %v2757_v22  ;;  %v2539_v3 = vor.u32 %v2538_v46, %v2535_v5  ;;  %v2758_v19 = vshrl.u32 %v8398_v15, 16  ;;  %v8401_v63 = vcombine.low %v2284_v6, %v2284_v6 }
 0x14f   : > { %v2770_v40 = vshll.u32 %v8400_v8, 16  ;;  %v2768_v58 = vor.u32 %v2766_v30, %v2764_v31  ;;  %v2774_v0 = vshrl.u32 %v8400_v8, 16  ;;  %9368 = vmatprep.subr.bf16.mxu1 %v9829_v17 }
 0x150   : > { %v2540_v59 = vsel %vm1654_vm5, %v2530_v7, %v2539_v3  ;;  %v2760_v52 = vor.u32 %v2758_v19, %v2756_v29  ;;  %v2778_v28 = vshll.u32 %v8401_v63, 16  ;;  %9369 = vmatpush3.bf16.msra.mxu1 %v9829_v17 }
 0x151   : > { %v2772_v11 = vrot.slane %v2770_v40, 1 }
 0x152   : > { %v2765_v16 = vsel %vm1904_vm15, %v2760_v52, %v2764_v31  ;;  %v2780_v15 = vrot.slane %v2778_v28, 1 }
 0x153   : > { %9329 = vmatmul.mubr.msk.bf16.gmra.mxu0 %vm2296_vm10, %v2540_v59  ;;  %v2773_v33 = vsel %vm1904_vm15, %v2768_v58, %v2772_v11  ;;  %v2776_v45 = vor.u32 %v2774_v0, %v2772_v11  ;;  %v10718_v58 = vld [vmem:[%s12218_s1] ss:$0 sm:$0xff]  ;;  %s12223_s1 = sld [smem:[#allocation20_spill]] }
 0x155   : > { %9343 = vmatmul.mubr.msk.bf16.gmra.mxu1 %vm2296_vm10, %v2765_v16  ;;  %v2781_v49 = vsel %vm1904_vm15, %v2776_v45, %v2780_v15 }
 0x156   : > { %9346 = vmatprep.mubr.msk.bf16.mxu1 %vm2296_vm10, %v2773_v33 }
 0x15d   : > { %9347 = vmatmul.mubr.msk.bf16.gmra.mxu1 %vm2296_vm10, %v2781_v49 }
 0x1d8   : > { %v9300_v61 = vpop.f32.mrf.mxu1 }
 0x1da   : > { %v2355_v18 = vpop.f32.mrf.mxu1 }
 0x1dc   : > { %v9301_v38 = vpop.f32.mrf.mxu1 }
 0x1de   : > { %v2358_v21 = vpop.f32.mrf.mxu1 }
 0x1ec   : > { %v9304_v62 = vpop.f32.mrf.mxu1 }
 0x1ee   : > { %v2371_v25 = vpop.f32.mrf.mxu1 }
 0x1f0   : > { %v9305_v56 = vpop.f32.mrf.mxu1 }
 0x1f2   : > { %v2374_v7 = vpop.f32.mrf.mxu1 }
 0x1f4   : > { %v9308_v29 = vpop.f32.mrf.mxu1 }
 0x1f6   : > { %v10701_v41 = vpop.f32.mrf.mxu1 }
 0x1f8   : > { %v10703_v6 = vpop.f32.mrf.mxu1 }
 0x1fa   : > { %v10705_v5 = vpop.f32.mrf.mxu1 }
 0x1fb   : > { %v9318_v26 = vpop.f32.mrf.mxu0 }
 0x1fc   : > { %v2614_v3 = vadd.f32 %v9318_v26, %v9300_v61 }
 0x1fd   : > { %v2605_v46 = vpop.f32.mrf.mxu0  ;;  %v10707_v51 = vpop.f32.mrf.mxu1 }
 0x1fe   : > { %v2606_v59 = vadd.f32 %v2605_v46, %v2355_v18 }
 0x1ff   : > { %v9319_v14 = vpop.f32.mrf.mxu0  ;;  %v10709_v22 = vpop.f32.mrf.mxu1 }
 0x200   : > { %v2617_v28 = vadd.f32 %v9319_v14, %v9301_v38 }
 0x201   : > { %v2608_v31 = vpop.f32.mrf.mxu0  ;;  %v10711_v8 = vpop.f32.mrf.mxu1 }
 0x202   : > { %v2609_v61 = vadd.f32 %v2608_v31, %v2358_v21  ;;  %v3044_v31 = vld [vmem:[#allocation3 + $0x4] sm:$0x8] }
 0x203   : > { %v9322_v30 = vpop.f32.mrf.mxu0  ;;  %v10713_v40 = vpop.f32.mrf.mxu1 }
 0x204   : > { %v2630_v43 = vadd.f32 %v9322_v30, %v9304_v62 }
 0x205   : > { %v2621_v19 = vpop.f32.mrf.mxu0  ;;  %v9336_v63 = vpop.f32.mrf.mxu1 }
 0x206   : > { %v2911_v52 = vadd.f32 %v9336_v63, %v2614_v3 }
 0x207   : > { %v9323_v11 = vpop.f32.mrf.mxu0  ;;  %v2846_v16 = vpop.f32.mrf.mxu1 }
 0x208   : > { %v2934_v33 = vadd.f32 %v10718_v58, %v2911_v52  ;;  %v2909_v0 = vadd.f32 %v2846_v16, %v2606_v59  ;;  %v2622_v52 = vadd.f32 %v2621_v19, %v2371_v25  ;;  %v3062_v19 = vsel %vm1148_vm4, 0, %v3044_v31 }
 0x209   : > { %v2624_v45 = vpop.f32.mrf.mxu0  ;;  %v9337_v15 = vpop.f32.mrf.mxu1  ;;  %vm12219_vm4 = vcmp.ne.s16.totalorder %v10198_v42, 0 }
 0x20a   : > { %v2950_v49 = vmax.f32 %v2934_v33, 0.0  ;;  %v2932_v34 = vadd.f32 %v10718_v58, %v2909_v0  ;;  %v2912_v17 = vadd.f32 %v9337_v15, %v2617_v28  ;;  %v2633_v33 = vadd.f32 %v9323_v11, %v9305_v56 }
 0x20b   : > { %v9326_v26 = vpop.f32.mrf.mxu0  ;;  %v2849_v39 = vpop.f32.mrf.mxu1 }
 0x20c   : > { %v8916_v48 = vpack.c.bf16 %v2950_v49, %v2950_v49  ;;  %v2948_v36 = vmax.f32 %v2932_v34, 0.0  ;;  %v2935_v18 = vadd.f32 %v10718_v58, %v2912_v17  ;;  %v2910_v46 = vadd.f32 %v2849_v39, %v2609_v61  ;;  %v3061_v17 = vld [vmem:[#allocation3 + $0x48] sm:$0x1] }
 0x20d   : > { %v2637_v3 = vpop.f32.mrf.mxu0  ;;  %v9340_v38 = vpop.f32.mrf.mxu1  ;;  %v2646_v56 = vadd.f32 %v9326_v26, %v9308_v29 }
 0x20e   : > { %3030 = vst.msk [vmem:[#allocation3 + $0x10] sm:$0xf] %vm2216_vm2, %v8916_v48  ;;  %v8914_v14 = vpack.c.bf16 %v2948_v36, %v2948_v36  ;;  %v2951_v63 = vmax.f32 %v2935_v18, 0.0  ;;  %v2915_v59 = vadd.f32 %v9340_v38, %v2630_v43  ;;  %v2933_v16 = vadd.f32 %v10718_v58, %v2910_v46 }
 0x20f   : > { %v9327_v28 = vpop.f32.mrf.mxu0  ;;  %v2862_v21 = vpop.f32.mrf.mxu1  ;;  %v2625_v48 = vadd.f32 %v2624_v45, %v2374_v7  ;;  %v2638_v12 = vadd.f32 %v2637_v3, %v10701_v41 }
 0x210   : > { %3028 = vst.msk [vmem:[#allocation3 + $0x8] sm:$0xf] %vm2216_vm2, %v8914_v14  ;;  %v8917_v62 = vpack.c.bf16 %v2951_v63, %v2951_v63  ;;  %v2938_v30 = vadd.f32 %v10718_v58, %v2915_v59  ;;  %v2949_v39 = vmax.f32 %v2933_v16, 0.0  ;;  %v2913_v0 = vadd.f32 %v2862_v21, %v2622_v52 }
 0x211   : > { %v2640_v15 = vpop.f32.mrf.mxu0  ;;  %v9341_v34 = vpop.f32.mrf.mxu1  ;;  %v2965_v14 = vpack.c.bf16 %v2951_v63, %v2950_v49  ;;  %v2649_v52 = vadd.f32 %v9327_v28, %v10703_v6  ;;  %v10744_v49 = vsel %vm10418_vm3, 0, %v3061_v17 }
 0x212   : > { %3031 = vst.msk [vmem:[#allocation3 + $0x14] sm:$0xf] %vm2216_vm2, %v8917_v62  ;;  %v10728_v43 = vmax.f32 %v2938_v30, 0.0  ;;  %v2916_v25 = vadd.f32 %v9341_v34, %v2633_v33  ;;  %v2964_v11 = vpack.c.bf16 %v2949_v39, %v2948_v36  ;;  %v8915_v61 = vpack.c.bf16 %v2949_v39, %v2949_v39 }
 0x213   : > { %v2936_v18 = vadd.f32 %v10718_v58, %v2913_v0  ;;  %v9330_v46 = vpop.f32.mrf.mxu0  ;;  %v2865_v38 = vpop.f32.mrf.mxu1  ;;  %v2641_v63 = vadd.f32 %v2640_v15, %v10705_v5 }
 0x214   : > { %v8920_v7 = vpack.c.bf16 %v10728_v43, %v10728_v43  ;;  %v2939_v45 = vadd.f32 %v10718_v58, %v2916_v25  ;;  %v2914_v59 = vadd.f32 %v2865_v38, %v2625_v48  ;;  %3029 = vst.msk [vmem:[#allocation3 + $0xc] sm:$0xf] %vm2216_vm2, %v8915_v61  ;;  %9352 = vmatprep.mubr.msk.bf16.mxu0 %vm2296_vm10, %v2964_v11 }
 0x215   : > { %v2952_v29 = vmax.f32 %v2936_v18, 0.0  ;;  %v2653_v36 = vpop.f32.mrf.mxu0  ;;  %v9344_v26 = vpop.f32.mrf.mxu1  ;;  %v10740_v16 = vld [vmem:[#allocation3 + $0x10] sm:$0xf]  ;;  %9353 = vmatmul.mubr.msk.bf16.vlgmr.msra.gmra.mxu0 %vm2296_vm10, %v2965_v14  ;;  %v2662_v28 = vadd.f32 %v9330_v46, %v10707_v51 }
 0x216   : > { %3034 = vst.msk [vmem:[#allocation3 + $0x20] sm:$0xf] %vm2216_vm2, %v8920_v7  ;;  %v2955_v21 = vmax.f32 %v2939_v45, 0.0  ;;  %v2937_v41 = vadd.f32 %v10718_v58, %v2914_v59  ;;  %v2919_v3 = vadd.f32 %v9344_v26, %v2646_v56  ;;  %v2654_v31 = vadd.f32 %v2653_v36, %v10709_v22  ;;  %9387 = vmatpush3.bf16.msra.mxu0 %v10698_v10 }
 0x217   : > { %v8918_v6 = vpack.c.bf16 %v2952_v29, %v2952_v29  ;;  %v9331_v32 = vpop.f32.mrf.mxu0  ;;  %v2878_v33 = vpop.f32.mrf.mxu1  ;;  %v3045_v62 = vld [vmem:[#allocation3 + $0x8] sm:$0xf]  ;;  %v3065_v5 = vsel %vm10245_vm1, 0, %v10740_v16  ;;  %v3081_v15 = vsel %vm10225_vm0, 0, %v10740_v16 }
 0x218   : > { %v8921_v30 = vpack.c.bf16 %v2955_v21, %v2955_v21  ;;  %v2953_v39 = vmax.f32 %v2937_v41, 0.0  ;;  %v2942_v0 = vadd.f32 %v10718_v58, %v2919_v3  ;;  %v2967_v51 = vpack.c.bf16 %v2955_v21, %v10728_v43 }
 0x219   : > { %3032 = vst.msk [vmem:[#allocation3 + $0x18] sm:$0xf] %vm2216_vm2, %v8918_v6  ;;  %v2665_v10 = vadd.f32 %v9331_v32, %v10711_v8  ;;  %v2917_v22 = vadd.f32 %v2878_v33, %v2638_v12  ;;  %v2656_v34 = vpop.f32.mrf.mxu0  ;;  %v9345_v48 = vpop.f32.mrf.mxu1  ;;  %v3063_v25 = vsel %vm10282_vm7, 0, %v3045_v62  ;;  %v10765_v17 = vld [vmem:[#allocation3 + $0x14] sm:$0xf]  ;;  %v10772_v18 = vsel %vm12219_vm4, 0, %v3045_v62 }
 0x21a   : > { %3035 = vst.msk [vmem:[#allocation3 + $0x24] sm:$0xf] %vm2216_vm2, %v8921_v30  ;;  %v2966_v56 = vpack.c.bf16 %v2953_v39, %v2952_v29  ;;  %v8919_v11 = vpack.c.bf16 %v2953_v39, %v2953_v39  ;;  %v10768_v61 = vmax.f32 %v2942_v0, 0.0  ;;  %v2657_v43 = vadd.f32 %v2656_v34, %v10713_v40 }
 0x21b   : > { %v2940_v8 = vadd.f32 %v10718_v58, %v2917_v22  ;;  %v2920_v46 = vadd.f32 %v9345_v48, %v2649_v52  ;;  %v2881_v38 = vpop.f32.mrf.mxu1  ;;  %v8439_v55 = vcombine.low %v3062_v19, %v3063_v25  ;;  %v10780_v45 = vld [vmem:[#allocation3 + $0xc] sm:$0xf]  ;;  %v3066_v59 = vsel %vm10245_vm1, 0, %v10765_v17 }
 0x21c   : > { %3033 = vst.msk [vmem:[#allocation3 + $0x1c] sm:$0xf] %vm2216_vm2, %v8919_v11  ;;  %v8924_v14 = vpack.c.bf16 %v10768_v61, %v10768_v61  ;;  %v2918_v7 = vadd.f32 %v2881_v38, %v2641_v63  ;;  %9356 = vmatprep.mubr.msk.bf16.mxu0 %vm2296_vm10, %v2966_v56  ;;  %v3082_v40 = vsel %vm10225_vm0, 0, %v10765_v17  ;;  %v3064_v29 = vsel %vm10245_vm1, 0, %v10780_v45 }
 0x21d   : > { %v2956_v12 = vmax.f32 %v2940_v8, 0.0  ;;  %v2943_v19 = vadd.f32 %v10718_v58, %v2920_v46  ;;  %v9348_v52 = vpop.f32.mrf.mxu1  ;;  %v3272_v36 = vshrl.u32 %v8439_v55, 16  ;;  %v10792_v26 = vld [vmem:[#allocation3 + $0x20] sm:$0xf]  ;;  %9357 = vmatmul.mubr.msk.bf16.gmra.mxu0 %vm2296_vm10, %v2967_v51  ;;  %v8440_v41 = vcombine.low %v3064_v29, %v3065_v5 }
 0x21e   : > { %3038 = vst.msk [vmem:[#allocation3 + $0x30] sm:$0xf] %vm2216_vm2, %v8924_v14  ;;  %v2941_v63 = vadd.f32 %v10718_v58, %v2918_v7  ;;  %v2923_v21 = vadd.f32 %v9348_v52, %v2662_v28  ;;  %v3275_v3 = vshll.u32 %v8439_v55, 16  ;;  %v3069_v30 = vsel %vm10245_vm1, 0, %v10792_v26 }
 0x21f   : > { %v8922_v6 = vpack.c.bf16 %v2956_v12, %v2956_v12  ;;  %v2959_v32 = vmax.f32 %v2943_v19, 0.0  ;;  %v2894_v33 = vpop.f32.mrf.mxu1  ;;  %v3274_v62 = vrot.slane %v3272_v36, 3  ;;  %v3280_v48 = vshrl.u32 %v8440_v41, 16 }
 0x220   : > { %v2957_v39 = vmax.f32 %v2941_v63, 0.0  ;;  %v2946_v0 = vadd.f32 %v10718_v58, %v2923_v21  ;;  %v2921_v22 = vadd.f32 %v2894_v33, %v2654_v31  ;;  %v3277_v34 = vrot.slane %v3275_v3, 4  ;;  %v10803_v56 = vld [vmem:[#allocation3 + $0x18] sm:$0xf] }
 0x221   : > { %3036 = vst.msk [vmem:[#allocation3 + $0x28] sm:$0xf] %vm2216_vm2, %v8922_v6  ;;  %v2969_v28 = vpack.c.bf16 %v2959_v32, %v10768_v61  ;;  %v8925_v51 = vpack.c.bf16 %v2959_v32, %v2959_v32  ;;  %v9349_v5 = vpop.f32.mrf.mxu1  ;;  %v3283_v25 = vshll.u32 %v8440_v41, 16  ;;  %v3282_v7 = vrot.slane %v3280_v48, 3 }
 0x222   : > { %v2968_v11 = vpack.c.bf16 %v2957_v39, %v2956_v12  ;;  %v8923_v8 = vpack.c.bf16 %v2957_v39, %v2957_v39  ;;  %v10805_v46 = vmax.f32 %v2946_v0, 0.0  ;;  %v2944_v38 = vadd.f32 %v10718_v58, %v2921_v22 }
 0x223   : > { %3039 = vst.msk [vmem:[#allocation3 + $0x34] sm:$0xf] %vm2216_vm2, %v8925_v51  ;;  %v2924_v31 = vadd.f32 %v9349_v5, %v2665_v10  ;;  %v2897_v55 = vpop.f32.mrf.mxu1  ;;  %v3278_v14 = vor.u32 %v3277_v34, %v3274_v62  ;;  %v3285_v19 = vrot.slane %v3283_v25, 4  ;;  %v3050_v61 = vld [vmem:[#allocation3 + $0x1c] sm:$0xf]  ;;  %v3067_v36 = vsel %vm10245_vm1, 0, %v10803_v56 }
 0x224   : > { %3037 = vst.msk [vmem:[#allocation3 + $0x2c] sm:$0xf] %vm2216_vm2, %v8923_v8  ;;  %v8928_v52 = vpack.c.bf16 %v10805_v46, %v10805_v46  ;;  %v2960_v29 = vmax.f32 %v2944_v38, 0.0  ;;  %v2922_v12 = vadd.f32 %v2897_v55, %v2657_v43  ;;  %9360 = vmatprep.mubr.msk.bf16.mxu0 %vm2296_vm10, %v2968_v11  ;;  %v8441_v21 = vcombine.low %v3066_v59, %v3067_v36 }
 0x225   : > { %v2947_v10 = vadd.f32 %v10718_v58, %v2924_v31  ;;  %v3286_v63 = vor.u32 %v3285_v19, %v3282_v7  ;;  %v3068_v41 = vsel %vm10245_vm1, 0, %v3050_v61  ;;  %9361 = vmatmul.mubr.msk.bf16.gmra.mxu0 %vm2296_vm10, %v2969_v28  ;;  %v3084_v43 = vsel %vm10225_vm0, 0, %v3050_v61  ;;  %v3052_v28 = vld [vmem:[#allocation3 + $0x24] sm:$0xf]  ;;  %v10850_v61 = vld [vmem:[#allocation3 + $0x30] sm:$0xf] }
 0x226   : > { %3042 = vst.msk [vmem:[#allocation3 + $0x40] sm:$0xf] %vm2216_vm2, %v8928_v52  ;;  %v8926_v3 = vpack.c.bf16 %v2960_v29, %v2960_v29  ;;  %v2945_v6 = vadd.f32 %v10718_v58, %v2922_v12  ;;  %v8442_v32 = vcombine.low %v3068_v41, %v3069_v30  ;;  %v3289_v39 = vshrl.u32 %v8441_v21, 16 }
 0x227   : > { %v2963_v33 = vmax.f32 %v2947_v10, 0.0  ;;  %v3287_v62 = vsel %vm1654_vm5, %v3278_v14, %v3286_v63  ;;  %v3292_v0 = vshll.u32 %v8441_v21, 16  ;;  %v3080_v58 = vsel %vm10225_vm0, 0, %v10780_v45 }
 0x228   : > { %3040 = vst.msk [vmem:[#allocation3 + $0x38] sm:$0xf] %vm2216_vm2, %v8926_v3  ;;  %v2961_v59 = vmax.f32 %v2945_v6, 0.0  ;;  %9370 = vmatprep.mubr.msk.bf16.mxu1 %vm2296_vm10, %v3287_v62  ;;  %v3298_v22 = vshrl.u32 %v8442_v32, 16  ;;  %v3301_v34 = vshll.u32 %v8442_v32, 16  ;;  %v3291_v5 = vrot.slane %v3289_v39, 3 }
 0x229   : > { %v2971_v51 = vpack.c.bf16 %v2963_v33, %v10805_v46  ;;  %v8929_v30 = vpack.c.bf16 %v2963_v33, %v2963_v33  ;;  %v3294_v48 = vrot.slane %v3292_v0, 4  ;;  %v3053_v25 = vld [vmem:[#allocation3 + $0x28] sm:$0xf]  ;;  %v8459_v14 = vcombine.low %v10772_v18, %v3080_v58 }
 0x22a   : > { %v2970_v11 = vpack.c.bf16 %v2961_v59, %v2960_v29  ;;  %v8927_v8 = vpack.c.bf16 %v2961_v59, %v2961_v59  ;;  %v3300_v38 = vrot.slane %v3298_v22, 3  ;;  %v3303_v31 = vrot.slane %v3301_v34, 4  ;;  %v3056_v33 = vld [vmem:[#allocation3 + $0x34] sm:$0xf] }
 0x22b   : > { %3043 = vst.msk [vmem:[#allocation3 + $0x44] sm:$0xf] %vm2216_vm2, %v8929_v30  ;;  %v3295_v55 = vor.u32 %v3294_v48, %v3291_v5  ;;  %v8460_v45 = vcombine.low %v3081_v15, %v3082_v40  ;;  %v3070_v46 = vsel %vm10368_vm6, 0, %v3052_v28  ;;  %v3054_v7 = vld [vmem:[#allocation3 + $0x2c] sm:$0xf]  ;;  %v3071_v18 = vsel %vm10390_vm11, 0, %v3053_v25 }
 0x22c   : > { %3041 = vst.msk [vmem:[#allocation3 + $0x3c] sm:$0xf] %vm2216_vm2, %v8927_v8  ;;  %9364 = vmatprep.mubr.msk.bf16.mxu0 %vm2296_vm10, %v2970_v11  ;;  %v3304_v19 = vor.u32 %v3303_v31, %v3300_v38  ;;  %v3083_v17 = vsel %vm10225_vm0, 0, %v10803_v56  ;;  %v3072_v16 = vsel %vm10245_vm1, 0, %v3054_v7  ;;  %v3525_v15 = vshrl.u32 %v8459_v14, 16 }
 0x22d   : > { %v3296_v24 = vsel %vm1654_vm5, %v3286_v63, %v3295_v55  ;;  %v3527_v40 = vshll.u32 %v8459_v14, 16  ;;  %v3532_v52 = vshll.u32 %v8460_v45, 16  ;;  %9365 = vmatmul.mubr.msk.bf16.gmra.mxu0 %vm2296_vm10, %v2971_v51  ;;  %v3536_v29 = vshrl.u32 %v8460_v45, 16 }
 0x22e   : > { %9371 = vmatmul.mubr.msk.bf16.vlgmr.msra.gmra.mxu1 %vm2296_vm10, %v3296_v24  ;;  %v3305_v20 = vsel %vm1654_vm5, %v3295_v55, %v3304_v19  ;;  %v8443_v12 = vcombine.low %v3070_v46, %v3071_v18  ;;  %v8461_v36 = vcombine.low %v3083_v17, %v3084_v43  ;;  %v3073_v63 = vsel %vm10245_vm1, 0, %v10850_v61  ;;  %v3059_v46 = vld [vmem:[#allocation3 + $0x40] sm:$0xf] }
 0x22f   : > { %9374 = vmatprep.mubr.msk.bf16.mxu1 %vm2296_vm10, %v3305_v20  ;;  %v3529_v56 = vrot.slane %v3527_v40, 1  ;;  %v3534_v10 = vrot.slane %v3532_v52, 1  ;;  %v3085_v21 = vsel %vm10225_vm0, 0, %v10792_v26  ;;  %v8444_v32 = vcombine.low %v3072_v16, %v3073_v63  ;;  %v10867_v51 = vld [vmem:[#allocation3 + $0x38] sm:$0xf] }
 0x230   : > { %v3307_v41 = vshrl.u32 %v8443_v12, 16  ;;  %v3310_v3 = vshll.u32 %v8443_v12, 16  ;;  %v3540_v6 = vshll.u32 %v8461_v36, 16  ;;  %v3086_v43 = vsel %vm10322_vm8, 0, %v3052_v28  ;;  %vm12221_vm8 = vmmov %vm12216_vm14 }
 0x231   : > { %v3530_v62 = vor.u32 %v3529_v56, %v3525_v15  ;;  %v3538_v39 = vor.u32 %v3536_v29, %v3534_v10  ;;  %v3544_v0 = vshrl.u32 %v8461_v36, 16  ;;  %v3316_v58 = vshrl.u32 %v8444_v32, 16 }
 0x232   : > { %v3309_v59 = vrot.slane %v3307_v41, 3  ;;  %v3312_v22 = vrot.slane %v3310_v3, 4  ;;  %v3542_v34 = vrot.slane %v3540_v6, 1  ;;  %v3319_v26 = vshll.u32 %v8444_v32, 16  ;;  %v3060_v12 = vld [vmem:[#allocation3 + $0x44] sm:$0xf] }
 0x233   : > { %v3535_v30 = vsel %vm1904_vm15, %v3530_v62, %v3534_v10  ;;  %v8462_v5 = vcombine.low %v3085_v21, %v3086_v43  ;;  %v3074_v48 = vsel %vm10245_vm1, 0, %v3056_v33  ;;  %v3318_v28 = vrot.slane %v3316_v58, 3  ;;  %v3058_v38 = vld [vmem:[#allocation3 + $0x3c] sm:$0xf] }
 0x234   : > { %9388 = vmatprep.mubr.msk.bf16.mxu0 %vm2296_vm10, %v3535_v30  ;;  %v3313_v11 = vor.u32 %v3312_v22, %v3309_v59  ;;  %v3543_v27 = vsel %vm1904_vm15, %v3538_v39, %v3542_v34  ;;  %v3546_v8 = vor.u32 %v3544_v0, %v3542_v34  ;;  %v3321_v31 = vrot.slane %v3319_v26, 4 }
 0x235   : > { %v3548_v55 = vshll.u32 %v8462_v5, 16  ;;  %v3075_v14 = vsel %vm10245_vm1, 0, %v10867_v51  ;;  %vm12220_vm7 = vcmp.ne.s16.totalorder %v10316_v1, 0  ;;  %9389 = vmatmul.mubr.msk.bf16.vlgmr.msra.gmra.mxu0 %vm2296_vm10, %v3543_v27  ;;  %v3088_v16 = vsel %vm10225_vm0, 0, %v3054_v7 }
 0x236   : > { %v3087_v45 = vsel %vm12220_vm7, 0, %v3053_v25  ;;  %v3314_v18 = vsel %vm1654_vm5, %v3304_v19, %v3313_v11  ;;  %v8445_v17 = vcombine.low %v3074_v48, %v3075_v14  ;;  %v3552_v24 = vshrl.u32 %v8462_v5, 16 }
 0x237   : > { %9375 = vmatmul.mubr.msk.bf16.gmra.mxu1 %vm2296_vm10, %v3314_v18  ;;  %v3322_v15 = vor.u32 %v3321_v31, %v3318_v28  ;;  %v3550_v40 = vrot.slane %v3548_v55, 1  ;;  %v8463_v52 = vcombine.low %v3087_v45, %v3088_v16  ;;  %v3076_v20 = vsel %vm10245_vm1, 0, %v3058_v38 }
 0x238   : > { %v3325_v1 = vshrl.u32 %v8445_v17, 16  ;;  %v3328_v25 = vshll.u32 %v8445_v17, 16  ;;  %v3077_v19 = vsel %vm10245_vm1, 0, %v3059_v46  ;;  %v3089_v29 = vsel %vm10225_vm0, 0, %v10850_v61 }
 0x239   : > { %v3323_v7 = vsel %vm1654_vm5, %v3313_v11, %v3322_v15  ;;  %v3551_v36 = vsel %vm1904_vm15, %v3546_v8, %v3550_v40  ;;  %v3554_v56 = vor.u32 %v3552_v24, %v3550_v40  ;;  %v3556_v10 = vshll.u32 %v8463_v52, 16 }
 0x23a   : > { %9378 = vmatprep.mubr.msk.bf16.mxu1 %vm2296_vm10, %v3323_v7  ;;  %9392 = vmatprep.mubr.msk.bf16.mxu0 %vm2296_vm10, %v3551_v36  ;;  %v3327_v63 = vrot.slane %v3325_v1, 3  ;;  %v3330_v21 = vrot.slane %v3328_v25, 4  ;;  %v8446_v41 = vcombine.low %v3076_v20, %v3077_v19  ;;  %v3090_v3 = vsel %vm10225_vm0, 0, %v3056_v33 }
 0x23b   : > { %v3558_v6 = vrot.slane %v3556_v10, 1  ;;  %v8464_v32 = vcombine.low %v3089_v29, %v3090_v3  ;;  %v3560_v61 = vshrl.u32 %v8463_v52, 16  ;;  %v3078_v62 = vsel %vm12221_vm8, 0, %v3060_v12 }
 0x23c   : > { %v3331_v39 = vor.u32 %v3330_v21, %v3327_v63  ;;  %v3334_v43 = vshrl.u32 %v8446_v41, 16  ;;  %v3337_v0 = vshll.u32 %v8446_v41, 16  ;;  %v8447_v59 = vcombine.low %v3078_v62, %v3078_v62  ;;  %v9831_v63 = vld [vmem:[%s12222_s2 + $0x8] sm:$0xff]   ;;  %v9832_v21 = vld [vmem:[%s12222_s2 + $0x10] sm:$0xff]   ;;  %v10935_v41 = vld [vmem:[%s12222_s2] sm:$0xff]  }
 0x23d   : > { %v3559_v22 = vsel %vm1904_vm15, %v3554_v56, %v3558_v6  ;;  %v3562_v34 = vor.u32 %v3560_v61, %v3558_v6  ;;  %v3564_v58 = vshll.u32 %v8464_v32, 16  ;;  %v8467_v30 = vcombine.low %v10744_v49, %v10744_v49  ;;  %9404 = vmatprep.subr.bf16.mxu1 %v9831_v63  ;;  %9424 = vmatprep.subr.bf16.mxu0 %v9832_v21 }
 0x23e   : > { %v3332_v26 = vsel %vm1654_vm5, %v3322_v15, %v3331_v39  ;;  %9393 = vmatmul.mubr.msk.bf16.gmra.mxu0 %vm2296_vm10, %v3559_v22  ;;  %v3336_v33 = vrot.slane %v3334_v43, 3  ;;  %v3339_v5 = vrot.slane %v3337_v0, 4  ;;  %v3343_v48 = vshrl.u32 %v8447_v59, 16  ;;  %9405 = vmatpush3.bf16.msra.mxu1 %v9831_v63 }
 0x23f   : > { %9379 = vmatmul.mubr.msk.bf16.gmra.mxu1 %vm2296_vm10, %v3332_v26  ;;  %v3566_v11 = vrot.slane %v3564_v58, 1  ;;  %v3346_v27 = vshll.u32 %v8447_v59, 16  ;;  %v3091_v28 = vsel %vm10225_vm0, 0, %v10867_v51  ;;  %v3092_v8 = vsel %vm10225_vm0, 0, %v3058_v38  ;;  %9414 = vmatprep.subr.bf16.mxu1 %v10935_v41 }
 0x240   : > { %v3340_v31 = vor.u32 %v3339_v5, %v3336_v33  ;;  %v3345_v49 = vrot.slane %v3343_v48, 3  ;;  %v8465_v55 = vcombine.low %v3091_v28, %v3092_v8  ;;  %v3568_v14 = vshrl.u32 %v8464_v32, 16  ;;  %9425 = vmatpush3.bf16.msra.mxu0 %v9832_v21 }
 0x241   : > { %v3567_v45 = vsel %vm1904_vm15, %v3562_v34, %v3566_v11  ;;  %v3348_v18 = vrot.slane %v3346_v27, 4  ;;  %v3093_v17 = vsel %vm10225_vm0, 0, %v3059_v46  ;;  %v3094_v16 = vsel %vm10423_vm13, 0, %v3060_v12 }
 0x242   : > { %v3341_v24 = vsel %vm1654_vm5, %v3331_v39, %v3340_v31  ;;  %9396 = vmatprep.mubr.msk.bf16.mxu0 %vm2296_vm10, %v3567_v45  ;;  %v3572_v51 = vshll.u32 %v8465_v55, 16  ;;  %v8466_v15 = vcombine.low %v3093_v17, %v3094_v16  ;;  %v3570_v38 = vor.u32 %v3568_v14, %v3566_v11 }
 0x243   : > { %9382 = vmatprep.mubr.msk.bf16.mxu1 %vm2296_vm10, %v3341_v24  ;;  %v3349_v40 = vor.u32 %v3348_v18, %v3345_v49  ;;  %v3576_v20 = vshrl.u32 %v8465_v55, 16  ;;  %v3588_v25 = vshll.u32 %v8467_v30, 16  ;;  %v10957_v49 = vld [vmem:[%s12223_s1] ss:$0 sm:$0xff]  ;;  %vm4404_vm7 = vcmask 257024  }
 0x244   : > { %v3574_v52 = vrot.slane %v3572_v51, 1  ;;  %v3580_v1 = vshll.u32 %v8466_v15, 16  ;;  %v3584_v7 = vshrl.u32 %v8466_v15, 16  ;;  %vm4662_vm8 = vcmask 261120  }
 0x245   : > { %v3350_v19 = vsel %vm1654_vm5, %v3340_v31, %v3349_v40  ;;  %v3590_v56 = vrot.slane %v3588_v25, 1  ;;  %v3760_v40 = vunpack.c.l.bf16 %v10491_v60  ;;  %v3758_v25 = vunpack.c.l.bf16 %v10489_v44 }
 0x246   : > { %v3575_v46 = vsel %vm1904_vm15, %v3570_v38, %v3574_v52  ;;  %v3578_v35 = vor.u32 %v3576_v20, %v3574_v52  ;;  %v3582_v29 = vrot.slane %v3580_v1, 1 }
 0x247   : > { %9383 = vmatmul.mubr.msk.bf16.gmra.mxu1 %vm2296_vm10, %v3350_v19  ;;  %9397 = vmatmul.mubr.msk.bf16.gmra.mxu0 %vm2296_vm10, %v3575_v46  ;;  %v3761_v19 = vunpack.c.h.bf16 %v10491_v60 }
 0x248   : > { %v3583_v12 = vsel %vm1904_vm15, %v3578_v35, %v3582_v29  ;;  %v3586_v36 = vor.u32 %v3584_v7, %v3582_v29 }
 0x249   : > { %9400 = vmatprep.mubr.msk.bf16.mxu0 %vm2296_vm10, %v3583_v12 }
 0x24a   : > { %v3591_v10 = vsel %vm1904_vm15, %v3586_v36, %v3590_v56 }
 0x24f   : > { %9401 = vmatmul.mubr.msk.bf16.gmra.mxu0 %vm2296_vm10, %v3591_v10  ;;  %v3759_v10 = vunpack.c.h.bf16 %v10489_v44 }
 0x2d5   : > { %v9354_v3 = vpop.f32.mrf.mxu0 }
 0x2d7   : > { %v3165_v6 = vpop.f32.mrf.mxu0 }
 0x2d9   : > { %v9355_v32 = vpop.f32.mrf.mxu0 }
 0x2db   : > { %v3168_v61 = vpop.f32.mrf.mxu0 }
 0x2dd   : > { %v9358_v62 = vpop.f32.mrf.mxu0 }
 0x2df   : > { %v3181_v39 = vpop.f32.mrf.mxu0 }
 0x2e1   : > { %v9359_v43 = vpop.f32.mrf.mxu0 }
 0x2e3   : > { %v3184_v0 = vpop.f32.mrf.mxu0 }
 0x2e5   : > { %v10938_v59 = vpop.f32.mrf.mxu0 }
 0x2e7   : > { %v10940_v22 = vpop.f32.mrf.mxu0 }
 0x2e9   : > { %v10942_v34 = vpop.f32.mrf.mxu0 }
 0x2eb   : > { %v10944_v58 = vpop.f32.mrf.mxu0 }
 0x2ed   : > { %v10946_v26 = vpop.f32.mrf.mxu0 }
 0x2ee   : > { %v9372_v30 = vpop.f32.mrf.mxu1 }
 0x2ef   : > { %v10948_v5 = vpop.f32.mrf.mxu0  ;;  %v3424_v8 = vadd.f32 %v9372_v30, %v9354_v3 }
 0x2f0   : > { %v3415_v33 = vpop.f32.mrf.mxu1 }
 0x2f1   : > { %v10950_v11 = vpop.f32.mrf.mxu0  ;;  %v3416_v55 = vadd.f32 %v3415_v33, %v3165_v6 }
 0x2f2   : > { %v9373_v48 = vpop.f32.mrf.mxu1 }
 0x2f3   : > { %v10952_v28 = vpop.f32.mrf.mxu0  ;;  %v3427_v17 = vadd.f32 %v9373_v48, %v9355_v32 }
 0x2f4   : > { %v3418_v27 = vpop.f32.mrf.mxu1 }
 0x2f5   : > { %v9390_v31 = vpop.f32.mrf.mxu0  ;;  %v3419_v38 = vadd.f32 %v3418_v27, %v3168_v61 }
 0x2f6   : > { %v3721_v45 = vadd.f32 %v9390_v31, %v3424_v8 }
 0x2f7   : > { %v9376_v14 = vpop.f32.mrf.mxu1  ;;  %v3656_v18 = vpop.f32.mrf.mxu0 }
 0x2f8   : > { %v3744_v24 = vadd.f32 %v10957_v49, %v3721_v45  ;;  %v3719_v51 = vadd.f32 %v3656_v18, %v3416_v55  ;;  %v3440_v35 = vadd.f32 %v9376_v14, %v9358_v62 }
 0x2f9   : > { %v3431_v16 = vpop.f32.mrf.mxu1  ;;  %v9391_v15 = vpop.f32.mrf.mxu0 }
 0x2fa   : > { %v3742_v20 = vadd.f32 %v10957_v49, %v3719_v51  ;;  %v3722_v1 = vadd.f32 %v9391_v15, %v3427_v17  ;;  %v3776_v29 = vadd.f32 %v3760_v40, %v3744_v24  ;;  %v3432_v56 = vadd.f32 %v3431_v16, %v3181_v39 }
 0x2fb   : > { %v9377_v52 = vpop.f32.mrf.mxu1  ;;  %v3659_v46 = vpop.f32.mrf.mxu0  ;;  %v3764_v17 = vunpack.c.l.bf16 %v10543_v47 }
 0x2fc   : > { %v3745_v7 = vadd.f32 %v10957_v49, %v3722_v1  ;;  %v3720_v36 = vadd.f32 %v3659_v46, %v3419_v38  ;;  %v3774_v21 = vadd.f32 %v3758_v25, %v3742_v20  ;;  %v3792_v33 = vmax.f32 %v3776_v29, 0.0 }
 0x2fd   : > { %v3434_v12 = vpop.f32.mrf.mxu1  ;;  %v3443_v8 = vadd.f32 %v9377_v52, %v9359_v43  ;;  %v3762_v20 = vunpack.c.l.bf16 %v10540_v50  ;;  %v3765_v25 = vunpack.c.h.bf16 %v10543_v47 }
 0x2fe   : > { %v9394_v63 = vpop.f32.mrf.mxu0  ;;  %v3777_v3 = vadd.f32 %v3761_v19, %v3745_v7  ;;  %v3743_v32 = vadd.f32 %v10957_v49, %v3720_v36  ;;  %v3790_v39 = vmax.f32 %v3774_v21, 0.0  ;;  %v3435_v18 = vadd.f32 %v3434_v12, %v3184_v0 }
 0x2ff   : > { %v9380_v6 = vpop.f32.mrf.mxu1  ;;  %v3725_v61 = vadd.f32 %v9394_v63, %v3440_v35  ;;  %v3763_v12 = vunpack.c.h.bf16 %v10540_v50 }
 0x300   : > { %v3672_v30 = vpop.f32.mrf.mxu0  ;;  %v3793_v60 = vmax.f32 %v3777_v3, 0.0  ;;  %v3775_v48 = vadd.f32 %v3759_v10, %v3743_v32  ;;  %v3456_v0 = vadd.f32 %v9380_v6, %v10938_v59 }
 0x301   : > { %v3447_v62 = vpop.f32.mrf.mxu1  ;;  %v3723_v27 = vadd.f32 %v3672_v30, %v3432_v56  ;;  %v3748_v31 = vadd.f32 %v10957_v49, %v3725_v61 }
 0x302   : > { %v9395_v55 = vpop.f32.mrf.mxu0  ;;  %v3807_v14 = vpack.c.bf16 %v3793_v60, %v3792_v33  ;;  %v3791_v44 = vmax.f32 %v3775_v48, 0.0  ;;  %v3448_v36 = vadd.f32 %v3447_v62, %v10940_v22  ;;  %v3768_v22 = vunpack.c.l.bf16 %v10574_v23 }
 0x303   : > { %v9381_v45 = vpop.f32.mrf.mxu1  ;;  %v3746_v16 = vadd.f32 %v10957_v49, %v3723_v27  ;;  %v3726_v24 = vadd.f32 %v9395_v55, %v3443_v8  ;;  %v3780_v52 = vadd.f32 %v3764_v17, %v3748_v31  ;;  %v3766_v33 = vunpack.c.l.bf16 %v10583_v53 }
 0x304   : > { %v3675_v51 = vpop.f32.mrf.mxu0  ;;  %v3816_v15 = vunpack.c.l.bf16 %v3807_v14  ;;  %v3817_v38 = vunpack.c.h.bf16 %v3807_v14  ;;  %v3806_v40 = vpack.c.bf16 %v3791_v44, %v3790_v39  ;;  %v3459_v50 = vadd.f32 %v9381_v45, %v10942_v34 }
 0x305   : > { %v3450_v43 = vpop.f32.mrf.mxu1  ;;  %v3749_v1 = vadd.f32 %v10957_v49, %v3726_v24  ;;  %v3724_v19 = vadd.f32 %v3675_v51, %v3435_v18  ;;  %v3778_v56 = vadd.f32 %v3762_v20, %v3746_v16  ;;  %v3796_v59 = vmax.f32 %v3780_v52, 0.0 }
 0x306   : > { %3832 = vst.msk [vmem:[#allocation4 + $0x20] sm:$0xff] %vm2296_vm10, %v3816_v15  ;;  %3833 = vst.msk [vmem:[#allocation4 + $0x28] sm:$0xff] %vm2296_vm10, %v3817_v38  ;;  %v3814_v46 = vunpack.c.l.bf16 %v3806_v40  ;;  %v3815_v35 = vunpack.c.h.bf16 %v3806_v40  ;;  %v3451_v31 = vadd.f32 %v3450_v43, %v10944_v58  ;;  %v3769_v14 = vunpack.c.h.bf16 %v10574_v23 }
 0x307   : > { %v9384_v29 = vpop.f32.mrf.mxu1  ;;  %v9398_v7 = vpop.f32.mrf.mxu0  ;;  %v3781_v10 = vadd.f32 %v3765_v25, %v3749_v1  ;;  %v3747_v63 = vadd.f32 %v10957_v49, %v3724_v19  ;;  %v3794_v48 = vmax.f32 %v3778_v56, 0.0  ;;  %v3767_v34 = vunpack.c.h.bf16 %v10583_v53 }
 0x308   : > { %3830 = vst.msk [vmem:[#allocation4 + $0x10] sm:$0xff] %vm2296_vm10, %v3814_v46  ;;  %3831 = vst.msk [vmem:[#allocation4 + $0x18] sm:$0xff] %vm2296_vm10, %v3815_v35  ;;  %v3729_v21 = vadd.f32 %v9398_v7, %v3456_v0  ;;  %v3472_v17 = vadd.f32 %v9384_v29, %v10946_v26  ;;  %v3772_v7 = vunpack.c.l.bf16 %v10604_v37 }
 0x309   : > { %v3463_v47 = vpop.f32.mrf.mxu1  ;;  %v3688_v3 = vpop.f32.mrf.mxu0  ;;  %v3797_v6 = vmax.f32 %v3781_v10, 0.0  ;;  %v3779_v32 = vadd.f32 %v3763_v12, %v3747_v63 }
 0x30a   : > { %v3727_v61 = vadd.f32 %v3688_v3, %v3448_v36  ;;  %v3752_v30 = vadd.f32 %v10957_v49, %v3729_v21  ;;  %v3464_v24 = vadd.f32 %v3463_v47, %v10948_v5 }
 0x30b   : > { %v9399_v60 = vpop.f32.mrf.mxu0  ;;  %v3809_v62 = vpack.c.bf16 %v3797_v6, %v3796_v59  ;;  %v3795_v27 = vmax.f32 %v3779_v32, 0.0  ;;  %v9385_v55 = vpop.f32.mrf.mxu1 }
 0x30c   : > { %v3750_v8 = vadd.f32 %v10957_v49, %v3727_v61  ;;  %v3730_v39 = vadd.f32 %v9399_v60, %v3459_v50  ;;  %v3784_v51 = vadd.f32 %v3768_v22, %v3752_v30  ;;  %v3475_v29 = vadd.f32 %v9385_v55, %v10950_v11 }
 0x30d   : > { %v3691_v44 = vpop.f32.mrf.mxu0  ;;  %v3820_v45 = vunpack.c.l.bf16 %v3809_v62  ;;  %v3821_v18 = vunpack.c.h.bf16 %v3809_v62  ;;  %v3808_v16 = vpack.c.bf16 %v3795_v27, %v3794_v48  ;;  %v3865_v58 = vld [vmem:[#allocation4 + $0x20] ss:$2 sm:$0xff]  ;;  %v3881_v26 = vld [vmem:[#allocation4 + $0x21] ss:$2 sm:$0xff]  ;;  %v3466_v25 = vpop.f32.mrf.mxu1  ;;  %v3770_v30 = vunpack.c.l.bf16 %v10616_v4 }
 0x30e   : > { %v3753_v15 = vadd.f32 %v10957_v49, %v3730_v39  ;;  %v3728_v38 = vadd.f32 %v3691_v44, %v3451_v31  ;;  %v3782_v53 = vadd.f32 %v3766_v33, %v3750_v8  ;;  %v3800_v56 = vmax.f32 %v3784_v51, 0.0 }
 0x30f   : > { %v9402_v40 = vpop.f32.mrf.mxu0  ;;  %3836 = vst.msk [vmem:[#allocation4 + $0x40] sm:$0xff] %vm2296_vm10, %v3820_v45  ;;  %3837 = vst.msk [vmem:[#allocation4 + $0x48] sm:$0xff] %vm2296_vm10, %v3821_v18  ;;  %v3818_v23 = vunpack.c.l.bf16 %v3808_v16  ;;  %v3819_v20 = vunpack.c.h.bf16 %v3808_v16  ;;  %v3863_v52 = vld [vmem:[#allocation4 + $0x10] ss:$2 sm:$0xff]  ;;  %v3879_v1 = vld [vmem:[#allocation4 + $0x11] ss:$2 sm:$0xff]  ;;  %v3467_v21 = vadd.f32 %v3466_v25, %v10952_v28  ;;  %v3773_v33 = vunpack.c.h.bf16 %v10604_v37 }
 0x310   : > { %v3733_v43 = vadd.f32 %v9402_v40, %v3472_v17  ;;  %v3785_v19 = vadd.f32 %v3769_v14, %v3753_v15  ;;  %v3751_v5 = vadd.f32 %v10957_v49, %v3728_v38  ;;  %v3988_v46 = vpack.c.bf16 %v3865_v58, %v3863_v52 }
 0x311   : > { %v3704_v0 = vpop.f32.mrf.mxu0  ;;  %v4161_v35 = vpack.c.bf16 %v3881_v26, %v3879_v1  ;;  %3834 = vst.msk [vmem:[#allocation4 + $0x30] sm:$0xff] %vm2296_vm10, %v3818_v23  ;;  %3835 = vst.msk [vmem:[#allocation4 + $0x38] sm:$0xff] %vm2296_vm10, %v3819_v20  ;;  %v3798_v11 = vmax.f32 %v3782_v53, 0.0  ;;  %v3771_v28 = vunpack.c.h.bf16 %v10616_v4  ;;  %v9834_v4 = vld [vmem:[%s12222_s2 + $0x18] sm:$0xff]   ;;  %v3910_v52 = vand.u32 31, %v10135_v9 }
 0x312   : > { %v3756_v12 = vadd.f32 %v10957_v49, %v3733_v43  ;;  %v3731_v36 = vadd.f32 %v3704_v0, %v3464_v24  ;;  %v3801_v10 = vmax.f32 %v3785_v19, 0.0  ;;  %v3783_v63 = vadd.f32 %v3767_v34, %v3751_v5  ;;  %9406 = vmatprep.mubr.msk.bf16.mxu1 %vm2296_vm10, %v3988_v46  ;;  %v3847_v0 = vld [vmem:[#allocation4 + $0xf] ss:$2 sm:$0xff] }
 0x313   : > { %v9403_v47 = vpop.f32.mrf.mxu0  ;;  %9426 = vmatprep.mubr.msk.bf16.mxu0 %vm2296_vm10, %v4161_v35  ;;  %v878_v5 = vadd.s32 32, %v10135_v9  ;;  %vm11027_vm6 = vcmp.eq.s32.totalorder %v3910_v52, 0 }
 0x314   : > { %v3788_v3 = vadd.f32 %v3772_v7, %v3756_v12  ;;  %v3754_v59 = vadd.f32 %v10957_v49, %v3731_v36  ;;  %v3734_v6 = vadd.f32 %v9403_v47, %v3475_v29  ;;  %v3811_v32 = vpack.c.bf16 %v3801_v10, %v3800_v56  ;;  %v3849_v29 = vld [vmem:[#allocation4 + $0x1f] ss:$2 sm:$0xff] }
 0x315   : > { %v3799_v61 = vmax.f32 %v3783_v63, 0.0  ;;  %v3707_v50 = vpop.f32.mrf.mxu0  ;;  %v3942_v12 = vsel %vm11027_vm6, 0.0, %v3847_v0  ;;  %v3914_v7 = vand.u32 31, %v878_v5  ;;  %v12233_v5 = vmov 0  }
 0x316   : > { %v3757_v22 = vadd.f32 %v10957_v49, %v3734_v6  ;;  %v3732_v60 = vadd.f32 %v3707_v50, %v3467_v21  ;;  %v3824_v48 = vunpack.c.l.bf16 %v3811_v32  ;;  %v3825_v62 = vunpack.c.h.bf16 %v3811_v32  ;;  %v3869_v14 = vld [vmem:[#allocation4 + $0x40] ss:$2 sm:$0xff]  ;;  %v3885_v18 = vld [vmem:[#allocation4 + $0x41] ss:$2 sm:$0xff] }
 0x317   : > { %v3810_v27 = vpack.c.bf16 %v3799_v61, %v3798_v11  ;;  %v3804_v8 = vmax.f32 %v3788_v3, 0.0  ;;  %v3786_v31 = vadd.f32 %v3770_v30, %v3754_v59  ;;  %v3982_v21 = vpack.c.bf16 %v3849_v29, %v3942_v12 }
 0x318   : > { %v3789_v55 = vadd.f32 %v3773_v33, %v3757_v22  ;;  %v3755_v39 = vadd.f32 %v10957_v49, %v3732_v60  ;;  %3840 = vst.msk [vmem:[#allocation4 + $0x60] sm:$0xff] %vm2296_vm10, %v3824_v48  ;;  %3841 = vst.msk [vmem:[#allocation4 + $0x68] sm:$0xff] %vm2296_vm10, %v3825_v62  ;;  %v3867_v45 = vld [vmem:[#allocation4 + $0x30] ss:$2 sm:$0xff]  ;;  %v3883_v37 = vld [vmem:[#allocation4 + $0x31] ss:$2 sm:$0xff] }
 0x319   : > { %v3822_v44 = vunpack.c.l.bf16 %v3810_v27  ;;  %v3823_v34 = vunpack.c.h.bf16 %v3810_v27  ;;  %v3989_v24 = vpack.c.bf16 %v3869_v14, %v3867_v45  ;;  %v4162_v51 = vpack.c.bf16 %v3885_v18, %v3883_v37  ;;  %v3851_v6 = vld [vmem:[#allocation4 + $0x2f] ss:$2 sm:$0xff]  ;;  %v3853_v11 = vld [vmem:[#allocation4 + $0x3f] ss:$2 sm:$0xff]  ;;  %v3897_v48 = vld [vmem:[#allocation4 + $0x22] ss:$2 sm:$0xff] }
 0x31a   : > { %v3805_v17 = vmax.f32 %v3789_v55, 0.0  ;;  %v3787_v16 = vadd.f32 %v3771_v28, %v3755_v39  ;;  %v3802_v49 = vmax.f32 %v3786_v31, 0.0  ;;  %vm11036_vm11 = vcmp.eq.s32.totalorder %v3914_v7, 0  ;;  %v3895_v28 = vld [vmem:[#allocation4 + $0x12] ss:$2 sm:$0xff] }
 0x31b   : > { %3838 = vst.msk [vmem:[#allocation4 + $0x50] sm:$0xff] %vm2296_vm10, %v3822_v44  ;;  %3839 = vst.msk [vmem:[#allocation4 + $0x58] sm:$0xff] %vm2296_vm10, %v3823_v34  ;;  %9407 = vmatmul.mubr.msk.bf16.vlgmr.msra.gmra.mxu1 %vm2296_vm10, %v3989_v24  ;;  %9427 = vmatmul.mubr.msk.bf16.vlgmr.msra.gmra.mxu0 %vm2296_vm10, %v4162_v51  ;;  %v3983_v50 = vpack.c.bf16 %v3853_v11, %v3851_v6  ;;  %v11044_v22 = vadd.s32 24, %v10135_v9  ;;  %v3917_v44 = vand.u32 31, %v10147_v13  ;;  %v3899_v34 = vld [vmem:[#allocation4 + $0x32] ss:$2 sm:$0xff] }
 0x31c   : > { %v3813_v15 = vpack.c.bf16 %v3805_v17, %v3804_v8  ;;  %v3803_v38 = vmax.f32 %v3787_v16, 0.0  ;;  %9415 = vmatpush3.bf16.msra.mxu1 %v10935_v41  ;;  %v4259_v8 = vpack.c.bf16 %v3897_v48, %v3895_v28  ;;  %v9835_v13 = vld [vmem:[%s12232_s28 + $0x18] sm:$0xff]   ;;  %vm4427_vm2 = vmpackc.low %vm11036_vm11, %vm11036_vm11  ;;  %v11112_v55 = vld [vmem:[%s12234_s0] ss:$0 sm:$0xff]  ;;  %s8897_s0 = sshll.u32 %s12296_s4, 4 }
 0x31d   : > { %9434 = vmatprep.subr.bf16.mxu1 %v9834_v4  ;;  %v3913_v62 = vand.u32 31, %v11044_v22  ;;  %vm11058_vm13 = vcmp.eq.s32.totalorder %v3917_v44, 31  ;;  %9444 = vmatprep.subr.bf16.mxu0 %v9835_v13  ;;  %s818_s1 = scalar_lea.vmem %s12147_s27, %s8897_s0 }
 0x31e   : > { %v3828_v40 = vunpack.c.l.bf16 %v3813_v15  ;;  %v3829_v58 = vunpack.c.h.bf16 %v3813_v15  ;;  %v3812_v23 = vpack.c.bf16 %v3803_v38, %v3802_v49  ;;  %9445 = vmatpush3.bf16.msra.mxu0 %v9835_v13  ;;  %v9836_v49 = vld [vmem:[%s12232_s28 + $0x10] sm:$0xff]   ;;  %v9837_v15 = vld [vmem:[%s12232_s28 + $0x8] sm:$0xff]   ;;  %vm4543_vm4 = vmpackc.low %vm11058_vm13, %vm11058_vm13 }
 0x31f   : > { %v3873_v43 = vld [vmem:[#allocation4 + $0x60] ss:$2 sm:$0xff]  ;;  %v3889_v41 = vld [vmem:[#allocation4 + $0x61] ss:$2 sm:$0xff]  ;;  %vm11049_vm3 = vcmp.eq.s32.totalorder %v3913_v62, 31  ;;  %9446 = vmatprep.subr.bf16.mxu0 %v9836_v49  ;;  %v11078_v38 = vld [vmem:[%s12232_s28 + $0x28] sm:$0xff]  }
 0x320   : > { %3844 = vst.msk [vmem:[#allocation4 + $0x80] sm:$0xff] %vm2296_vm10, %v3828_v40  ;;  %3845 = vst.msk [vmem:[#allocation4 + $0x88] sm:$0xff] %vm2296_vm10, %v3829_v58  ;;  %v3826_v20 = vunpack.c.l.bf16 %v3812_v23  ;;  %v3827_v53 = vunpack.c.h.bf16 %v3812_v23  ;;  %v9839_v40 = vld [vmem:[%s12232_s28] sm:$0xff]   ;;  %v4551_v48 = vsel %vm4543_vm4, 65537, %v12233_v5  ;;  %vm12249_vm4 = vcmp.ne.s16.totalorder %v10198_v42, 0 }
 0x321   : > { %vm4539_vm14 = vmpackc.low %vm11049_vm3, %vm11049_vm3 }
 0x322   : > { %3842 = vst.msk [vmem:[#allocation4 + $0x70] sm:$0xff] %vm2296_vm10, %v3826_v20  ;;  %3843 = vst.msk [vmem:[#allocation4 + $0x78] sm:$0xff] %vm2296_vm10, %v3827_v53  ;;  %v3871_v1 = vld [vmem:[#allocation4 + $0x50] ss:$2 sm:$0xff]  ;;  %v3887_v26 = vld [vmem:[#allocation4 + $0x51] ss:$2 sm:$0xff]  ;;  %9447 = vmatpush3.bf16.msra.mxu0 %v9836_v49 }
 0x323   : > { %v3990_v25 = vpack.c.bf16 %v3873_v43, %v3871_v1  ;;  %v4163_v19 = vpack.c.bf16 %v3889_v41, %v3887_v26  ;;  %v3855_v3 = vld [vmem:[#allocation4 + $0x4f] ss:$2 sm:$0xff]  ;;  %v3857_v32 = vld [vmem:[#allocation4 + $0x5f] ss:$2 sm:$0xff]  ;;  %v3901_v31 = vld [vmem:[#allocation4 + $0x42] ss:$2 sm:$0xff]  ;;  %9468 = vmatprep.subr.bf16.mxu0 %v11078_v38 }
 0x324   : > { %v3946_v61 = vsel %vm11036_vm11, 0.0, %v3855_v3  ;;  %v3977_v39 = vsel %vm11049_vm3, 0.0, %v3901_v31  ;;  %v3903_v37 = vld [vmem:[#allocation4 + $0x52] ss:$2 sm:$0xff] }
 0x325   : > { %9410 = vmatprep.mubr.msk.bf16.mxu1 %vm2296_vm10, %v3990_v25  ;;  %9430 = vmatprep.mubr.msk.bf16.mxu0 %vm2296_vm10, %v4163_v19  ;;  %v3984_v30 = vpack.c.bf16 %v3857_v32, %v3946_v61  ;;  %v4260_v45 = vpack.c.bf16 %v3977_v39, %v3899_v34  ;;  %v4547_v61 = vsel %vm4539_vm14, 65537, %v12233_v5 }
 0x326   : > { %v4579_v39 = vshrl.u32 %v4547_v61, 16 }
 0x327   : > { %v3877_v35 = vld [vmem:[#allocation4 + $0x80] ss:$2 sm:$0xff]  ;;  %v3893_v10 = vld [vmem:[#allocation4 + $0x81] ss:$2 sm:$0xff] }
 0x328   : > { %v3909_v17 = vld [vmem:[#allocation4 + $0x82] ss:$2 sm:$0xff] }
 0x329   : > { %v3875_v36 = vld [vmem:[#allocation4 + $0x70] ss:$2 sm:$0xff]  ;;  %v3891_v56 = vld [vmem:[#allocation4 + $0x71] ss:$2 sm:$0xff]  ;;  %v3981_v51 = vsel %vm11058_vm13, 0.0, %v3909_v17 }
 0x32a   : > { %v3991_v63 = vpack.c.bf16 %v3877_v35, %v3875_v36  ;;  %v4164_v47 = vpack.c.bf16 %v3893_v10, %v3891_v56  ;;  %v3859_v33 = vld [vmem:[#allocation4 + $0x6f] ss:$2 sm:$0xff]  ;;  %v3861_v60 = vld [vmem:[#allocation4 + $0x7f] ss:$2 sm:$0xff]  ;;  %v3905_v14 = vld [vmem:[#allocation4 + $0x62] ss:$2 sm:$0xff] }
 0x32b   : > { %v3985_v27 = vpack.c.bf16 %v3861_v60, %v3859_v33  ;;  %v4261_v18 = vpack.c.bf16 %v3905_v14, %v3903_v37  ;;  %v3907_v24 = vld [vmem:[#allocation4 + $0x72] ss:$2 sm:$0xff]  ;;  %v4435_v10 = vsel %vm4427_vm2, 65537, %v12233_v5 }
 0x32c   : > { %9411 = vmatmul.mubr.msk.bf16.gmra.mxu1 %vm2296_vm10, %v3991_v63  ;;  %9431 = vmatmul.mubr.msk.bf16.gmra.mxu0 %vm2296_vm10, %v4164_v47  ;;  %v4483_v47 = vshrl.u32 %v4435_v10, 16  ;;  %v4479_v11 = vshll.u32 %v4435_v10, 16 }
 0x32d   : > { %9416 = vmatprep.mubr.msk.bf16.mxu1 %vm2296_vm10, %v3982_v21 }
 0x32e   : > { %v11107_v28 = vrot.slane %v4479_v11, 5 }
 0x334   : > { %9417 = vmatmul.mubr.msk.bf16.vlgmr.msra.gmra.mxu1 %vm2296_vm10, %v3983_v50 }
 0x335   : > { %9435 = vmatpush3.bf16.msra.mxu1 %v9834_v4  ;;  %9420 = vmatprep.mubr.msk.bf16.mxu1 %vm2296_vm10, %v3984_v30  ;;  %v4262_v4 = vpack.c.bf16 %v3981_v51, %v3907_v24  ;;  %v4485_v30 = vrot.slane %v4483_v47, 4 }
 0x336   : > { %9456 = vmatprep.subr.bf16.mxu1 %v9837_v15 }
 0x337   : > { %v4486_v37 = vor.u32 %v4485_v30, %v11107_v28 }
 0x33c   : > { %9421 = vmatmul.mubr.msk.bf16.gmra.mxu1 %vm2296_vm10, %v3985_v27 }
 0x33d   : > { %9436 = vmatprep.mubr.msk.bf16.mxu1 %vm2296_vm10, %v4259_v8 }
 0x344   : > { %9437 = vmatmul.mubr.msk.bf16.vlgmr.msra.gmra.mxu1 %vm2296_vm10, %v4260_v45 }
 0x345   : > { %9440 = vmatprep.mubr.msk.bf16.mxu1 %vm2296_vm10, %v4261_v18  ;;  %9457 = vmatpush3.bf16.msra.mxu1 %v9837_v15  ;;  %v4615_v18 = vshrl.u32 %v4551_v48, 16 }
 0x346   : > { %9458 = vmatprep.subr.bf16.mxu1 %v9839_v40 }
 0x349   : > { %9459 = vmatpush3.bf16.msra.mxu1 %v9839_v40  ;;  %v4581_v40 = vrot.slane %v4579_v39, 7 }
 0x34c   : > { %9441 = vmatmul.mubr.msk.bf16.gmra.mxu1 %vm2296_vm10, %v4262_v4  ;;  %vm4423_vm10 = vmpackc.low %vm11027_vm6, %vm11027_vm6 }
 0x34d   : > { %v4431_v0 = vsel %vm4423_vm10, 65537, %v12233_v5 }
 0x34e   : > { %v4440_v29 = vshll.u32 %v4431_v0, 16  ;;  %v4443_v12 = vshrl.u32 %v4431_v0, 16  ;;  %v4618_v0 = vshll.u32 %v4551_v48, 16 }
 0x350   : > { %v11096_v46 = vrot.slane %v4440_v29, 5  ;;  %v4445_v63 = vrot.slane %v4443_v12, 4 }
 0x352   : > { %v4446_v50 = vor.u32 %v4445_v63, %v11096_v46  ;;  %v12235_v63 = vld [vmem:[#allocation10_spill] sm:$0xff]  ;;  %vm12170_vm6 = vcmp.ne.s16.totalorder %v11096_v46, 0 }
 0x354   : > { %v11114_v45 = vrot.slane %v4446_v50, 4  ;;  %v4586_v50 = vrot.slane %v4581_v40, 4 }
 0x3db   : > { %v9408_v58 = vpop.f32.mrf.mxu1  ;;  %v9428_v25 = vpop.f32.mrf.mxu0 }
 0x3dd   : > { %v4047_v23 = vpop.f32.mrf.mxu1  ;;  %v4220_v7 = vpop.f32.mrf.mxu0 }
 0x3df   : > { %v9409_v20 = vpop.f32.mrf.mxu1  ;;  %v9429_v21 = vpop.f32.mrf.mxu0 }
 0x3e1   : > { %v4050_v53 = vpop.f32.mrf.mxu1  ;;  %v4223_v33 = vpop.f32.mrf.mxu0 }
 0x3ec   : > { %v9412_v43 = vpop.f32.mrf.mxu1  ;;  %v9432_v8 = vpop.f32.mrf.mxu0 }
 0x3ee   : > { %v4063_v52 = vpop.f32.mrf.mxu1  ;;  %v4236_v13 = vpop.f32.mrf.mxu0 }
 0x3f0   : > { %v11084_v1 = vpop.f32.mrf.mxu1 }
 0x3f2   : > { %v11086_v26 = vpop.f32.mrf.mxu1 }
 0x3f4   : > { %v9418_v41 = vpop.f32.mrf.mxu1 }
 0x3f5   : > { %v4139_v6 = vadd.f32 %v9418_v41, %v9408_v58  ;;  %v4582_v58 = vshll.u32 %v4547_v61, 16 }
 0x3f6   : > { %v4130_v19 = vpop.f32.mrf.mxu1 }
 0x3f7   : > { %v4131_v32 = vadd.f32 %v4130_v19, %v4047_v23  ;;  %v4253_v27 = vadd.f32 %v9428_v25, %v4139_v6  ;;  %v11119_v25 = vrot.slane %v4486_v37, 4  ;;  %v4617_v19 = vrot.slane %v4615_v18, 7 }
 0x3f8   : > { %v9419_v35 = vpop.f32.mrf.mxu1 }
 0x3f9   : > { %v4142_v62 = vadd.f32 %v9419_v35, %v9409_v20  ;;  %v4251_v34 = vadd.f32 %v4220_v7, %v4131_v32  ;;  %v4622_v30 = vrot.slane %v4617_v19, 4 }
 0x3fa   : > { %v4133_v36 = vpop.f32.mrf.mxu1 }
 0x3fb   : > { %v4134_v14 = vadd.f32 %v4133_v36, %v4050_v53  ;;  %v4254_v4 = vadd.f32 %v9429_v21, %v4142_v62  ;;  %v9433_v36 = vpop.f32.mrf.mxu0  ;;  %v4452_v21 = vsel %vm10209_vm12, %v11114_v45, %v12235_v63  ;;  %vm11174_vm3 = vcmp.ne.s16.totalorder %v4622_v30, 0 }
 0x3fc   : > { %v9422_v56 = vpop.f32.mrf.mxu1  ;;  %vm11156_vm11 = vcmp.ne.s16.totalorder %v4452_v21, 0 }
 0x3fd   : > { %v4155_v16 = vadd.f32 %v9422_v56, %v9412_v43  ;;  %v4252_v41 = vadd.f32 %v4223_v33, %v4134_v14  ;;  %v9840_v14 = vld [vmem:[%s12232_s28 + $0x20] sm:$0xff]  }
 0x3fe   : > { %v4146_v3 = vpop.f32.mrf.mxu1 }
 0x3ff   : > { %v4147_v49 = vadd.f32 %v4146_v3, %v4063_v52  ;;  %v4257_v7 = vadd.f32 %v9432_v8, %v4155_v16  ;;  %v4584_v3 = vor.u32 %v4582_v58, %v4581_v40  ;;  %v4239_v8 = vpop.f32.mrf.mxu0 }
 0x400   : > { %v9423_v59 = vpop.f32.mrf.mxu1 }
 0x401   : > { %v4158_v43 = vadd.f32 %v9423_v59, %v11084_v1  ;;  %v4255_v10 = vadd.f32 %v4236_v13, %v4147_v49  ;;  %v4492_v13 = vsel %vm10209_vm12, %v11119_v25, %v12235_v63  ;;  %v11169_v49 = vsel %vm10191_vm9, %v4586_v50, %v10198_v42 }
 0x402   : > { %v4149_v60 = vpop.f32.mrf.mxu1  ;;  %vm11190_vm2 = vcmp.ne.s16.totalorder %v4492_v13, 0  ;;  %vm4627_vm14 = vcmp.ne.s16.totalorder %v11169_v49, 0 }
 0x403   : > { %v4150_v1 = vadd.f32 %v4149_v60, %v11086_v26  ;;  %v4258_v61 = vadd.f32 %v9433_v36, %v4158_v43  ;;  %v4413_v60 = vld [vmem:[#allocation5 + $0x4] sm:$0x8] }
 0x404   : > { %v9438_v31 = vpop.f32.mrf.mxu1 }
 0x405   : > { %v4351_v44 = vadd.f32 %v9438_v31, %v4253_v27  ;;  %v11136_v27 = vor.u32 %v4618_v0, %v4617_v19 }
 0x406   : > { %v4318_v17 = vpop.f32.mrf.mxu1 }
 0x407   : > { %v4366_v24 = vadd.f32 %v11112_v55, %v4351_v44  ;;  %v4349_v51 = vadd.f32 %v4318_v17, %v4251_v34  ;;  %v4482_v44 = vsel %vm10209_vm12, %v10218_v54, %v11107_v28  ;;  %v12237_v34 = vld [vmem:[#allocation12_spill] sm:$0xff] }
 0x408   : > { %v9439_v15 = vpop.f32.mrf.mxu1  ;;  %v4585_v37 = vsel %vm10191_vm9, %v12237_v34, %v4584_v3  ;;  %vm11178_vm13 = vcmp.ne.s16.totalorder %v4482_v44, 0 }
 0x409   : > { %v8932_v23 = vpack.c.bf16 %v4366_v24, %v4366_v24  ;;  %v4364_v20 = vadd.f32 %v11112_v55, %v4349_v51  ;;  %v4352_v53 = vadd.f32 %v9439_v15, %v4254_v4  ;;  %v4527_v4 = vsel %vm12170_vm6, 0, %v4413_v60 }
 0x40a   : > { %v4321_v35 = vpop.f32.mrf.mxu1  ;;  %vm11182_vm10 = vcmp.ne.s16.totalorder %v4585_v37, 0 }
 0x40b   : > { %4407 = vst.msk [vmem:[#allocation5 + $0x10] sm:$0xf] %vm4404_vm7, %v8932_v23  ;;  %v8930_v29 = vpack.c.bf16 %v4364_v20, %v4364_v20  ;;  %v4367_v52 = vadd.f32 %v11112_v55, %v4352_v53  ;;  %v4350_v12 = vadd.f32 %v4321_v35, %v4252_v41  ;;  %v4422_v23 = vld [vmem:[#allocation5 + $0x28] sm:$0x1] }
 0x40c   : > { %v9442_v56 = vpop.f32.mrf.mxu1 }
 0x40d   : > { %4405 = vst.msk [vmem:[#allocation5 + $0x8] sm:$0xf] %vm4404_vm7, %v8930_v29  ;;  %v8933_v6 = vpack.c.bf16 %v4367_v52, %v4367_v52  ;;  %v4365_v11 = vadd.f32 %v11112_v55, %v4350_v12  ;;  %v4355_v59 = vadd.f32 %v9442_v56, %v4257_v7  ;;  %v11138_v31 = vpack.c.bf16 %v4367_v52, %v4366_v24 }
 0x40e   : > { %v4334_v32 = vpop.f32.mrf.mxu1  ;;  %v4256_v24 = vadd.f32 %v4239_v8, %v4150_v1  ;;  %v4621_v12 = vsel %vm10191_vm9, %v12237_v34, %v11136_v27  ;;  %v11201_v7 = vsel %vm11174_vm3, 0, %v4422_v23 }
 0x40f   : > { %4408 = vst.msk [vmem:[#allocation5 + $0x14] sm:$0xf] %vm4404_vm7, %v8933_v6  ;;  %v11133_v33 = vpack.c.bf16 %v4365_v11, %v4364_v20  ;;  %v8931_v48 = vpack.c.bf16 %v4365_v11, %v4365_v11  ;;  %v4370_v62 = vadd.f32 %v11112_v55, %v4355_v59  ;;  %v4353_v26 = vadd.f32 %v4334_v32, %v4255_v10 }
 0x410   : > { %v9443_v39 = vpop.f32.mrf.mxu1  ;;  %vm11227_vm6 = vcmp.ne.s16.totalorder %v4621_v12, 0 }
 0x411   : > { %4406 = vst.msk [vmem:[#allocation5 + $0xc] sm:$0xf] %vm4404_vm7, %v8931_v48  ;;  %v8936_v18 = vpack.c.bf16 %v4370_v62, %v4370_v62  ;;  %v4368_v17 = vadd.f32 %v11112_v55, %v4353_v26  ;;  %v4356_v16 = vadd.f32 %v9443_v39, %v4258_v61  ;;  %9448 = vmatprep.mubr.msk.bf16.mxu0 %vm4662_vm8, %v11133_v33 }
 0x412   : > { %v4337_v51 = vpop.f32.mrf.mxu1  ;;  %9449 = vmatmul.mubr.msk.bf16.vlgmr.msra.gmra.mxu0 %vm4662_vm8, %v11138_v31  ;;  %v4416_v41 = vld [vmem:[#allocation5 + $0x10] sm:$0xf] }
 0x413   : > { %4411 = vst.msk [vmem:[#allocation5 + $0x20] sm:$0xf] %vm4404_vm7, %v8936_v18  ;;  %v8934_v15 = vpack.c.bf16 %v4368_v17, %v4368_v17  ;;  %v4371_v40 = vadd.f32 %v11112_v55, %v4356_v16  ;;  %v4354_v58 = vadd.f32 %v4337_v51, %v4256_v24  ;;  %9469 = vmatpush3.bf16.msra.mxu0 %v11078_v38  ;;  %v4634_v56 = vsel %vm10225_vm0, 0, %v4416_v41 }
 0x414   : > { %9470 = vmatprep.subr.bf16.mxu0 %v9840_v14  ;;  %v4414_v53 = vld [vmem:[#allocation5 + $0x8] sm:$0xf]  ;;  %v4530_v32 = vsel %vm10245_vm1, 0, %v4416_v41 }
 0x415   : > { %4409 = vst.msk [vmem:[#allocation5 + $0x18] sm:$0xf] %vm4404_vm7, %v8934_v15  ;;  %v8937_v0 = vpack.c.bf16 %v4371_v40, %v4371_v40  ;;  %v4369_v38 = vadd.f32 %v11112_v55, %v4354_v58  ;;  %v4528_v43 = vsel %vm11156_vm11, 0, %v4414_v53  ;;  %v11210_v21 = vpack.c.bf16 %v4371_v40, %v4370_v62 }
 0x416   : > { %v8523_v29 = vcombine.low %v4527_v4, %v4528_v43  ;;  %v4417_v52 = vld [vmem:[#allocation5 + $0x14] sm:$0xf]  ;;  %v4632_v61 = vsel %vm12249_vm4, 0, %v4414_v53  ;;  %vm12252_vm4 = vcmp.ne.s16.totalorder %v10218_v54, 0 }
 0x417   : > { %4412 = vst.msk [vmem:[#allocation5 + $0x24] sm:$0xf] %vm4404_vm7, %v8937_v0  ;;  %v11204_v55 = vpack.c.bf16 %v4369_v38, %v4368_v17  ;;  %v8935_v36 = vpack.c.bf16 %v4369_v38, %v4369_v38  ;;  %9471 = vmatpush3.bf16.msra.mxu0 %v9840_v14  ;;  %v4635_v10 = vsel %vm11182_vm10, 0, %v4417_v52  ;;  %v4531_v27 = vsel %vm11178_vm13, 0, %v4417_v52 }
 0x418   : > { %v4415_v3 = vld [vmem:[#allocation5 + $0xc] sm:$0xf]  ;;  %v4764_v1 = vshrl.u32 %v8523_v29, 16  ;;  %v4767_v6 = vshll.u32 %v8523_v29, 16  ;;  %v8539_v11 = vcombine.low %v4634_v56, %v4635_v10  ;;  %v8542_v14 = vcombine.low %v11201_v7, %v11201_v7 }
 0x419   : > { %4410 = vst.msk [vmem:[#allocation5 + $0x1c] sm:$0xf] %vm4404_vm7, %v8935_v36  ;;  %9452 = vmatprep.mubr.msk.bf16.mxu0 %vm4662_vm8, %v11204_v55  ;;  %v4529_v59 = vsel %vm10245_vm1, 0, %v4415_v3  ;;  %v4633_v50 = vsel %vm10225_vm0, 0, %v4415_v3 }
 0x41a   : > { %9453 = vmatmul.mubr.msk.bf16.gmra.mxu0 %vm4662_vm8, %v11210_v21  ;;  %v8524_v30 = vcombine.low %v4529_v59, %v4530_v32  ;;  %v4766_v48 = vrot.slane %v4764_v1, 3  ;;  %v4769_v62 = vrot.slane %v4767_v6, 4  ;;  %v8538_v26 = vcombine.low %v4632_v61, %v4633_v50  ;;  %v4420_v60 = vld [vmem:[#allocation5 + $0x20] sm:$0xf] }
 0x41b   : > { %v4932_v8 = vshll.u32 %v8539_v11, 16  ;;  %v4534_v17 = vsel %vm10245_vm1, 0, %v4420_v60  ;;  %v4638_v16 = vsel %vm10225_vm0, 0, %v4420_v60 }
 0x41c   : > { %v4772_v44 = vshrl.u32 %v8524_v30, 16  ;;  %v4775_v37 = vshll.u32 %v8524_v30, 16  ;;  %v4418_v18 = vld [vmem:[#allocation5 + $0x18] sm:$0xf]  ;;  %v4770_v24 = vor.u32 %v4769_v62, %v4766_v48  ;;  %v4925_v4 = vshrl.u32 %v8538_v26, 16 }
 0x41d   : > { %v4532_v51 = vsel %vm11190_vm2, 0, %v4418_v18  ;;  %v4927_v13 = vshll.u32 %v8538_v26, 16  ;;  %v4934_v23 = vrot.slane %v4932_v8, 1  ;;  %v4636_v0 = vsel %vm4627_vm14, 0, %v4418_v18 }
 0x41e   : > { %v4774_v15 = vrot.slane %v4772_v44, 3  ;;  %v4777_v40 = vrot.slane %v4775_v37, 4  ;;  %v8525_v58 = vcombine.low %v4531_v27, %v4532_v51  ;;  %v4421_v53 = vld [vmem:[#allocation5 + $0x24] sm:$0xf]  ;;  %v4936_v30 = vshrl.u32 %v8539_v11, 16 }
 0x41f   : > { %v4929_v41 = vrot.slane %v4927_v13, 1  ;;  %v4639_v38 = vsel %vm11227_vm6, 0, %v4421_v53  ;;  %v4535_v43 = vsel %vm12252_vm4, 0, %v4421_v53  ;;  %vm12255_vm4 = vcmp.ne.s16.totalorder %v11096_v46, 0 }
 0x420   : > { %v4778_v29 = vor.u32 %v4777_v40, %v4774_v15  ;;  %v4781_v52 = vshrl.u32 %v8525_v58, 16  ;;  %v4784_v12 = vshll.u32 %v8525_v58, 16  ;;  %v4419_v7 = vld [vmem:[#allocation5 + $0x1c] sm:$0xf]  ;;  %v8541_v36 = vcombine.low %v4638_v16, %v4639_v38 }
 0x421   : > { %v4930_v56 = vor.u32 %v4929_v41, %v4925_v4  ;;  %v4637_v10 = vsel %vm10225_vm0, 0, %v4419_v7  ;;  %v4533_v3 = vsel %vm10245_vm1, 0, %v4419_v7  ;;  %v8527_v1 = vcombine.low %v4535_v43, %v4535_v43  ;;  %v9841_v7 = vld [vmem:[%s12253_s11 + $0x18] sm:$0xff]  }
 0x422   : > { %v4779_v6 = vsel %vm1654_vm5, %v4770_v24, %v4778_v29  ;;  %v4783_v59 = vrot.slane %v4781_v52, 3  ;;  %v4786_v32 = vrot.slane %v4784_v12, 4  ;;  %v8540_v61 = vcombine.low %v4636_v0, %v4637_v10  ;;  %9480 = vmatprep.subr.bf16.mxu1 %v9841_v7  ;;  %v11277_v10 = vld [vmem:[%s12253_s11 + $0x28] sm:$0xff]  }
 0x423   : > { %9460 = vmatprep.mubr.msk.bf16.mxu1 %vm4662_vm8, %v4779_v6  ;;  %v4935_v50 = vsel %vm1904_vm15, %v4930_v56, %v4934_v23  ;;  %v8526_v48 = vcombine.low %v4533_v3, %v4534_v17  ;;  %v4948_v62 = vshll.u32 %v8541_v36, 16  ;;  %v4799_v27 = vshrl.u32 %v8527_v1, 16  ;;  %v9843_v56 = vld [vmem:[%s12253_s11 + $0x8] sm:$0xff]   ;;  %v9845_v3 = vld [vmem:[%s12253_s11] sm:$0xff]  }
 0x424   : > { %9472 = vmatprep.mubr.msk.bf16.mxu0 %vm4662_vm8, %v4935_v50  ;;  %v4787_v26 = vor.u32 %v4786_v32, %v4783_v59  ;;  %v4940_v60 = vshll.u32 %v8540_v61, 16  ;;  %v4802_v8 = vshll.u32 %v8527_v1, 16  ;;  %v4938_v18 = vor.u32 %v4936_v30, %v4934_v23  ;;  %9492 = vmatprep.subr.bf16.mxu0 %v9843_v56 }
 0x425   : > { %v4790_v44 = vshrl.u32 %v8526_v48, 16  ;;  %v4793_v37 = vshll.u32 %v8526_v48, 16  ;;  %v4944_v51 = vshrl.u32 %v8540_v61, 16  ;;  %v4950_v11 = vrot.slane %v4948_v62, 1 }
 0x426   : > { %v4788_v16 = vsel %vm1654_vm5, %v4778_v29, %v4787_v26  ;;  %v4942_v24 = vrot.slane %v4940_v60, 1  ;;  %v4956_v17 = vshll.u32 %v8542_v14, 16  ;;  %v4801_v58 = vrot.slane %v4799_v27, 3 }
 0x427   : > { %9461 = vmatmul.mubr.msk.bf16.vlgmr.msra.gmra.mxu1 %vm4662_vm8, %v4788_v16  ;;  %v4792_v4 = vrot.slane %v4790_v44, 3  ;;  %v4795_v13 = vrot.slane %v4793_v37, 4  ;;  %v4804_v53 = vrot.slane %v4802_v8, 4  ;;  %v4952_v0 = vshrl.u32 %v8541_v36, 16  ;;  %v9842_v36 = vld [vmem:[%s12253_s11 + $0x10] sm:$0xff]  }
 0x428   : > { %v4943_v15 = vsel %vm1904_vm15, %v4938_v18, %v4942_v24  ;;  %v4946_v40 = vor.u32 %v4944_v51, %v4942_v24  ;;  %v4958_v14 = vrot.slane %v4956_v17, 1  ;;  %9481 = vmatpush3.bf16.msra.mxu1 %v9841_v7  ;;  %v8549_v8 = vld [vmem:[%s12254_s5] ss:$0 sm:$0xff] }
 0x429   : > { %9473 = vmatmul.mubr.msk.bf16.vlgmr.msra.gmra.mxu0 %vm4662_vm8, %v4943_v15  ;;  %v4796_v41 = vor.u32 %v4795_v13, %v4792_v4  ;;  %v4805_v43 = vor.u32 %v4804_v53, %v4801_v58  ;;  %v4954_v29 = vor.u32 %v4952_v0, %v4950_v11  ;;  %9482 = vmatprep.subr.bf16.mxu1 %v9842_v36 }
 0x42a   : > { %v4951_v23 = vsel %vm1904_vm15, %v4946_v40, %v4950_v11  ;;  %9493 = vmatpush3.bf16.msra.mxu0 %v9843_v56 }
 0x42b   : > { %v4797_v38 = vsel %vm1654_vm5, %v4787_v26, %v4796_v41  ;;  %9476 = vmatprep.mubr.msk.bf16.mxu0 %vm4662_vm8, %v4951_v23  ;;  %v4806_v52 = vsel %vm1654_vm5, %v4796_v41, %v4805_v43  ;;  %v4959_v12 = vsel %vm1904_vm15, %v4954_v29, %v4958_v14  ;;  %9494 = vmatprep.subr.bf16.mxu0 %v9845_v3 }
 0x42c   : > { %9464 = vmatprep.mubr.msk.bf16.mxu1 %vm4662_vm8, %v4797_v38  ;;  %9483 = vmatpush3.bf16.msra.mxu1 %v9842_v36 }
 0x42d   : > { %9504 = vmatprep.subr.bf16.mxu1 %v11277_v10 }
 0x42e   : > { %9495 = vmatpush3.bf16.msra.mxu0 %v9845_v3 }
 0x42f   : > { %9465 = vmatmul.mubr.msk.bf16.gmra.mxu1 %vm4662_vm8, %v4806_v52 }
 0x431   : > { %9477 = vmatmul.mubr.msk.bf16.gmra.mxu0 %vm4662_vm8, %v4959_v12 }
 0x4d2   : > { %v9450_v1 = vpop.f32.mrf.mxu0 }
 0x4d4   : > { %v4709_v6 = vpop.f32.mrf.mxu0 }
 0x4d6   : > { %v9451_v59 = vpop.f32.mrf.mxu0 }
 0x4d8   : > { %v4712_v32 = vpop.f32.mrf.mxu0 }
 0x4da   : > { %v9454_v61 = vpop.f32.mrf.mxu0 }
 0x4dc   : > { %v4725_v50 = vpop.f32.mrf.mxu0 }
 0x4de   : > { %v9455_v30 = vpop.f32.mrf.mxu0 }
 0x4e0   : > { %v4728_v48 = vpop.f32.mrf.mxu0 }
 0x4e7   : > { %v9462_v62 = vpop.f32.mrf.mxu1 }
 0x4e8   : > { %v4874_v26 = vadd.f32 %v9462_v62, %v9450_v1 }
 0x4e9   : > { %v4865_v60 = vpop.f32.mrf.mxu1  ;;  %v9474_v27 = vpop.f32.mrf.mxu0 }
 0x4ea   : > { %v4866_v44 = vadd.f32 %v4865_v60, %v4709_v6  ;;  %v5051_v37 = vadd.f32 %v9474_v27, %v4874_v26 }
 0x4eb   : > { %v9463_v18 = vpop.f32.mrf.mxu1  ;;  %v5018_v16 = vpop.f32.mrf.mxu0 }
 0x4ec   : > { %v5066_v24 = vadd.f32 %v8549_v8, %v5051_v37  ;;  %v4877_v51 = vadd.f32 %v9463_v18, %v9451_v59  ;;  %v5049_v4 = vadd.f32 %v5018_v16, %v4866_v44 }
 0x4ed   : > { %v4868_v13 = vpop.f32.mrf.mxu1  ;;  %v9475_v11 = vpop.f32.mrf.mxu0 }
 0x4ee   : > { %v5074_v17 = vmax.f32 %v5066_v24, 0.0  ;;  %v5064_v15 = vadd.f32 %v8549_v8, %v5049_v4  ;;  %v4869_v40 = vadd.f32 %v4868_v13, %v4712_v32  ;;  %v5052_v58 = vadd.f32 %v9475_v11, %v4877_v51  ;;  %v5120_v4 = vld [vmem:[#allocation5 + $0x4] sm:$0x8] }
 0x4ef   : > { %v9466_v53 = vpop.f32.mrf.mxu1  ;;  %v5021_v41 = vpop.f32.mrf.mxu0 }
 0x4f0   : > { %v8940_v23 = vpack.c.bf16 %v5074_v17, %v5074_v17  ;;  %v5072_v0 = vmax.f32 %v5064_v15, 0.0  ;;  %v5067_v38 = vadd.f32 %v8549_v8, %v5052_v58  ;;  %v4890_v43 = vadd.f32 %v9466_v53, %v9454_v61 }
 0x4f1   : > { %v5050_v29 = vadd.f32 %v5021_v41, %v4869_v40  ;;  %v4881_v14 = vpop.f32.mrf.mxu1  ;;  %v9478_v52 = vpop.f32.mrf.mxu0 }
 0x4f2   : > { %5114 = vst.msk [vmem:[#allocation5 + $0x10] sm:$0xf] %vm4404_vm7, %v8940_v23  ;;  %v8938_v12 = vpack.c.bf16 %v5072_v0, %v5072_v0  ;;  %v5075_v7 = vmax.f32 %v5067_v38, 0.0  ;;  %v4882_v36 = vadd.f32 %v4881_v14, %v4725_v50  ;;  %v5055_v56 = vadd.f32 %v9478_v52, %v4890_v43  ;;  %v5129_v14 = vld [vmem:[#allocation5 + $0x28] sm:$0x1] }
 0x4f3   : > { %v5065_v3 = vadd.f32 %v8549_v8, %v5050_v29  ;;  %v9467_v1 = vpop.f32.mrf.mxu1  ;;  %v5034_v6 = vpop.f32.mrf.mxu0 }
 0x4f4   : > { %5112 = vst.msk [vmem:[#allocation5 + $0x8] sm:$0xf] %vm4404_vm7, %v8938_v12  ;;  %v8941_v59 = vpack.c.bf16 %v5075_v7, %v5075_v7  ;;  %v5070_v32 = vadd.f32 %v8549_v8, %v5055_v56  ;;  %v4893_v62 = vadd.f32 %v9467_v1, %v9455_v30  ;;  %v5053_v60 = vadd.f32 %v5034_v6, %v4882_v36  ;;  %v9846_v30 = vld [vmem:[%s12253_s11 + $0x20] sm:$0xff]  }
 0x4f5   : > { %v5073_v26 = vmax.f32 %v5065_v3, 0.0  ;;  %v4884_v61 = vpop.f32.mrf.mxu1  ;;  %v9479_v27 = vpop.f32.mrf.mxu0  ;;  %v5081_v13 = vpack.c.bf16 %v5075_v7, %v5074_v17  ;;  %v5130_v17 = vsel %vm12255_vm4, 0, %v5120_v4  ;;  %v5147_v3 = vsel %vm11174_vm3, 0, %v5129_v14 }
 0x4f6   : > { %5115 = vst.msk [vmem:[#allocation5 + $0x14] sm:$0xf] %vm4404_vm7, %v8941_v59  ;;  %v5078_v44 = vmax.f32 %v5070_v32, 0.0  ;;  %v4885_v37 = vadd.f32 %v4884_v61, %v4728_v48  ;;  %v5056_v18 = vadd.f32 %v9479_v27, %v4893_v62  ;;  %v5068_v24 = vadd.f32 %v8549_v8, %v5053_v60 }
 0x4f7   : > { %v5080_v16 = vpack.c.bf16 %v5073_v26, %v5072_v0  ;;  %v8939_v50 = vpack.c.bf16 %v5073_v26, %v5073_v26  ;;  %v5037_v51 = vpop.f32.mrf.mxu0  ;;  %vm6182_vm4 = vcmask 523264  }
 0x4f8   : > { %v8944_v11 = vpack.c.bf16 %v5078_v44, %v5078_v44  ;;  %v5071_v15 = vadd.f32 %v8549_v8, %v5056_v18  ;;  %v5054_v40 = vadd.f32 %v5037_v51, %v4885_v37  ;;  %v5076_v58 = vmax.f32 %v5068_v24, 0.0 }
 0x4f9   : > { %5113 = vst.msk [vmem:[#allocation5 + $0xc] sm:$0xf] %vm4404_vm7, %v8939_v50  ;;  %9484 = vmatprep.mubr.msk.bf16.mxu1 %vm4662_vm8, %v5080_v16  ;;  %v5123_v0 = vld [vmem:[#allocation5 + $0x10] sm:$0xf]  ;;  %v8587_v18 = vcombine.low %v5147_v3, %v5147_v3 }
 0x4fa   : > { %5118 = vst.msk [vmem:[#allocation5 + $0x20] sm:$0xf] %vm4404_vm7, %v8944_v11  ;;  %v5079_v48 = vmax.f32 %v5071_v15, 0.0  ;;  %v5069_v53 = vadd.f32 %v8549_v8, %v5054_v40  ;;  %9485 = vmatmul.mubr.msk.bf16.vlgmr.msra.gmra.mxu1 %vm4662_vm8, %v5081_v13  ;;  %v8942_v41 = vpack.c.bf16 %v5076_v58, %v5076_v58  ;;  %v5133_v59 = vsel %vm10245_vm1, 0, %v5123_v0 }
 0x4fb   : > { %9505 = vmatpush3.bf16.msra.mxu1 %v11277_v10  ;;  %v5121_v23 = vld [vmem:[#allocation5 + $0x8] sm:$0xf]  ;;  %v5141_v10 = vsel %vm10225_vm0, 0, %v5123_v0  ;;  %v5462_v2 = vshll.u32 %v8587_v18, 16 }
 0x4fc   : > { %v8945_v38 = vpack.c.bf16 %v5079_v48, %v5079_v48  ;;  %v5077_v43 = vmax.f32 %v5069_v53, 0.0  ;;  %9506 = vmatprep.subr.bf16.mxu1 %v9846_v30  ;;  %v5131_v29 = vsel %vm11156_vm11, 0, %v5121_v23  ;;  %5116 = vst.msk [vmem:[#allocation5 + $0x18] sm:$0xf] %vm4404_vm7, %v8942_v41  ;;  %v5083_v1 = vpack.c.bf16 %v5079_v48, %v5078_v44 }
 0x4fd   : > { %v8568_v8 = vcombine.low %v5130_v17, %v5131_v29  ;;  %v5124_v52 = vld [vmem:[#allocation5 + $0x14] sm:$0xf]  ;;  %vm12256_vm11 = vcmp.ne.s16.totalorder %v10198_v42, 0 }
 0x4fe   : > { %5119 = vst.msk [vmem:[#allocation5 + $0x24] sm:$0xf] %vm4404_vm7, %v8945_v38  ;;  %v5082_v46 = vpack.c.bf16 %v5077_v43, %v5076_v58  ;;  %v8943_v12 = vpack.c.bf16 %v5077_v43, %v5077_v43  ;;  %v5142_v7 = vsel %vm11182_vm10, 0, %v5124_v52  ;;  %v5139_v19 = vsel %vm12256_vm11, 0, %v5121_v23 }
 0x4ff   : > { %9507 = vmatpush3.bf16.msra.mxu1 %v9846_v30  ;;  %v5270_v36 = vshrl.u32 %v8568_v8, 16  ;;  %v5273_v56 = vshll.u32 %v8568_v8, 16  ;;  %v8584_v28 = vcombine.low %v5141_v10, %v5142_v7  ;;  %v5134_v44 = vsel %vm11178_vm13, 0, %v5124_v52 }
 0x500   : > { %5117 = vst.msk [vmem:[#allocation5 + $0x1c] sm:$0xf] %vm4404_vm7, %v8943_v12  ;;  %9488 = vmatprep.mubr.msk.bf16.mxu1 %vm4662_vm8, %v5082_v46  ;;  %v5122_v6 = vld [vmem:[#allocation5 + $0xc] sm:$0xf]  ;;  %vm12257_vm7 = vcmp.ne.s16.totalorder %v10218_v54, 0 }
 0x501   : > { %v5132_v32 = vsel %vm10245_vm1, 0, %v5122_v6  ;;  %v5272_v62 = vrot.slane %v5270_v36, 3  ;;  %v5275_v26 = vrot.slane %v5273_v56, 4  ;;  %v5140_v20 = vsel %vm10225_vm0, 0, %v5122_v6  ;;  %v5127_v27 = vld [vmem:[#allocation5 + $0x20] sm:$0xf] }
 0x502   : > { %9489 = vmatmul.mubr.msk.bf16.gmra.mxu1 %vm4662_vm8, %v5083_v1  ;;  %v8569_v60 = vcombine.low %v5132_v32, %v5133_v59  ;;  %v8583_v61 = vcombine.low %v5139_v19, %v5140_v20  ;;  %v5438_v37 = vshll.u32 %v8584_v28, 16  ;;  %v5137_v15 = vsel %vm10245_vm1, 0, %v5127_v27 }
 0x503   : > { %v5276_v16 = vor.u32 %v5275_v26, %v5272_v62  ;;  %v5125_v51 = vld [vmem:[#allocation5 + $0x18] sm:$0xf]  ;;  %v5145_v30 = vsel %vm10225_vm0, 0, %v5127_v27  ;;  %v5442_v36 = vshrl.u32 %v8584_v28, 16 }
 0x504   : > { %v5278_v50 = vshrl.u32 %v8569_v60, 16  ;;  %v5281_v24 = vshll.u32 %v8569_v60, 16  ;;  %v5433_v4 = vshll.u32 %v8583_v61, 16  ;;  %v5135_v13 = vsel %vm11190_vm2, 0, %v5125_v51 }
 0x505   : > { %v5431_v11 = vshrl.u32 %v8583_v61, 16  ;;  %v5128_v40 = vld [vmem:[#allocation5 + $0x24] sm:$0xf]  ;;  %v8570_v48 = vcombine.low %v5134_v44, %v5135_v13  ;;  %v5143_v41 = vsel %vm4627_vm14, 0, %v5125_v51  ;;  %v5440_v23 = vrot.slane %v5438_v37, 1 }
 0x506   : > { %v5280_v25 = vrot.slane %v5278_v50, 3  ;;  %v5283_v58 = vrot.slane %v5281_v24, 4  ;;  %v5435_v53 = vrot.slane %v5433_v4, 1  ;;  %v5146_v35 = vsel %vm11227_vm6, 0, %v5128_v40 }
 0x507   : > { %v5126_v17 = vld [vmem:[#allocation5 + $0x1c] sm:$0xf]  ;;  %v5138_v0 = vsel %vm12257_vm7, 0, %v5128_v40  ;;  %v5287_v14 = vshrl.u32 %v8570_v48, 16  ;;  %v5290_v52 = vshll.u32 %v8570_v48, 16  ;;  %v8586_v49 = vcombine.low %v5145_v30, %v5146_v35 }
 0x508   : > { %v5284_v38 = vor.u32 %v5283_v58, %v5280_v25  ;;  %v5144_v43 = vsel %vm10225_vm0, 0, %v5126_v17  ;;  %v5436_v29 = vor.u32 %v5435_v53, %v5431_v11  ;;  %v5136_v46 = vsel %vm10245_vm1, 0, %v5126_v17  ;;  %v9847_v58 = vld [vmem:[%s12133_s13 + $0x18] sm:$0xff]   ;;  %v9848_v48 = vld [vmem:[%s12133_s13 + $0x8] sm:$0xff]   ;;  %v9849_v53 = vld [vmem:[%s12133_s13 + $0x10] sm:$0xff]  }
 0x509   : > { %v8585_v8 = vcombine.low %v5143_v41, %v5144_v43  ;;  %v5289_v10 = vrot.slane %v5287_v14, 3  ;;  %v8571_v7 = vcombine.low %v5136_v46, %v5137_v15  ;;  %v5292_v57 = vrot.slane %v5290_v52, 4  ;;  %9516 = vmatprep.subr.bf16.mxu0 %v9847_v58  ;;  %9524 = vmatprep.subr.bf16.mxu1 %v9848_v48  ;;  %v9850_v17 = vld [vmem:[%s12133_s13] sm:$0xff]   ;;  %v11369_v41 = vld [vmem:[%s12133_s13 + $0x28] sm:$0xff]  }
 0x50a   : > { %v5285_v12 = vsel %vm1654_vm5, %v5276_v16, %v5284_v38  ;;  %v5441_v39 = vsel %vm1904_vm15, %v5436_v29, %v5440_v23  ;;  %v5454_v3 = vshll.u32 %v8586_v49, 16  ;;  %v8572_v59 = vcombine.low %v5138_v0, %v5138_v0 }
 0x50b   : > { %9496 = vmatprep.mubr.msk.bf16.mxu0 %vm4662_vm8, %v5285_v12  ;;  %9508 = vmatprep.mubr.msk.bf16.mxu1 %vm4662_vm8, %v5441_v39  ;;  %v5446_v56 = vshll.u32 %v8585_v8, 16  ;;  %v5296_v1 = vshrl.u32 %v8571_v7, 16  ;;  %v5299_v6 = vshll.u32 %v8571_v7, 16  ;;  %v5444_v19 = vor.u32 %v5442_v36, %v5440_v23  ;;  %v11375_v23 = vld [vmem:[%s12133_s13 + $0x38] sm:$0xff]  }
 0x50c   : > { %v5293_v32 = vor.u32 %v5292_v57, %v5289_v10  ;;  %v5450_v26 = vshrl.u32 %v8585_v8, 16  ;;  %v5305_v61 = vshrl.u32 %v8572_v59, 16  ;;  %v5308_v27 = vshll.u32 %v8572_v59, 16  ;;  %v11381_v10 = vld [vmem:[%s12132_s12] ss:$0 sm:$0xff] }
 0x50d   : > { %v5448_v62 = vrot.slane %v5446_v56, 1  ;;  %v5298_v20 = vrot.slane %v5296_v1, 3  ;;  %v5301_v60 = vrot.slane %v5299_v6, 4  ;;  %v5456_v16 = vrot.slane %v5454_v3, 1 }
 0x50e   : > { %v5294_v44 = vsel %vm1654_vm5, %v5284_v38, %v5293_v32  ;;  %v5458_v24 = vshrl.u32 %v8586_v49, 16  ;;  %v5307_v51 = vrot.slane %v5305_v61, 3  ;;  %v5310_v4 = vrot.slane %v5308_v27, 4 }
 0x50f   : > { %v5449_v28 = vsel %vm1904_vm15, %v5444_v19, %v5448_v62  ;;  %v5452_v37 = vor.u32 %v5450_v26, %v5448_v62  ;;  %9497 = vmatmul.mubr.msk.bf16.vlgmr.msra.gmra.mxu0 %vm4662_vm8, %v5294_v44  ;;  %v5302_v50 = vor.u32 %v5301_v60, %v5298_v20  ;;  %v5464_v15 = vrot.slane %v5462_v2, 1 }
 0x510   : > { %9509 = vmatmul.mubr.msk.bf16.vlgmr.msra.gmra.mxu1 %vm4662_vm8, %v5449_v28  ;;  %v5460_v11 = vor.u32 %v5458_v24, %v5456_v16  ;;  %v5311_v40 = vor.u32 %v5310_v4, %v5307_v51  ;;  %9517 = vmatpush3.bf16.msra.mxu0 %v9847_v58  ;;  %v5581_v28 = vunpack.c.h.bf16 %v11138_v31  ;;  %vm6020_vm14 = vcmask 519168  }
 0x511   : > { %v5457_v18 = vsel %vm1904_vm15, %v5452_v37, %v5456_v16  ;;  %v5303_v13 = vsel %vm1654_vm5, %v5293_v32, %v5302_v50  ;;  %9525 = vmatpush3.bf16.msra.mxu1 %v9848_v48  ;;  %9518 = vmatprep.subr.bf16.mxu0 %v9849_v53  ;;  %v5580_v32 = vunpack.c.l.bf16 %v11138_v31  ;;  %v5578_v16 = vunpack.c.l.bf16 %v11133_v33 }
 0x512   : > { %9512 = vmatprep.mubr.msk.bf16.mxu1 %vm4662_vm8, %v5457_v18  ;;  %9500 = vmatprep.mubr.msk.bf16.mxu0 %vm4662_vm8, %v5303_v13  ;;  %v5312_v30 = vsel %vm1654_vm5, %v5302_v50, %v5311_v40  ;;  %v5465_v25 = vsel %vm1904_vm15, %v5460_v11, %v5464_v15  ;;  %v5579_v40 = vunpack.c.h.bf16 %v11133_v33 }
 0x513   : > { %9526 = vmatprep.subr.bf16.mxu1 %v9850_v17 }
 0x514   : > { %9519 = vmatpush3.bf16.msra.mxu0 %v9849_v53 }
 0x515   : > { %9527 = vmatpush3.bf16.msra.mxu1 %v9850_v17  ;;  %9532 = vmatprep.subr.bf16.mxu0 %v11369_v41 }
 0x516   : > { %9540 = vmatprep.subr.bf16.mxu1 %v11375_v23 }
 0x517   : > { %9501 = vmatmul.mubr.msk.bf16.gmra.mxu0 %vm4662_vm8, %v5312_v30 }
 0x518   : > { %9513 = vmatmul.mubr.msk.bf16.gmra.mxu1 %vm4662_vm8, %v5465_v25 }
 0x5ba   : > { %v9486_v35 = vpop.f32.mrf.mxu1 }
 0x5bc   : > { %v5215_v0 = vpop.f32.mrf.mxu1 }
 0x5be   : > { %v9487_v38 = vpop.f32.mrf.mxu1 }
 0x5c0   : > { %v5218_v43 = vpop.f32.mrf.mxu1 }
 0x5c2   : > { %v9490_v29 = vpop.f32.mrf.mxu1 }
 0x5c4   : > { %v5231_v14 = vpop.f32.mrf.mxu1 }
 0x5c6   : > { %v9491_v8 = vpop.f32.mrf.mxu1 }
 0x5c8   : > { %v5234_v52 = vpop.f32.mrf.mxu1 }
 0x5cf   : > { %v9498_v46 = vpop.f32.mrf.mxu0 }
 0x5d0   : > { %v9510_v49 = vpop.f32.mrf.mxu1  ;;  %v5380_v12 = vadd.f32 %v9498_v46, %v9486_v35 }
 0x5d1   : > { %v5371_v39 = vpop.f32.mrf.mxu0 }
 0x5d2   : > { %v5524_v7 = vpop.f32.mrf.mxu1  ;;  %v5372_v36 = vadd.f32 %v5371_v39, %v5215_v0  ;;  %v5557_v57 = vadd.f32 %v9510_v49, %v5380_v12  ;;  %v5584_v12 = vunpack.c.l.bf16 %v11210_v21 }
 0x5d3   : > { %v9499_v56 = vpop.f32.mrf.mxu0 }
 0x5d4   : > { %v9511_v3 = vpop.f32.mrf.mxu1  ;;  %v5572_v1 = vadd.f32 %v11381_v10, %v5557_v57  ;;  %v5383_v6 = vadd.f32 %v9499_v56, %v9487_v38  ;;  %v5555_v59 = vadd.f32 %v5524_v7, %v5372_v36  ;;  %v5582_v36 = vunpack.c.l.bf16 %v11204_v55 }
 0x5d5   : > { %v5374_v2 = vpop.f32.mrf.mxu0 }
 0x5d6   : > { %v5527_v19 = vpop.f32.mrf.mxu1  ;;  %v5375_v62 = vadd.f32 %v5374_v2, %v5218_v43  ;;  %v5558_v26 = vadd.f32 %v9511_v3, %v5383_v6  ;;  %v5570_v20 = vadd.f32 %v11381_v10, %v5555_v59  ;;  %v5588_v27 = vadd.f32 %v5580_v32, %v5572_v1 }
 0x5d7   : > { %v9502_v60 = vpop.f32.mrf.mxu0  ;;  %v5583_v6 = vunpack.c.h.bf16 %v11204_v55 }
 0x5d8   : > { %v9514_v61 = vpop.f32.mrf.mxu1  ;;  %v5573_v44 = vadd.f32 %v11381_v10, %v5558_v26  ;;  %v5396_v37 = vadd.f32 %v9502_v60, %v9490_v29  ;;  %v5556_v50 = vadd.f32 %v5527_v19, %v5375_v62  ;;  %v5586_v11 = vadd.f32 %v5578_v16, %v5570_v20 }
 0x5d9   : > { %v5387_v18 = vpop.f32.mrf.mxu0  ;;  %v5596_v58 = vmax.f32 %v5588_v27, 0.0  ;;  %v5654_v20 = vand.u32 15, %v10135_v9 }
 0x5da   : > { %v5540_v24 = vpop.f32.mrf.mxu1  ;;  %v5589_v51 = vadd.f32 %v5581_v28, %v5573_v44  ;;  %v5388_v4 = vadd.f32 %v5387_v18, %v5231_v14  ;;  %v5561_v13 = vadd.f32 %v9514_v61, %v5396_v37  ;;  %v5571_v15 = vadd.f32 %v11381_v10, %v5556_v50 }
 0x5db   : > { %v9503_v30 = vpop.f32.mrf.mxu0  ;;  %v5594_v46 = vmax.f32 %v5586_v11, 0.0  ;;  %vm11404_vm0 = vcmp.eq.s32.totalorder %v5654_v20, 0  ;;  %v9865_v20 = vld [vmem:[%s12135_s15] sm:$0xff]  }
 0x5dc   : > { %v9515_v25 = vpop.f32.mrf.mxu1  ;;  %v5597_v48 = vmax.f32 %v5589_v51, 0.0  ;;  %v5399_v53 = vadd.f32 %v9503_v30, %v9491_v8  ;;  %v5559_v31 = vadd.f32 %v5540_v24, %v5388_v4  ;;  %v5587_v17 = vadd.f32 %v5579_v40, %v5571_v15 }
 0x5dd   : > { %v5576_v35 = vadd.f32 %v11381_v10, %v5561_v13  ;;  %v5390_v0 = vpop.f32.mrf.mxu0  ;;  %v5585_v8 = vunpack.c.h.bf16 %v11210_v21  ;;  %v11412_v24 = vadd.s32 8, %v10135_v9 }
 0x5de   : > { %v5603_v38 = vpack.c.bf16 %v5597_v48, %v5596_v58  ;;  %v5574_v43 = vadd.f32 %v11381_v10, %v5559_v31  ;;  %v5391_v29 = vadd.f32 %v5390_v0, %v5234_v52  ;;  %v5543_v14 = vpop.f32.mrf.mxu1  ;;  %v5595_v49 = vmax.f32 %v5587_v17, 0.0 }
 0x5df   : > { %v5562_v33 = vadd.f32 %v9515_v25, %v5399_v53  ;;  %v5592_v56 = vadd.f32 %v5584_v12, %v5576_v35  ;;  %v5655_v25 = vand.u32 15, %v11412_v24  ;;  %v5657_v17 = vand.u32 15, %v11044_v22 }
 0x5e0   : > { %v5608_v39 = vunpack.c.l.bf16 %v5603_v38  ;;  %v5609_v7 = vunpack.c.h.bf16 %v5603_v38  ;;  %v5602_v57 = vpack.c.bf16 %v5595_v49, %v5594_v46  ;;  %v5560_v1 = vadd.f32 %v5543_v14, %v5391_v29 }
 0x5e1   : > { %v5577_v3 = vadd.f32 %v11381_v10, %v5562_v33  ;;  %v5590_v52 = vadd.f32 %v5582_v36, %v5574_v43  ;;  %v5600_v21 = vmax.f32 %v5592_v56, 0.0  ;;  %vm11425_vm6 = vcmp.eq.s32.totalorder %v5655_v25, 15  ;;  %v9854_v36 = vld [vmem:[%s12133_s13 + $0x30] sm:$0xff]  }
 0x5e2   : > { %5616 = vst.msk [vmem:[#allocation6 + $0x20] sm:$0xff] %vm4662_vm8, %v5608_v39  ;;  %5617 = vst.msk [vmem:[#allocation6 + $0x28] sm:$0xff] %vm4662_vm8, %v5609_v7  ;;  %v5606_v59 = vunpack.c.l.bf16 %v5602_v57  ;;  %v5607_v2 = vunpack.c.h.bf16 %v5602_v57  ;;  %v5575_v32 = vadd.f32 %v11381_v10, %v5560_v1  ;;  %v876_v10 = vadd.s32 16, %v10135_v9  ;;  %v9853_v39 = vld [vmem:[%s12133_s13 + $0x20] sm:$0xff]  }
 0x5e3   : > { %v5593_v19 = vadd.f32 %v5585_v8, %v5577_v3  ;;  %v5598_v60 = vmax.f32 %v5590_v52, 0.0  ;;  %vm11443_vm3 = vcmp.eq.s32.totalorder %v5657_v17, 15  ;;  %vm6089_vm10 = vmpackc.low %vm11425_vm6, %vm11425_vm6 }
 0x5e4   : > { %5614 = vst.msk [vmem:[#allocation6 + $0x10] sm:$0xff] %vm4662_vm8, %v5606_v59  ;;  %5615 = vst.msk [vmem:[#allocation6 + $0x18] sm:$0xff] %vm4662_vm8, %v5607_v2  ;;  %v5591_v26 = vadd.f32 %v5583_v6, %v5575_v32  ;;  %v5656_v30 = vand.u32 15, %v876_v10  ;;  %v9856_v59 = vld [vmem:[%s12135_s15 + $0x30] sm:$0xff]   ;;  %v9857_v2 = vld [vmem:[%s12135_s15 + $0x28] sm:$0xff]  }
 0x5e5   : > { %v5601_v62 = vmax.f32 %v5593_v19, 0.0  ;;  %v9858_v19 = vld [vmem:[%s12135_s15 + $0x20] sm:$0xff]   ;;  %v9859_v32 = vld [vmem:[%s12135_s15 + $0x18] sm:$0xff]   ;;  %vm6091_vm2 = vmpackc.low %vm11443_vm3, %vm11443_vm3 }
 0x5e6   : > { %v5599_v27 = vmax.f32 %v5591_v26, 0.0  ;;  %vm11421_vm1 = vcmp.eq.s32.totalorder %v5656_v30, 0  ;;  %v9863_v26 = vld [vmem:[%s12135_s15 + $0x8] sm:$0xff]  }
 0x5e7   : > { %v5605_v61 = vpack.c.bf16 %v5601_v62, %v5600_v21  ;;  %v9861_v21 = vld [vmem:[%s12135_s15 + $0x10] sm:$0xff]   ;;  %v11475_v62 = vld [vmem:[%s12135_s15 + $0x58] sm:$0xff]   ;;  %vm6033_vm13 = vmpackc.low %vm11421_vm1, %vm11421_vm1 }
 0x5e8   : > { %v5604_v55 = vpack.c.bf16 %v5599_v27, %v5598_v60 }
 0x5e9   : > { %v5612_v44 = vunpack.c.l.bf16 %v5605_v61  ;;  %v5613_v28 = vunpack.c.h.bf16 %v5605_v61  ;;  %v5633_v18 = vld [vmem:[#allocation6 + $0x20] ss:$2 sm:$0xff]  ;;  %v5641_v49 = vld [vmem:[#allocation6 + $0x21] ss:$2 sm:$0xff] }
 0x5ea   : > { %v5610_v16 = vunpack.c.l.bf16 %v5604_v55  ;;  %v5611_v50 = vunpack.c.h.bf16 %v5604_v55 }
 0x5eb   : > { %5620 = vst.msk [vmem:[#allocation6 + $0x40] sm:$0xff] %vm4662_vm8, %v5612_v44  ;;  %5621 = vst.msk [vmem:[#allocation6 + $0x48] sm:$0xff] %vm4662_vm8, %v5613_v28  ;;  %v5631_v51 = vld [vmem:[#allocation6 + $0x10] ss:$2 sm:$0xff]  ;;  %v5623_v4 = vld [vmem:[#allocation6 + $0xf] ss:$2 sm:$0xff] }
 0x5ec   : > { %v5625_v13 = vld [vmem:[#allocation6 + $0x1f] ss:$2 sm:$0xff]  ;;  %5618 = vst.msk [vmem:[#allocation6 + $0x30] sm:$0xff] %vm4662_vm8, %v5610_v16  ;;  %5619 = vst.msk [vmem:[#allocation6 + $0x38] sm:$0xff] %vm4662_vm8, %v5611_v50  ;;  %v5696_v11 = vpack.c.bf16 %v5633_v18, %v5631_v51  ;;  %v5670_v15 = vsel %vm11404_vm0, 0.0, %v5623_v4  ;;  %v6037_v50 = vsel %vm6033_vm13, 65537, %v12233_v5 }
 0x5ed   : > { %v5690_v40 = vpack.c.bf16 %v5625_v13, %v5670_v15  ;;  %v5639_v53 = vld [vmem:[#allocation6 + $0x11] ss:$2 sm:$0xff]  ;;  %v5647_v12 = vld [vmem:[#allocation6 + $0x12] ss:$2 sm:$0xff]  ;;  %v6093_v51 = vsel %vm6089_vm10, 65537, %v12233_v5  ;;  %v6059_v25 = vshll.u32 %v6037_v50, 16 }
 0x5ee   : > { %9520 = vmatprep.mubr.msk.bf16.mxu0 %vm4662_vm8, %v5696_v11  ;;  %v5837_v22 = vpack.c.bf16 %v5641_v49, %v5639_v53  ;;  %v6095_v11 = vsel %vm6091_vm2, 65537, %v12233_v5  ;;  %v6063_v58 = vshrl.u32 %v6037_v50, 16  ;;  %v6105_v17 = vshrl.u32 %v6093_v51, 16 }
 0x5ef   : > { %9528 = vmatprep.mubr.msk.bf16.mxu1 %vm4662_vm8, %v5690_v40  ;;  %vm12278_vm10 = vcmp.ne.s16.totalorder %v10218_v54, 0  ;;  %vm12279_vm2 = vcmp.ne.s16.totalorder %v10198_v42, 0 }
 0x5f2   : > { %v5637_v48 = vld [vmem:[#allocation6 + $0x40] ss:$2 sm:$0xff]  ;;  %v5645_v1 = vld [vmem:[#allocation6 + $0x41] ss:$2 sm:$0xff] }
 0x5f3   : > { %v5635_v35 = vld [vmem:[#allocation6 + $0x30] ss:$2 sm:$0xff]  ;;  %v5627_v0 = vld [vmem:[#allocation6 + $0x2f] ss:$2 sm:$0xff]  ;;  %v5629_v38 = vld [vmem:[#allocation6 + $0x3f] ss:$2 sm:$0xff] }
 0x5f4   : > { %v5697_v43 = vpack.c.bf16 %v5637_v48, %v5635_v35  ;;  %v5672_v29 = vsel %vm11421_vm1, 0.0, %v5627_v0  ;;  %v5649_v14 = vld [vmem:[#allocation6 + $0x22] ss:$2 sm:$0xff]  ;;  %v5643_v56 = vld [vmem:[#allocation6 + $0x31] ss:$2 sm:$0xff] }
 0x5f5   : > { %v5691_v46 = vpack.c.bf16 %v5629_v38, %v5672_v29  ;;  %v5687_v33 = vsel %vm11425_vm6, 0.0, %v5649_v14  ;;  %v5653_v8 = vld [vmem:[#allocation6 + $0x42] ss:$2 sm:$0xff]  ;;  %v5651_v3 = vld [vmem:[#allocation6 + $0x32] ss:$2 sm:$0xff]  ;;  %v5838_v52 = vpack.c.bf16 %v5645_v1, %v5643_v56  ;;  %v6123_v38 = vshrl.u32 %v6095_v11, 16 }
 0x5f6   : > { %9521 = vmatmul.mubr.msk.bf16.vlgmr.msra.gmra.mxu0 %vm4662_vm8, %v5697_v43  ;;  %v5915_v7 = vpack.c.bf16 %v5687_v33, %v5647_v12  ;;  %v8623_v35 = vld [vmem:[%s12134_s14] ss:$0 sm:$0xff]  ;;  %v6061_v33 = vrot.slane %v6059_v25, 5  ;;  %v6107_v56 = vrot.slane %v6105_v17, 7  ;;  %v6126_v1 = vshll.u32 %v6095_v11, 16 }
 0x5f7   : > { %9533 = vmatpush3.bf16.msra.mxu0 %v11369_v41  ;;  %9529 = vmatmul.mubr.msk.bf16.vlgmr.msra.gmra.mxu1 %vm4662_vm8, %v5691_v46  ;;  %v5689_v41 = vsel %vm11443_vm3, 0.0, %v5653_v8  ;;  %v9878_v25 = vld [vmem:[%s12137_s17 + $0x40] sm:$0xff]  }
 0x5f8   : > { %9536 = vmatprep.mubr.msk.bf16.mxu0 %vm4662_vm8, %v5837_v22  ;;  %9541 = vmatpush3.bf16.msra.mxu1 %v11375_v23  ;;  %v5916_v6 = vpack.c.bf16 %v5689_v41, %v5651_v3  ;;  %v9855_v23 = vld [vmem:[%s12135_s15 + $0x38] sm:$0xff]   ;;  %v6125_v41 = vrot.slane %v6123_v38, 7 }
 0x5f9   : > { %9544 = vmatprep.mubr.msk.bf16.mxu1 %vm4662_vm8, %v5915_v7  ;;  %9534 = vmatprep.subr.bf16.mxu0 %v9853_v39 }
 0x5fa   : > { %9542 = vmatprep.subr.bf16.mxu1 %v9854_v36 }
 0x5fb   : > { %9535 = vmatpush3.bf16.msra.mxu0 %v9853_v39  ;;  %v6065_v39 = vrot.slane %v6063_v58, 4 }
 0x5fc   : > { %9543 = vmatpush3.bf16.msra.mxu1 %v9854_v36  ;;  %9548 = vmatprep.subr.bf16.mxu0 %v9855_v23 }
 0x5fd   : > { %9560 = vmatprep.subr.bf16.mxu1 %v9859_v32 }
 0x5fe   : > { %9537 = vmatmul.mubr.msk.bf16.vlgmr.msra.gmra.mxu0 %vm4662_vm8, %v5838_v52 }
 0x5ff   : > { %9545 = vmatmul.mubr.msk.bf16.vlgmr.msra.gmra.mxu1 %vm4662_vm8, %v5916_v6  ;;  %9549 = vmatpush3.bf16.msra.mxu0 %v9855_v23  ;;  %vm6031_vm8 = vmpackc.low %vm11404_vm0, %vm11404_vm0 }
 0x600   : > { %9550 = vmatprep.subr.bf16.mxu0 %v9856_v59  ;;  %9561 = vmatpush3.bf16.msra.mxu1 %v9859_v32  ;;  %v6035_v61 = vsel %vm6031_vm8, 65537, %v12233_v5  ;;  %v6108_v32 = vshll.u32 %v6093_v51, 16 }
 0x601   : > { %9562 = vmatprep.subr.bf16.mxu1 %v9861_v21  ;;  %v6040_v55 = vshll.u32 %v6035_v61, 16  ;;  %v6043_v10 = vshrl.u32 %v6035_v61, 16  ;;  %v6112_v61 = vrot.slane %v6107_v56, 4 }
 0x603   : > { %9551 = vmatpush3.bf16.msra.mxu0 %v9856_v59  ;;  %v11500_v15 = vrot.slane %v6040_v55, 5  ;;  %v6045_v40 = vrot.slane %v6043_v10, 4  ;;  %v6130_v55 = vrot.slane %v6125_v41, 4  ;;  %v6110_v10 = vor.u32 %v6108_v32, %v6107_v56 }
 0x604   : > { %9552 = vmatprep.subr.bf16.mxu0 %v9857_v2  ;;  %9563 = vmatpush3.bf16.msra.mxu1 %v9861_v21  ;;  %v11523_v11 = vsel %vm10191_vm9, %v6112_v61, %v10198_v42 }
 0x605   : > { %9564 = vmatprep.subr.bf16.mxu1 %v9863_v26  ;;  %v6046_v49 = vor.u32 %v6045_v40, %v11500_v15  ;;  %vm6078_vm11 = vcmp.ne.s16.totalorder %v11500_v15, 0  ;;  %vm11531_vm7 = vcmp.ne.s16.totalorder %v6130_v55, 0  ;;  %vm6133_vm1 = vcmp.ne.s16.totalorder %v11523_v11, 0 }
 0x607   : > { %9553 = vmatpush3.bf16.msra.mxu0 %v9857_v2 }
 0x608   : > { %9554 = vmatprep.subr.bf16.mxu0 %v9858_v19  ;;  %9565 = vmatpush3.bf16.msra.mxu1 %v9863_v26 }
 0x609   : > { %9566 = vmatprep.subr.bf16.mxu1 %v9865_v20 }
 0x60b   : > { %9555 = vmatpush3.bf16.msra.mxu0 %v9858_v19  ;;  %v6047_v19 = vrot.slane %v6046_v49, 4 }
 0x60c   : > { %9572 = vmatprep.subr.bf16.mxu0 %v11475_v62  ;;  %9567 = vmatpush3.bf16.msra.mxu1 %v9865_v20 }
 0x6b6   : > { %v9522_v60 = vpop.f32.mrf.mxu0 }
 0x6b7   : > { %v9530_v27 = vpop.f32.mrf.mxu1 }
 0x6b8   : > { %v5755_v44 = vpop.f32.mrf.mxu0  ;;  %v5831_v4 = vadd.f32 %v9530_v27, %v9522_v60  ;;  %v6066_v60 = vor.u32 %v6065_v39, %v6061_v33 }
 0x6b9   : > { %v5822_v28 = vpop.f32.mrf.mxu1 }
 0x6ba   : > { %v9523_v37 = vpop.f32.mrf.mxu0  ;;  %v5823_v48 = vadd.f32 %v5822_v28, %v5755_v44  ;;  %v6128_v28 = vor.u32 %v6126_v1, %v6125_v41  ;;  %v6067_v51 = vrot.slane %v6066_v60, 4 }
 0x6bb   : > { %v9531_v16 = vpop.f32.mrf.mxu1 }
 0x6bc   : > { %v5758_v18 = vpop.f32.mrf.mxu0  ;;  %v5834_v43 = vadd.f32 %v9531_v16, %v9523_v37  ;;  %v6052_v37 = vsel %vm10209_vm12, %v6047_v19, %v12235_v63  ;;  %v6129_v40 = vsel %vm10191_vm9, %v12237_v34, %v6128_v28  ;;  %v6072_v17 = vsel %vm10209_vm12, %v6067_v51, %v12235_v63 }
 0x6bd   : > { %v5825_v13 = vpop.f32.mrf.mxu1  ;;  %vm11537_vm0 = vcmp.ne.s16.totalorder %v6052_v37, 0  ;;  %vm11557_vm6 = vcmp.ne.s16.totalorder %v6129_v40, 0  ;;  %vm11569_vm8 = vcmp.ne.s16.totalorder %v6072_v17, 0 }
 0x6be   : > { %v9538_v30 = vpop.f32.mrf.mxu0  ;;  %v5826_v22 = vadd.f32 %v5825_v13, %v5758_v18  ;;  %v6025_v18 = vld [vmem:[#allocation7 + $0x4] sm:$0x8]  ;;  %v9862_v13 = vld [vmem:[%s12135_s15 + $0x50] sm:$0xff]  }
 0x6bf   : > { %v5913_v53 = vadd.f32 %v9538_v30, %v5831_v4  ;;  %v9546_v31 = vpop.f32.mrf.mxu1  ;;  %v6030_v30 = vld [vmem:[#allocation7 + $0x18] sm:$0x1] }
 0x6c0   : > { %v5896_v0 = vpop.f32.mrf.mxu0 }
 0x6c1   : > { %v5991_v29 = vadd.f32 %v9546_v31, %v5913_v53  ;;  %v5911_v14 = vadd.f32 %v5896_v0, %v5823_v48  ;;  %v5974_v46 = vpop.f32.mrf.mxu1  ;;  %v6083_v48 = vsel %vm6078_vm11, 0, %v6025_v18  ;;  %v9864_v53 = vld [vmem:[%s12135_s15 + $0x48] sm:$0xff]   ;;  %v6062_v31 = vsel %vm10209_vm12, %v10218_v54, %v6061_v33 }
 0x6c2   : > { %v9539_v12 = vpop.f32.mrf.mxu0  ;;  %vm11565_vm3 = vcmp.ne.s16.totalorder %v6062_v31, 0 }
 0x6c3   : > { %v6002_v7 = vadd.f32 %v8623_v35, %v5991_v29  ;;  %v5989_v36 = vadd.f32 %v5974_v46, %v5911_v14  ;;  %v5914_v8 = vadd.f32 %v9539_v12, %v5834_v43  ;;  %v9547_v57 = vpop.f32.mrf.mxu1  ;;  %v6140_v43 = vsel %vm11531_vm7, 0, %v6030_v30 }
 0x6c4   : > { %v5899_v3 = vpop.f32.mrf.mxu0 }
 0x6c5   : > { %v8948_v52 = vpack.c.bf16 %v6002_v7, %v6002_v7  ;;  %v6000_v6 = vadd.f32 %v8623_v35, %v5989_v36  ;;  %v5992_v23 = vadd.f32 %v9547_v57, %v5914_v8  ;;  %v5912_v59 = vadd.f32 %v5899_v3, %v5826_v22  ;;  %v5977_v2 = vpop.f32.mrf.mxu1 }
 0x6c6   : > { %v8661_v22 = vcombine.low %v6140_v43, %v6140_v43  ;;  %v9867_v43 = vld [vmem:[%s12137_s17 + $0x38] sm:$0xff]  }
 0x6c7   : > { %6023 = vst.msk [vmem:[#allocation7 + $0x10] sm:$0xf] %vm6020_vm14, %v8948_v52  ;;  %v8946_v21 = vpack.c.bf16 %v6000_v6, %v6000_v6  ;;  %v6003_v26 = vadd.f32 %v8623_v35, %v5992_v23  ;;  %v5990_v20 = vadd.f32 %v5977_v2, %v5912_v59  ;;  %9584 = vmatprep.subr.bf16.mxu1 %v9867_v43 }
 0x6c9   : > { %6021 = vst.msk [vmem:[#allocation7 + $0x8] sm:$0xf] %vm6020_vm14, %v8946_v21  ;;  %v8949_v27 = vpack.c.bf16 %v6003_v26, %v6003_v26  ;;  %v6001_v44 = vadd.f32 %v8623_v35, %v5990_v20  ;;  %v11515_v4 = vpack.c.bf16 %v6003_v26, %v6002_v7  ;;  %v6111_v35 = vsel %vm10191_vm9, %v12237_v34, %v6110_v10  ;;  %v9866_v7 = vld [vmem:[%s12135_s15 + $0x40] sm:$0xff]  }
 0x6ca   : > { %vm11573_vm13 = vcmp.ne.s16.totalorder %v6111_v35, 0  ;;  %v6394_v21 = vshll.u32 %v8661_v22, 16  ;;  %v9872_v22 = vld [vmem:[%s12137_s17 + $0x58] sm:$0xff]  }
 0x6cb   : > { %6024 = vst.msk [vmem:[#allocation7 + $0x14] sm:$0xf] %vm6020_vm14, %v8949_v27  ;;  %v11512_v16 = vpack.c.bf16 %v6001_v44, %v6000_v6  ;;  %v8947_v50 = vpack.c.bf16 %v6001_v44, %v6001_v44 }
 0x6cd   : > { %6022 = vst.msk [vmem:[#allocation7 + $0xc] sm:$0xf] %vm6020_vm14, %v8947_v50  ;;  %9556 = vmatprep.mubr.msk.bf16.mxu0 %vm6182_vm4, %v11512_v16 }
 0x6ce   : > { %9557 = vmatmul.mubr.msk.bf16.vlgmr.msra.gmra.mxu0 %vm6182_vm4, %v11515_v4  ;;  %v6028_v0 = vld [vmem:[#allocation7 + $0x10] sm:$0xf] }
 0x6cf   : > { %9573 = vmatpush3.bf16.msra.mxu0 %v11475_v62  ;;  %v6138_v33 = vsel %vm6133_vm1, 0, %v6028_v0  ;;  %v6086_v1 = vsel %vm11569_vm8, 0, %v6028_v0 }
 0x6d0   : > { %9574 = vmatprep.subr.bf16.mxu0 %v9862_v13  ;;  %v6026_v62 = vld [vmem:[#allocation7 + $0x8] sm:$0xf] }
 0x6d1   : > { %v6084_v29 = vsel %vm11537_vm0, 0, %v6026_v62  ;;  %v6136_v52 = vsel %vm12279_vm2, 0, %v6026_v62 }
 0x6d2   : > { %v8642_v14 = vcombine.low %v6083_v48, %v6084_v29  ;;  %v6029_v46 = vld [vmem:[#allocation7 + $0x14] sm:$0xf]  ;;  %v9868_v29 = vld [vmem:[%s12137_s17 + $0x30] sm:$0xff]  }
 0x6d3   : > { %9575 = vmatpush3.bf16.msra.mxu0 %v9862_v13  ;;  %v6087_v12 = vsel %vm12278_vm10, 0, %v6029_v46  ;;  %v6139_v39 = vsel %vm11557_vm6, 0, %v6029_v46  ;;  %v6396_v13 = vrot.slane %v6394_v21, 1  ;;  %v9871_v46 = vld [vmem:[%s12137_s17 + $0x18] sm:$0xff]  }
 0x6d4   : > { %9576 = vmatprep.subr.bf16.mxu0 %v9864_v53  ;;  %v6027_v36 = vld [vmem:[#allocation7 + $0xc] sm:$0xf]  ;;  %v6252_v8 = vshrl.u32 %v8642_v14, 16  ;;  %v6255_v57 = vshll.u32 %v8642_v14, 16  ;;  %v8644_v56 = vcombine.low %v6087_v12, %v6087_v12  ;;  %v8660_v3 = vcombine.low %v6138_v33, %v6139_v39  ;;  %v9869_v14 = vld [vmem:[%s12137_s17 + $0x28] sm:$0xff]   ;;  %v9873_v12 = vld [vmem:[%s12137_s17 + $0x10] sm:$0xff]  }
 0x6d5   : > { %v6085_v41 = vsel %vm11565_vm3, 0, %v6027_v36  ;;  %v6137_v6 = vsel %vm11573_vm13, 0, %v6027_v36  ;;  %v9870_v33 = vld [vmem:[%s12137_s17 + $0x20] sm:$0xff]   ;;  %v9875_v39 = vld [vmem:[%s12137_s17 + $0x8] sm:$0xff]  }
 0x6d6   : > { %v8643_v23 = vcombine.low %v6085_v41, %v6086_v1  ;;  %v8659_v59 = vcombine.low %v6136_v52, %v6137_v6  ;;  %v6386_v2 = vshll.u32 %v8660_v3, 16  ;;  %v6269_v19 = vshrl.u32 %v8644_v56, 16  ;;  %v8668_v52 = vld [vmem:[%s12136_s16] ss:$0 sm:$0xff] }
 0x6d7   : > { %9577 = vmatpush3.bf16.msra.mxu0 %v9864_v53  ;;  %v6272_v32 = vshll.u32 %v8644_v56, 16  ;;  %v6254_v26 = vrot.slane %v6252_v8, 3  ;;  %v6257_v20 = vrot.slane %v6255_v57, 4  ;;  %v6390_v50 = vshrl.u32 %v8660_v3, 16 }
 0x6d8   : > { %9578 = vmatprep.subr.bf16.mxu0 %v9866_v7  ;;  %v6260_v60 = vshrl.u32 %v8643_v23, 16  ;;  %v6263_v61 = vshll.u32 %v8643_v23, 16  ;;  %v6381_v27 = vshll.u32 %v8659_v59, 16  ;;  %v6388_v44 = vrot.slane %v6386_v2, 1 }
 0x6d9   : > { %v6271_v28 = vrot.slane %v6269_v19, 3  ;;  %v6274_v55 = vrot.slane %v6272_v32, 4  ;;  %v6379_v18 = vshrl.u32 %v8659_v59, 16  ;;  %v6258_v40 = vor.u32 %v6257_v20, %v6254_v26 }
 0x6da   : > { %v6262_v10 = vrot.slane %v6260_v60, 3  ;;  %v6265_v37 = vrot.slane %v6263_v61, 4  ;;  %v6383_v51 = vrot.slane %v6381_v27, 1  ;;  %v6392_v48 = vor.u32 %v6390_v50, %v6388_v44 }
 0x6db   : > { %9579 = vmatpush3.bf16.msra.mxu0 %v9866_v7  ;;  %v6275_v53 = vor.u32 %v6274_v55, %v6271_v28  ;;  %v9877_v7 = vld [vmem:[%s12137_s17] sm:$0xff]  }
 0x6dc   : > { %v6266_v30 = vor.u32 %v6265_v37, %v6262_v10  ;;  %v6384_v31 = vor.u32 %v6383_v51, %v6379_v18  ;;  %v6397_v0 = vsel %vm1904_vm15, %v6392_v48, %v6396_v13  ;;  %9596 = vmatprep.subr.bf16.mxu0 %v9871_v46 }
 0x6de   : > { %v6267_v17 = vsel %vm1654_vm5, %v6258_v40, %v6266_v30  ;;  %v6276_v35 = vsel %vm1654_vm5, %v6266_v30, %v6275_v53  ;;  %v6389_v62 = vsel %vm1904_vm15, %v6384_v31, %v6388_v44 }
 0x6df   : > { %9568 = vmatprep.mubr.msk.bf16.mxu1 %vm6182_vm4, %v6267_v17  ;;  %9580 = vmatprep.mubr.msk.bf16.mxu0 %vm6182_vm4, %v6389_v62  ;;  %v6516_v62 = vld [vmem:[#allocation7 + $0x4] sm:$0x8] }
 0x6e0   : > { %9569 = vmatmul.mubr.msk.bf16.vlgmr.msra.gmra.mxu1 %vm6182_vm4, %v6276_v35  ;;  %9581 = vmatmul.mubr.msk.bf16.vlgmr.msra.gmra.mxu0 %vm6182_vm4, %v6397_v0  ;;  %v9874_v35 = vld [vmem:[%s12137_s17 + $0x50] sm:$0xff]   ;;  %v6521_v0 = vld [vmem:[#allocation7 + $0x18] sm:$0x1] }
 0x6e1   : > { %9585 = vmatpush3.bf16.msra.mxu1 %v9867_v43  ;;  %9597 = vmatpush3.bf16.msra.mxu0 %v9871_v46  ;;  %v6522_v43 = vsel %vm6078_vm11, 0, %v6516_v62  ;;  %vm12281_vm11 = vmmov %vm12279_vm2  ;;  %v9882_v62 = vld [vmem:[%s12139_s19 + $0x10] sm:$0xff]  }
 0x6e2   : > { %9586 = vmatprep.subr.bf16.mxu1 %v9868_v29  ;;  %9598 = vmatprep.subr.bf16.mxu0 %v9873_v12 }
 0x6e5   : > { %9587 = vmatpush3.bf16.msra.mxu1 %v9868_v29  ;;  %9599 = vmatpush3.bf16.msra.mxu0 %v9873_v12  ;;  %v9876_v29 = vld [vmem:[%s12137_s17 + $0x48] sm:$0xff]   ;;  %v6531_v12 = vsel %vm11531_vm7, 0, %v6521_v0  ;;  %vm12282_vm7 = vmmov 0  }
 0x6e6   : > { %9588 = vmatprep.subr.bf16.mxu1 %v9869_v14  ;;  %9600 = vmatprep.subr.bf16.mxu0 %v9875_v39  ;;  %v9883_v0 = vld [vmem:[%s12139_s19 + $0x28] sm:$0xff]  }
 0x6e9   : > { %9589 = vmatpush3.bf16.msra.mxu1 %v9869_v14  ;;  %9601 = vmatpush3.bf16.msra.mxu0 %v9875_v39 }
 0x6ea   : > { %9590 = vmatprep.subr.bf16.mxu1 %v9870_v33  ;;  %9602 = vmatprep.subr.bf16.mxu0 %v9877_v7 }
 0x6ed   : > { %9591 = vmatpush3.bf16.msra.mxu1 %v9870_v33  ;;  %9603 = vmatpush3.bf16.msra.mxu0 %v9877_v7 }
 0x6ee   : > { %9608 = vmatprep.subr.bf16.mxu1 %v9872_v22 }
 0x78e   : > { %v9558_v36 = vpop.f32.mrf.mxu0 }
 0x790   : > { %v6223_v8 = vpop.f32.mrf.mxu0 }
 0x792   : > { %v9559_v57 = vpop.f32.mrf.mxu0 }
 0x794   : > { %v6226_v56 = vpop.f32.mrf.mxu0 }
 0x7a0   : > { %v9570_v3 = vpop.f32.mrf.mxu1  ;;  %v9582_v1 = vpop.f32.mrf.mxu0 }
 0x7a1   : > { %v6350_v41 = vadd.f32 %v9570_v3, %v9558_v36 }
 0x7a2   : > { %v6341_v6 = vpop.f32.mrf.mxu1  ;;  %v6462_v2 = vpop.f32.mrf.mxu0 }
 0x7a3   : > { %v6479_v23 = vadd.f32 %v9582_v1, %v6350_v41  ;;  %v6342_v59 = vadd.f32 %v6341_v6, %v6223_v8  ;;  %v8706_v8 = vcombine.low %v6531_v12, %v6531_v12 }
 0x7a4   : > { %v9571_v19 = vpop.f32.mrf.mxu1  ;;  %v9583_v20 = vpop.f32.mrf.mxu0 }
 0x7a5   : > { %v6490_v32 = vadd.f32 %v8668_v52, %v6479_v23  ;;  %v6477_v21 = vadd.f32 %v6462_v2, %v6342_v59  ;;  %v6353_v26 = vadd.f32 %v9571_v19, %v9559_v57  ;;  %v6784_v19 = vshll.u32 %v8706_v8, 16 }
 0x7a6   : > { %v6344_v60 = vpop.f32.mrf.mxu1  ;;  %v6465_v55 = vpop.f32.mrf.mxu0 }
 0x7a7   : > { %v6494_v61 = vmax.f32 %v6490_v32, 0.0  ;;  %v6488_v27 = vadd.f32 %v8668_v52, %v6477_v21  ;;  %v6480_v44 = vadd.f32 %v9583_v20, %v6353_v26  ;;  %v6345_v28 = vadd.f32 %v6344_v60, %v6226_v56 }
 0x7a9   : > { %v8952_v10 = vpack.c.bf16 %v6494_v61, %v6494_v61  ;;  %v6492_v37 = vmax.f32 %v6488_v27, 0.0  ;;  %v6491_v50 = vadd.f32 %v8668_v52, %v6480_v44  ;;  %v6478_v18 = vadd.f32 %v6465_v55, %v6345_v28 }
 0x7aa   : > { %v6786_v55 = vrot.slane %v6784_v19, 1 }
 0x7ab   : > { %6514 = vst.msk [vmem:[#allocation7 + $0x10] sm:$0xf] %vm6020_vm14, %v8952_v10  ;;  %v8950_v51 = vpack.c.bf16 %v6492_v37, %v6492_v37  ;;  %v6495_v13 = vmax.f32 %v6491_v50, 0.0  ;;  %v6489_v40 = vadd.f32 %v8668_v52, %v6478_v18 }
 0x7ad   : > { %6512 = vst.msk [vmem:[#allocation7 + $0x8] sm:$0xf] %vm6020_vm14, %v8950_v51  ;;  %v8953_v30 = vpack.c.bf16 %v6495_v13, %v6495_v13  ;;  %v6493_v48 = vmax.f32 %v6489_v40, 0.0  ;;  %v6497_v17 = vpack.c.bf16 %v6495_v13, %v6494_v61 }
 0x7af   : > { %6515 = vst.msk [vmem:[#allocation7 + $0x14] sm:$0xf] %vm6020_vm14, %v8953_v30  ;;  %v6496_v53 = vpack.c.bf16 %v6493_v48, %v6492_v37  ;;  %v8951_v31 = vpack.c.bf16 %v6493_v48, %v6493_v48 }
 0x7b1   : > { %6513 = vst.msk [vmem:[#allocation7 + $0xc] sm:$0xf] %vm6020_vm14, %v8951_v31  ;;  %9592 = vmatprep.mubr.msk.bf16.mxu1 %vm6182_vm4, %v6496_v53  ;;  %vm12280_vm14 = vmmov %vm12278_vm10  ;;  %v9879_v53 = vld [vmem:[%s12139_s19 + $0x38] sm:$0xff]  }
 0x7b2   : > { %9593 = vmatmul.mubr.msk.bf16.vlgmr.msra.gmra.mxu1 %vm6182_vm4, %v6497_v17  ;;  %v6519_v46 = vld [vmem:[#allocation7 + $0x10] sm:$0xf]  ;;  %v9880_v31 = vld [vmem:[%s12139_s19 + $0x18] sm:$0xff]   ;;  %v9961_v17 = vmov 0.0  }
 0x7b3   : > { %9609 = vmatpush3.bf16.msra.mxu1 %v9872_v22  ;;  %v6529_v22 = vsel %vm6133_vm1, 0, %v6519_v46  ;;  %v6525_v11 = vsel %vm11569_vm8, 0, %v6519_v46  ;;  %9620 = vmatprep.subr.bf16.mxu0 %v9961_v17 }
 0x7b4   : > { %9610 = vmatprep.subr.bf16.mxu1 %v9874_v35  ;;  %v6517_v14 = vld [vmem:[#allocation7 + $0x8] sm:$0xf] }
 0x7b5   : > { %v6523_v33 = vsel %vm11537_vm0, 0, %v6517_v14  ;;  %v6527_v38 = vsel %vm12281_vm11, 0, %v6517_v14  ;;  %v9886_v14 = vld [vmem:[%s12139_s19] sm:$0xff]  }
 0x7b6   : > { %v8687_v39 = vcombine.low %v6522_v43, %v6523_v33  ;;  %v6520_v7 = vld [vmem:[#allocation7 + $0x14] sm:$0xf] }
 0x7b7   : > { %9611 = vmatpush3.bf16.msra.mxu1 %v9874_v35  ;;  %v6526_v15 = vsel %vm12280_vm14, 0, %v6520_v7  ;;  %v6530_v36 = vsel %vm11557_vm6, 0, %v6520_v7  ;;  %v9881_v35 = vld [vmem:[%s12139_s19 + $0x30] sm:$0xff]   ;;  %v9884_v43 = vld [vmem:[%s12139_s19 + $0x8] sm:$0xff]  }
 0x7b8   : > { %9612 = vmatprep.subr.bf16.mxu1 %v9876_v29  ;;  %v6518_v58 = vld [vmem:[#allocation7 + $0xc] sm:$0xf]  ;;  %v6642_v57 = vshrl.u32 %v8687_v39, 16  ;;  %v6645_v56 = vshll.u32 %v8687_v39, 16  ;;  %v8689_v3 = vcombine.low %v6526_v15, %v6526_v15  ;;  %v8705_v41 = vcombine.low %v6529_v22, %v6530_v36 }
 0x7b9   : > { %v6524_v54 = vsel %vm11565_vm3, 0, %v6518_v58  ;;  %v6528_v1 = vsel %vm11573_vm13, 0, %v6518_v58  ;;  %v8713_v36 = vld [vmem:[%s12138_s18] ss:$0 sm:$0xff] }
 0x7ba   : > { %v8688_v52 = vcombine.low %v6524_v54, %v6525_v11  ;;  %v8704_v6 = vcombine.low %v6527_v38, %v6528_v1  ;;  %v6776_v23 = vshll.u32 %v8705_v41, 16  ;;  %v6659_v59 = vshrl.u32 %v8689_v3, 16 }
 0x7bb   : > { %9613 = vmatpush3.bf16.msra.mxu1 %v9876_v29  ;;  %v6662_v2 = vshll.u32 %v8689_v3, 16  ;;  %v6644_v32 = vrot.slane %v6642_v57, 3  ;;  %v6647_v63 = vrot.slane %v6645_v56, 4  ;;  %v6780_v49 = vshrl.u32 %v8705_v41, 16  ;;  %v9885_v29 = vld [vmem:[%s12139_s19 + $0x20] sm:$0xff]  }
 0x7bc   : > { %9614 = vmatprep.subr.bf16.mxu1 %v9878_v25  ;;  %v6650_v21 = vshrl.u32 %v8688_v52, 16  ;;  %v6653_v26 = vshll.u32 %v8688_v52, 16  ;;  %v6771_v34 = vshll.u32 %v8704_v6, 16  ;;  %v6778_v20 = vrot.slane %v6776_v23, 1 }
 0x7bd   : > { %v6661_v60 = vrot.slane %v6659_v59, 3  ;;  %v6664_v42 = vrot.slane %v6662_v2, 4  ;;  %v6769_v44 = vshrl.u32 %v8704_v6, 16  ;;  %v6648_v10 = vor.u32 %v6647_v63, %v6644_v32 }
 0x7be   : > { %v6652_v61 = vrot.slane %v6650_v21, 3  ;;  %v6655_v27 = vrot.slane %v6653_v26, 4  ;;  %v6773_v28 = vrot.slane %v6771_v34, 1  ;;  %v6782_v50 = vor.u32 %v6780_v49, %v6778_v20 }
 0x7bf   : > { %9615 = vmatpush3.bf16.msra.mxu1 %v9878_v25  ;;  %v6665_v18 = vor.u32 %v6664_v42, %v6661_v60  ;;  %v6884_v1 = vunpack.c.l.bf16 %v11515_v4  ;;  %v6885_v59 = vunpack.c.h.bf16 %v11515_v4  ;;  %v6882_v32 = vunpack.c.l.bf16 %v11512_v16 }
 0x7c0   : > { %v6656_v37 = vor.u32 %v6655_v27, %v6652_v61  ;;  %v6774_v51 = vor.u32 %v6773_v28, %v6769_v44  ;;  %v6787_v48 = vsel %vm1904_vm15, %v6782_v50, %v6786_v55  ;;  %9632 = vmatprep.subr.bf16.mxu1 %v9961_v17  ;;  %v6883_v60 = vunpack.c.h.bf16 %v11512_v16 }
 0x7c1   : > { %v6920_v16 = vand.u32 7, %v10135_v9 }
 0x7c2   : > { %v6657_v13 = vsel %vm1654_vm5, %v6648_v10, %v6656_v37  ;;  %v6666_v40 = vsel %vm1654_vm5, %v6656_v37, %v6665_v18  ;;  %v6779_v30 = vsel %vm1904_vm15, %v6774_v51, %v6778_v20  ;;  %v6921_v18 = vand.u32 7, %v11412_v24 }
 0x7c3   : > { %9604 = vmatprep.mubr.msk.bf16.mxu0 %vm6182_vm4, %v6657_v13  ;;  %9616 = vmatprep.mubr.msk.bf16.mxu1 %vm6182_vm4, %v6779_v30  ;;  %vm11730_vm1 = vcmp.eq.s32.totalorder %v6920_v16, 0  ;;  %v9887_v30 = vld [vmem:[%s12139_s19 + $0x58] sm:$0xff]   ;;  %vm11769_vm6 = vcmp.eq.s32.totalorder %v6920_v16, 7 }
 0x7c4   : > { %9605 = vmatmul.mubr.msk.bf16.vlgmr.msra.gmra.mxu0 %vm6182_vm4, %v6666_v40  ;;  %9617 = vmatmul.mubr.msk.bf16.vlgmr.msra.gmra.mxu1 %vm6182_vm4, %v6787_v48  ;;  %vm11726_vm0 = vcmp.eq.s32.totalorder %v6921_v18, 0  ;;  %vm11777_vm3 = vcmp.eq.s32.totalorder %v6921_v18, 7  ;;  %vm7307_vm10 = vmpackc.low %vm11769_vm6, %vm11769_vm6 }
 0x7c5   : > { %9621 = vmatpush3.bf16.msra.mxu0 %v9879_v53  ;;  %9633 = vmatpush3.bf16.msra.mxu1 %v9880_v31  ;;  %vm7279_vm8 = vmpackc.low %vm11726_vm0, %vm11726_vm0 }
 0x7c6   : > { %9622 = vmatprep.subr.bf16.mxu0 %v9961_v17  ;;  %9634 = vmatprep.subr.bf16.mxu1 %v9961_v17  ;;  %vm7308_vm13 = vmpackc.low %vm11777_vm3, %vm11777_vm3 }
 0x7c7   : > { %9628 = vmatprep.mubr.msk.bf16.mxu0 %vm12282_vm7, %v9961_v17  ;;  %9640 = vmatprep.mubr.msk.bf16.mxu1 %vm12282_vm7, %v9961_v17 }
 0x7c9   : > { %9623 = vmatpush3.bf16.msra.mxu0 %v9881_v35  ;;  %9635 = vmatpush3.bf16.msra.mxu1 %v9882_v62  ;;  %v9888_v62 = vld [vmem:[%s12139_s19 + $0x78] sm:$0xff]  }
 0x7ca   : > { %9624 = vmatprep.subr.bf16.mxu0 %v9961_v17  ;;  %9636 = vmatprep.subr.bf16.mxu1 %v9961_v17 }
 0x7cd   : > { %9625 = vmatpush3.bf16.msra.mxu0 %v9883_v0  ;;  %9637 = vmatpush3.bf16.msra.mxu1 %v9884_v43  ;;  %v9889_v43 = vld [vmem:[%s12139_s19 + $0x50] sm:$0xff]  }
 0x7ce   : > { %9626 = vmatprep.subr.bf16.mxu0 %v9961_v17  ;;  %9638 = vmatprep.subr.bf16.mxu1 %v9961_v17 }
 0x7d1   : > { %9627 = vmatpush3.bf16.msra.mxu0 %v9885_v29  ;;  %9639 = vmatpush3.bf16.msra.mxu1 %v9886_v14  ;;  %v9890_v29 = vld [vmem:[%s12139_s19 + $0x70] sm:$0xff]   ;;  %v9891_v14 = vld [vmem:[%s12139_s19 + $0x48] sm:$0xff]  }
 0x7d2   : > { %9644 = vmatprep.subr.bf16.mxu0 %v9961_v17  ;;  %9656 = vmatprep.subr.bf16.mxu1 %v9961_v17 }
 0x872   : > { %v9594_v46 = vpop.f32.mrf.mxu1 }
 0x874   : > { %v6613_v12 = vpop.f32.mrf.mxu1 }
 0x876   : > { %v9595_v33 = vpop.f32.mrf.mxu1 }
 0x878   : > { %v6616_v39 = vpop.f32.mrf.mxu1 }
 0x884   : > { %v9606_v7 = vpop.f32.mrf.mxu0  ;;  %v9618_v22 = vpop.f32.mrf.mxu1 }
 0x885   : > { %v6740_v15 = vadd.f32 %v9606_v7, %v9594_v46  ;;  %v9892_v46 = vld [vmem:[%s12139_s19 + $0x68] sm:$0xff]   ;;  %v9894_v7 = vld [vmem:[%s12139_s19 + $0x60] sm:$0xff]  }
 0x886   : > { %v6731_v8 = vpop.f32.mrf.mxu0  ;;  %v6852_v57 = vpop.f32.mrf.mxu1 }
 0x887   : > { %v6869_v25 = vadd.f32 %v9618_v22, %v6740_v15  ;;  %v6732_v58 = vadd.f32 %v6731_v8, %v6613_v12  ;;  %v9893_v12 = vld [vmem:[%s12139_s19 + $0x40] sm:$0xff]  }
 0x888   : > { %v9607_v56 = vpop.f32.mrf.mxu0  ;;  %v9619_v11 = vpop.f32.mrf.mxu1 }
 0x889   : > { %v6880_v3 = vadd.f32 %v8713_v36, %v6869_v25  ;;  %v6867_v41 = vadd.f32 %v6852_v57, %v6732_v58  ;;  %v6743_v54 = vadd.f32 %v9607_v56, %v9595_v33  ;;  %v9895_v58 = vld [vmem:[%s12141_s21 + $0x78] sm:$0xff]  }
 0x88a   : > { %v6734_v38 = vpop.f32.mrf.mxu0  ;;  %v6855_v2 = vpop.f32.mrf.mxu1 }
 0x88b   : > { %v6878_v52 = vadd.f32 %v8713_v36, %v6867_v41  ;;  %v6870_v6 = vadd.f32 %v9619_v11, %v6743_v54  ;;  %v6735_v23 = vadd.f32 %v6734_v38, %v6616_v39  ;;  %v6888_v19 = vadd.f32 %v6884_v1, %v6880_v3  ;;  %v9896_v41 = vld [vmem:[%s12141_s21 + $0x70] sm:$0xff]   ;;  %v9897_v54 = vld [vmem:[%s12141_s21 + $0x68] sm:$0xff]   ;;  %v9898_v11 = vld [vmem:[%s12141_s21 + $0x60] sm:$0xff]  }
 0x88c   : > { %v9899_v38 = vld [vmem:[%s12141_s21 + $0x58] sm:$0xff]  }
 0x88d   : > { %v6881_v63 = vadd.f32 %v8713_v36, %v6870_v6  ;;  %v6868_v21 = vadd.f32 %v6855_v2, %v6735_v23  ;;  %v6886_v26 = vadd.f32 %v6882_v32, %v6878_v52  ;;  %v6892_v42 = vmax.f32 %v6888_v19, 0.0  ;;  %v9900_v1 = vld [vmem:[%s12141_s21 + $0x38] sm:$0xff]   ;;  %v9901_v52 = vld [vmem:[%s12141_s21 + $0x50] sm:$0xff]   ;;  %v9903_v23 = vld [vmem:[%s12141_s21 + $0x48] sm:$0xff]  }
 0x88e   : > { %v9902_v6 = vld [vmem:[%s12141_s21 + $0x30] sm:$0xff]   ;;  %v9905_v2 = vld [vmem:[%s12141_s21 + $0x40] sm:$0xff]   ;;  %v9908_v32 = vld [vmem:[%s12141_s21 + $0x18] sm:$0xff]  }
 0x88f   : > { %v6889_v34 = vadd.f32 %v6885_v59, %v6881_v63  ;;  %v6879_v20 = vadd.f32 %v8713_v36, %v6868_v21  ;;  %v6890_v49 = vmax.f32 %v6886_v26, 0.0  ;;  %v9904_v59 = vld [vmem:[%s12141_s21 + $0x28] sm:$0xff]   ;;  %v9906_v19 = vld [vmem:[%s12141_s21 + $0x20] sm:$0xff]   ;;  %v9910_v63 = vld [vmem:[%s12141_s21 + $0x10] sm:$0xff]  }
 0x890   : > { %v9912_v21 = vld [vmem:[%s12141_s21 + $0x8] sm:$0xff]   ;;  %v9914_v26 = vld [vmem:[%s12141_s21] sm:$0xff]  }
 0x891   : > { %v6893_v61 = vmax.f32 %v6889_v34, 0.0  ;;  %v6887_v27 = vadd.f32 %v6883_v60, %v6879_v20 }
 0x893   : > { %v6895_v44 = vpack.c.bf16 %v6893_v61, %v6892_v42  ;;  %v6891_v28 = vmax.f32 %v6887_v27, 0.0 }
 0x895   : > { %v6898_v55 = vunpack.c.l.bf16 %v6895_v44  ;;  %v6899_v10 = vunpack.c.h.bf16 %v6895_v44  ;;  %v6894_v4 = vpack.c.bf16 %v6891_v28, %v6890_v49 }
 0x897   : > { %6902 = vst.msk [vmem:[#allocation8 + $0x20] sm:$0xff] %vm6182_vm4, %v6898_v55  ;;  %6903 = vst.msk [vmem:[#allocation8 + $0x28] sm:$0xff] %vm6182_vm4, %v6899_v10  ;;  %v6896_v37 = vunpack.c.l.bf16 %v6894_v4  ;;  %v6897_v50 = vunpack.c.h.bf16 %v6894_v4  ;;  %v7281_v4 = vsel %vm7279_vm8, 65537, %v12233_v5 }
 0x898   : > { %v7292_v13 = vshll.u32 %v7281_v4, 16  ;;  %v7296_v51 = vshrl.u32 %v7281_v4, 16  ;;  %v9941_v4 = vld [vmem:[%s12143_s23 + $0x88] sm:$0xff]  }
 0x899   : > { %6900 = vst.msk [vmem:[#allocation8 + $0x10] sm:$0xff] %vm6182_vm4, %v6896_v37  ;;  %6901 = vst.msk [vmem:[#allocation8 + $0x18] sm:$0xff] %vm6182_vm4, %v6897_v50 }
 0x89e   : > { %v6911_v40 = vld [vmem:[#allocation8 + $0x20] ss:$2 sm:$0xff]  ;;  %v6915_v25 = vld [vmem:[#allocation8 + $0x21] ss:$2 sm:$0xff] }
 0x89f   : > { %v6919_v36 = vld [vmem:[#allocation8 + $0x22] ss:$2 sm:$0xff] }
 0x8a0   : > { %v6909_v48 = vld [vmem:[#allocation8 + $0x10] ss:$2 sm:$0xff]  ;;  %v6905_v53 = vld [vmem:[#allocation8 + $0xf] ss:$2 sm:$0xff]  ;;  %v6907_v31 = vld [vmem:[#allocation8 + $0x1f] ss:$2 sm:$0xff] }
 0x8a1   : > { %v6947_v35 = vpack.c.bf16 %v6911_v40, %v6909_v48  ;;  %v6928_v9 = vsel %vm11730_vm1, 0.0, %v6905_v53  ;;  %v6929_v24 = vsel %vm11726_vm0, 0.0, %v6907_v31  ;;  %v6917_v33 = vld [vmem:[#allocation8 + $0x12] ss:$2 sm:$0xff]  ;;  %v6913_v22 = vld [vmem:[#allocation8 + $0x11] ss:$2 sm:$0xff] }
 0x8a2   : > { %v6938_v0 = vpack.c.bf16 %v6929_v24, %v6928_v9  ;;  %v6936_v8 = vsel %vm11769_vm6, 0.0, %v6917_v33  ;;  %v7093_v57 = vpack.c.bf16 %v6915_v25, %v6913_v22  ;;  %v6937_v56 = vsel %vm11777_vm3, 0.0, %v6919_v36 }
 0x8a3   : > { %9629 = vmatmul.mubr.msk.bf16.vlgmr.msra.gmra.mxu0 %vm6182_vm4, %v6947_v35  ;;  %v7173_v3 = vpack.c.bf16 %v6937_v56, %v6936_v8  ;;  %v7309_v9 = vsel %vm7307_vm10, 65537, %v12233_v5  ;;  %v7310_v24 = vsel %vm7308_vm13, 65537, %v12233_v5  ;;  %v7298_v33 = vrot.slane %v7296_v51, 4 }
 0x8a4   : > { %9645 = vmatpush3.bf16.msra.mxu0 %v9887_v30  ;;  %9641 = vmatmul.mubr.msk.bf16.vlgmr.msra.gmra.mxu1 %vm6182_vm4, %v6938_v0  ;;  %v7312_v15 = vshrl.u32 %v7309_v9, 16  ;;  %v7320_v22 = vshrl.u32 %v7310_v24, 16 }
 0x8a5   : > { %9657 = vmatpush3.bf16.msra.mxu1 %v9888_v62  ;;  %9646 = vmatprep.subr.bf16.mxu0 %v9961_v17 }
 0x8a6   : > { %9658 = vmatprep.subr.bf16.mxu1 %v9961_v17  ;;  %9652 = vmatprep.mubr.msk.bf16.mxu0 %vm12282_vm7, %v9961_v17  ;;  %v7314_v56 = vrot.slane %v7312_v15, 7  ;;  %v9919_v15 = vld [vmem:[%s12143_s23 + $0x78] sm:$0xff]  }
 0x8a7   : > { %9664 = vmatprep.mubr.msk.bf16.mxu1 %vm12282_vm7, %v9961_v17 }
 0x8a8   : > { %9647 = vmatpush3.bf16.msra.mxu0 %v9889_v43 }
 0x8a9   : > { %9659 = vmatpush3.bf16.msra.mxu1 %v9890_v29  ;;  %9648 = vmatprep.subr.bf16.mxu0 %v9961_v17  ;;  %v8758_v29 = vld [vmem:[%s12140_s20] ss:$0 sm:$0xff] }
 0x8aa   : > { %9660 = vmatprep.subr.bf16.mxu1 %v9961_v17 }
 0x8ac   : > { %9649 = vmatpush3.bf16.msra.mxu0 %v9891_v14 }
 0x8ad   : > { %9661 = vmatpush3.bf16.msra.mxu1 %v9892_v46  ;;  %9650 = vmatprep.subr.bf16.mxu0 %v9961_v17 }
 0x8ae   : > { %9662 = vmatprep.subr.bf16.mxu1 %v9961_v17 }
 0x8b0   : > { %9651 = vmatpush3.bf16.msra.mxu0 %v9893_v12  ;;  %v7294_v12 = vrot.slane %v7292_v13, 5 }
 0x8b1   : > { %9663 = vmatpush3.bf16.msra.mxu1 %v9894_v7  ;;  %9668 = vmatprep.subr.bf16.mxu0 %v9961_v17 }
 0x8b2   : > { %9688 = vmatprep.subr.bf16.mxu1 %v9961_v17 }
 0x8b3   : > { %9653 = vmatmul.mubr.msk.bf16.vlgmr.msra.gmra.mxu0 %vm6182_vm4, %v7093_v57 }
 0x8b4   : > { %9665 = vmatmul.mubr.msk.bf16.vlgmr.msra.gmra.mxu1 %vm6182_vm4, %v7173_v3  ;;  %9669 = vmatpush3.bf16.msra.mxu0 %v9895_v58  ;;  %vm7278_vm4 = vmpackc.low %vm11730_vm1, %vm11730_vm1  ;;  %v7299_v58 = vor.u32 %v7298_v33, %v7294_v12  ;;  %v7322_v3 = vrot.slane %v7320_v22, 7  ;;  %v9920_v22 = vld [vmem:[%s12143_s23 + $0x70] sm:$0xff]  }
 0x8b5   : > { %9670 = vmatprep.subr.bf16.mxu0 %v9961_v17  ;;  %9684 = vmatprep.mubr.msk.bf16.mxu0 %vm12282_vm7, %v9961_v17  ;;  %v7280_v28 = vsel %vm7278_vm4, 65537, %v12233_v5  ;;  %v9907_v5 = vld [vmem:[%s12141_s21 + $0xb8] sm:$0xff]  }
 0x8b6   : > { %9704 = vmatprep.mubr.msk.bf16.mxu1 %vm12282_vm7, %v9961_v17  ;;  %9689 = vmatpush3.bf16.msra.mxu1 %v9900_v1  ;;  %v7283_v55 = vshll.u32 %v7280_v28, 16  ;;  %v7286_v10 = vshrl.u32 %v7280_v28, 16 }
 0x8b7   : > { %9690 = vmatprep.subr.bf16.mxu1 %v9961_v17 }
 0x8b8   : > { %9671 = vmatpush3.bf16.msra.mxu0 %v9896_v41  ;;  %v11872_v30 = vrot.slane %v7283_v55, 5  ;;  %v7288_v48 = vrot.slane %v7286_v10, 4  ;;  %v7323_v41 = vshll.u32 %v7310_v24, 16  ;;  %v9915_v10 = vld [vmem:[%s12141_s21 + $0x98] sm:$0xff]   ;;  %v9916_v24 = vld [vmem:[%s12141_s21 + $0x90] sm:$0xff]  }
 0x8b9   : > { %9672 = vmatprep.subr.bf16.mxu0 %v9961_v17 }
 0x8ba   : > { %9691 = vmatpush3.bf16.msra.mxu1 %v9902_v6  ;;  %v7289_v46 = vor.u32 %v7288_v48, %v11872_v30  ;;  %v7325_v6 = vor.u32 %v7323_v41, %v7322_v3  ;;  %vm7301_vm2 = vcmp.ne.s16.totalorder %v11872_v30, 0  ;;  %v9928_v41 = vld [vmem:[%s12143_s23 + $0x28] sm:$0xff]  }
 0x8bb   : > { %9692 = vmatprep.subr.bf16.mxu1 %v9961_v17 }
 0x8bc   : > { %9673 = vmatpush3.bf16.msra.mxu0 %v9897_v54  ;;  %v7290_v25 = vrot.slane %v7289_v46, 4  ;;  %v9909_v54 = vld [vmem:[%s12141_s21 + $0xb0] sm:$0xff]   ;;  %v9918_v46 = vld [vmem:[%s12141_s21 + $0x80] sm:$0xff]  }
 0x8bd   : > { %9674 = vmatprep.subr.bf16.mxu0 %v9961_v17 }
 0x8be   : > { %9693 = vmatpush3.bf16.msra.mxu1 %v9904_v59  ;;  %v7295_v1 = vsel %vm10209_vm12, %v7290_v25, %v7294_v12  ;;  %v9911_v59 = vld [vmem:[%s12141_s21 + $0xa8] sm:$0xff]   ;;  %v9924_v25 = vld [vmem:[%s12143_s23 + $0x38] sm:$0xff]  }
 0x8bf   : > { %9694 = vmatprep.subr.bf16.mxu1 %v9961_v17  ;;  %vm11901_vm14 = vcmp.ne.s16.totalorder %v7295_v1, 0  ;;  %v9932_v1 = vld [vmem:[%s12143_s23 + $0x18] sm:$0xff]  }
 0x8c0   : > { %9675 = vmatpush3.bf16.msra.mxu0 %v9898_v11  ;;  %v11890_v11 = vrot.slane %v7299_v58, 4  ;;  %v9925_v58 = vld [vmem:[%s12143_s23 + $0x50] sm:$0xff]  }
 0x8c1   : > { %9676 = vmatprep.subr.bf16.mxu0 %v9961_v17 }
 0x8c2   : > { %9695 = vmatpush3.bf16.msra.mxu1 %v9906_v19  ;;  %vm7303_vm11 = vcmp.ne.s16.totalorder %v11890_v11, 0  ;;  %v9939_v11 = vld [vmem:[%s12143_s23 + $0x98] sm:$0xff]  }
 0x8c3   : > { %9696 = vmatprep.subr.bf16.mxu1 %v9961_v17 }
 0x8c4   : > { %9677 = vmatpush3.bf16.msra.mxu0 %v9899_v38  ;;  %v7315_v38 = vshll.u32 %v7309_v9, 16 }
 0x8c5   : > { %9678 = vmatprep.subr.bf16.mxu0 %v9961_v17 }
 0x8c6   : > { %9697 = vmatpush3.bf16.msra.mxu1 %v9908_v32  ;;  %v11906_v19 = vor.u32 %v7315_v38, %v7314_v56  ;;  %v9930_v38 = vld [vmem:[%s12143_s23 + $0x20] sm:$0xff]  }
 0x8c7   : > { %9698 = vmatprep.subr.bf16.mxu1 %v9961_v17 }
 0x8c8   : > { %9679 = vmatpush3.bf16.msra.mxu0 %v9901_v52  ;;  %v7318_v52 = vrot.slane %v7314_v56, 4  ;;  %v9926_v56 = vld [vmem:[%s12143_s23 + $0x30] sm:$0xff]  }
 0x8c9   : > { %9680 = vmatprep.subr.bf16.mxu0 %v9961_v17 }
 0x8ca   : > { %9699 = vmatpush3.bf16.msra.mxu1 %v9910_v63  ;;  %v11913_v32 = vsel %vm10191_vm9, %v7318_v52, %v7325_v6  ;;  %vm7328_vm9 = vcmp.ne.s16.totalorder %v11906_v19, 0  ;;  %v9934_v52 = vld [vmem:[%s12143_s23 + $0x10] sm:$0xff]   ;;  %v9936_v6 = vld [vmem:[%s12143_s23 + $0x8] sm:$0xff]  }
 0x8cb   : > { %9700 = vmatprep.subr.bf16.mxu1 %v9961_v17  ;;  %vm7329_vm12 = vcmp.ne.s16.totalorder %v11913_v32, 0  ;;  %v9940_v32 = vld [vmem:[%s12143_s23 + $0x90] sm:$0xff]  }
 0x8cc   : > { %9681 = vmatpush3.bf16.msra.mxu0 %v9903_v23  ;;  %v7272_v23 = vld [vmem:[#allocation9 + $0x4] sm:$0x8] }
 0x8cd   : > { %9682 = vmatprep.subr.bf16.mxu0 %v9961_v17  ;;  %v7304_v47 = vsel %vm7301_vm2, 0, %v7272_v23  ;;  %v9938_v23 = vld [vmem:[%s12143_s23] sm:$0xff]  }
 0x8ce   : > { %9701 = vmatpush3.bf16.msra.mxu1 %v9912_v21 }
 0x8cf   : > { %9702 = vmatprep.subr.bf16.mxu1 %v9961_v17 }
 0x8d0   : > { %9683 = vmatpush3.bf16.msra.mxu0 %v9905_v2 }
 0x8d1   : > { %9708 = vmatprep.subr.bf16.mxu0 %v9961_v17 }
 0x8d2   : > { %9703 = vmatpush3.bf16.msra.mxu1 %v9914_v26  ;;  %v9913_v26 = vld [vmem:[%s12141_s21 + $0xa0] sm:$0xff]  }
 0x8d3   : > { %9728 = vmatprep.subr.bf16.mxu1 %v9961_v17 }
 0x963   : > { %v7018_v34 = vpop.f32.mrf.mxu0 }
 0x964   : > { %v7086_v20 = vpop.f32.mrf.mxu1 }
 0x965   : > { %v9630_v60 = vpop.f32.mrf.mxu0  ;;  %v7087_v37 = vadd.f32 %v7086_v20, %v7018_v34 }
 0x966   : > { %v9642_v42 = vpop.f32.mrf.mxu1  ;;  %v7327_v60 = vrot.slane %v7322_v3, 4  ;;  %v9927_v3 = vld [vmem:[%s12143_s23 + $0x48] sm:$0xff]  }
 0x967   : > { %v7021_v61 = vpop.f32.mrf.mxu0 }
 0x968   : > { %v7089_v27 = vpop.f32.mrf.mxu1  ;;  %vm11928_vm0 = vcmp.ne.s16.totalorder %v7327_v60, 0 }
 0x969   : > { %v9631_v49 = vpop.f32.mrf.mxu0  ;;  %v7090_v53 = vadd.f32 %v7089_v27, %v7021_v61 }
 0x96a   : > { %v9643_v44 = vpop.f32.mrf.mxu1 }
 0x973   : > { %v7164_v50 = vpop.f32.mrf.mxu0 }
 0x974   : > { %v7171_v16 = vadd.f32 %v7164_v50, %v7087_v37  ;;  %v7244_v18 = vpop.f32.mrf.mxu1 }
 0x975   : > { %v9654_v40 = vpop.f32.mrf.mxu0 }
 0x976   : > { %v9666_v31 = vpop.f32.mrf.mxu1  ;;  %v7251_v62 = vadd.f32 %v7244_v18, %v7171_v16  ;;  %v7277_v40 = vld [vmem:[#allocation9 + $0x10] sm:$0x1] }
 0x977   : > { %v7167_v35 = vpop.f32.mrf.mxu0 }
 0x978   : > { %v7172_v0 = vadd.f32 %v7167_v35, %v7090_v53  ;;  %v7247_v43 = vpop.f32.mrf.mxu1  ;;  %v7260_v36 = vadd.f32 %v8758_v29, %v7251_v62  ;;  %v7333_v35 = vsel %vm11928_vm0, 0, %v7277_v40  ;;  %v9933_v40 = vld [vmem:[%s12143_s23 + $0xb0] sm:$0xff]  }
 0x979   : > { %v9655_v14 = vpop.f32.mrf.mxu0  ;;  %v8812_v62 = vcombine.low %v7333_v35, %v7333_v35 }
 0x97a   : > { %v7252_v39 = vadd.f32 %v7247_v43, %v7172_v0  ;;  %v9667_v7 = vpop.f32.mrf.mxu1  ;;  %v9917_v43 = vld [vmem:[%s12141_s21 + $0x88] sm:$0xff]  }
 0x97b   : > { %v7604_v14 = vshll.u32 %v8812_v62, 16 }
 0x97c   : > { %v7261_v8 = vadd.f32 %v8758_v29, %v7252_v39 }
 0x97d   : > { %v7606_v39 = vrot.slane %v7604_v14, 1 }
 0x97e   : > { %v11883_v57 = vpack.c.bf16 %v7261_v8, %v7260_v36  ;;  %v9921_v36 = vld [vmem:[%s12143_s23 + $0x68] sm:$0xff]   ;;  %v9922_v8 = vld [vmem:[%s12143_s23 + $0x60] sm:$0xff]  }
 0x980   : > { %8968 = vst [vmem:[#allocation9 + $0x8] sm:$0xff] %v11883_v57   ;;  %9685 = vmatmul.mubr.bf16.vlgmr.msra.gmra.mxu0 %v11883_v57 }
 0x981   : > { %9709 = vmatpush3.bf16.msra.mxu0 %v9907_v5  ;;  %9724 = vmatprep.mubr.msk.bf16.mxu0 %vm12282_vm7, %v9961_v17  ;;  %v9923_v5 = vld [vmem:[%s12143_s23 + $0x58] sm:$0xff]  }
 0x982   : > { %9710 = vmatprep.subr.bf16.mxu0 %v9961_v17 }
 0x985   : > { %9711 = vmatpush3.bf16.msra.mxu0 %v9909_v54  ;;  %v9929_v54 = vld [vmem:[%s12143_s23 + $0x40] sm:$0xff]  }
 0x986   : > { %9712 = vmatprep.subr.bf16.mxu0 %v9961_v17 }
 0x987   : > { %v7273_v63 = vld [vmem:[#allocation9 + $0x8] sm:$0xf]  ;;  %v7274_v21 = vld [vmem:[#allocation9 + $0xc] sm:$0xf] }
 0x988   : > { %v7305_v34 = vsel %vm11901_vm14, 0, %v7273_v63  ;;  %v7306_v20 = vsel %vm7303_vm11, 0, %v7274_v21  ;;  %v7275_v27 = vld [vmem:[#allocation9 + $0x8] sm:$0xf]  ;;  %v7276_v45 = vld [vmem:[#allocation9 + $0xc] sm:$0xf] }
 0x989   : > { %9713 = vmatpush3.bf16.msra.mxu0 %v9911_v59  ;;  %v8785_v42 = vcombine.low %v7304_v47, %v7305_v34  ;;  %v8786_v61 = vcombine.low %v7306_v20, %v7306_v20  ;;  %v7331_v37 = vsel %vm7328_vm9, 0, %v7275_v27  ;;  %v7332_v50 = vsel %vm7329_vm12, 0, %v7276_v45  ;;  %v8821_v45 = vld [vmem:[%s12142_s22] ss:$0 sm:$0xff] }
 0x98a   : > { %9714 = vmatprep.subr.bf16.mxu0 %v9961_v17  ;;  %v8811_v31 = vcombine.low %v7331_v37, %v7332_v50 }
 0x98b   : > { %v7465_v49 = vshrl.u32 %v8785_v42, 16  ;;  %v7468_v44 = vshll.u32 %v8785_v42, 16  ;;  %v7473_v28 = vshrl.u32 %v8786_v61, 16  ;;  %v7476_v55 = vshll.u32 %v8786_v61, 16 }
 0x98c   : > { %v7599_v0 = vshll.u32 %v8811_v31, 16  ;;  %v7597_v12 = vshrl.u32 %v8811_v31, 16 }
 0x98d   : > { %9715 = vmatpush3.bf16.msra.mxu0 %v9913_v26  ;;  %v7467_v16 = vrot.slane %v7465_v49, 3  ;;  %v7470_v18 = vrot.slane %v7468_v44, 4  ;;  %v7475_v13 = vrot.slane %v7473_v28, 3  ;;  %v7478_v51 = vrot.slane %v7476_v55, 4 }
 0x98e   : > { %9716 = vmatprep.subr.bf16.mxu0 %v9961_v17  ;;  %v7601_v29 = vrot.slane %v7599_v0, 1  ;;  %v9937_v0 = vld [vmem:[%s12143_s23 + $0xa0] sm:$0xff]  }
 0x98f   : > { %v7471_v48 = vor.u32 %v7470_v18, %v7467_v16  ;;  %v7479_v53 = vor.u32 %v7478_v51, %v7475_v13  ;;  %v9931_v13 = vld [vmem:[%s12143_s23 + $0xb8] sm:$0xff]  }
 0x990   : > { %v7602_v33 = vor.u32 %v7601_v29, %v7597_v12 }
 0x991   : > { %9717 = vmatpush3.bf16.msra.mxu0 %v9915_v10  ;;  %v7480_v9 = vsel %vm1654_vm5, %v7471_v48, %v7479_v53  ;;  %v7721_v48 = vld [vmem:[#allocation9 + $0x4] sm:$0x8] }
 0x992   : > { %9705 = vmatmul.mubr.bf16.vlgmr.msra.gmra.mxu1 %v7480_v9  ;;  %9718 = vmatprep.subr.bf16.mxu0 %v9961_v17  ;;  %v7607_v7 = vsel %vm1904_vm15, %v7602_v33, %v7606_v39  ;;  %v9935_v53 = vld [vmem:[%s12143_s23 + $0xa8] sm:$0xff]   ;;  %v7727_v31 = vsel %vm7301_vm2, 0, %v7721_v48 }
 0x993   : > { %9744 = vmatprep.mubr.msk.bf16.mxu1 %vm12282_vm7, %v9961_v17  ;;  %9729 = vmatpush3.bf16.msra.mxu1 %v9919_v15 }
 0x994   : > { %9730 = vmatprep.subr.bf16.mxu1 %v9961_v17 }
 0x995   : > { %9719 = vmatpush3.bf16.msra.mxu0 %v9916_v24 }
 0x996   : > { %9720 = vmatprep.subr.bf16.mxu0 %v9961_v17 }
 0x997   : > { %9731 = vmatpush3.bf16.msra.mxu1 %v9920_v22 }
 0x998   : > { %9732 = vmatprep.subr.bf16.mxu1 %v9961_v17 }
 0x999   : > { %9721 = vmatpush3.bf16.msra.mxu0 %v9917_v43 }
 0x99a   : > { %9722 = vmatprep.subr.bf16.mxu0 %v9961_v17 }
 0x99b   : > { %9733 = vmatpush3.bf16.msra.mxu1 %v9921_v36 }
 0x99c   : > { %9734 = vmatprep.subr.bf16.mxu1 %v9961_v17 }
 0x99d   : > { %9723 = vmatpush3.bf16.msra.mxu0 %v9918_v46 }
 0x99e   : > { %9748 = vmatprep.subr.bf16.mxu0 %v9961_v17 }
 0x99f   : > { %9735 = vmatpush3.bf16.msra.mxu1 %v9922_v8 }
 0x9a0   : > { %9725 = vmatmul.mubr.bf16.vlgmr.msra.gmra.mxu0 %v7607_v7  ;;  %9736 = vmatprep.subr.bf16.mxu1 %v9961_v17 }
 0x9a1   : > { %9764 = vmatprep.mubr.msk.bf16.mxu0 %vm12282_vm7, %v9961_v17  ;;  %9749 = vmatpush3.bf16.msra.mxu0 %v9924_v25 }
 0x9a2   : > { %9750 = vmatprep.subr.bf16.mxu0 %v9961_v17 }
 0x9a3   : > { %9737 = vmatpush3.bf16.msra.mxu1 %v9923_v5  ;;  %v7726_v5 = vld [vmem:[#allocation9 + $0x10] sm:$0x1] }
 0x9a4   : > { %9738 = vmatprep.subr.bf16.mxu1 %v9961_v17 }
 0x9a5   : > { %9751 = vmatpush3.bf16.msra.mxu0 %v9926_v56 }
 0x9a6   : > { %9752 = vmatprep.subr.bf16.mxu0 %v9961_v17 }
 0x9a7   : > { %9739 = vmatpush3.bf16.msra.mxu1 %v9925_v58 }
 0x9a8   : > { %9740 = vmatprep.subr.bf16.mxu1 %v9961_v17 }
 0x9a9   : > { %9753 = vmatpush3.bf16.msra.mxu0 %v9928_v41 }
 0x9aa   : > { %9754 = vmatprep.subr.bf16.mxu0 %v9961_v17 }
 0x9ab   : > { %9741 = vmatpush3.bf16.msra.mxu1 %v9927_v3  ;;  %v7732_v3 = vsel %vm11928_vm0, 0, %v7726_v5 }
 0x9ac   : > { %9742 = vmatprep.subr.bf16.mxu1 %v9961_v17  ;;  %v8875_v41 = vcombine.low %v7732_v3, %v7732_v3 }
 0x9ad   : > { %9755 = vmatpush3.bf16.msra.mxu0 %v9930_v38 }
 0x9ae   : > { %9756 = vmatprep.subr.bf16.mxu0 %v9961_v17 }
 0x9af   : > { %9743 = vmatpush3.bf16.msra.mxu1 %v9929_v54 }
 0x9b0   : > { %9768 = vmatprep.subr.bf16.mxu1 %v9961_v17 }
 0x9b1   : > { %9757 = vmatpush3.bf16.msra.mxu0 %v9932_v1  ;;  %v8003_v1 = vshll.u32 %v8875_v41, 16 }
 0x9b2   : > { %9758 = vmatprep.subr.bf16.mxu0 %v9961_v17 }
 0x9b5   : > { %9759 = vmatpush3.bf16.msra.mxu0 %v9934_v52  ;;  %v9942_v52 = vld [vmem:[%s12143_s23 + $0x80] sm:$0xff]  }
 0x9b6   : > { %9760 = vmatprep.subr.bf16.mxu0 %v9961_v17 }
 0x9b9   : > { %9761 = vmatpush3.bf16.msra.mxu0 %v9936_v6 }
 0x9ba   : > { %9762 = vmatprep.subr.bf16.mxu0 %v9961_v17 }
 0x9bd   : > { %9763 = vmatpush3.bf16.msra.mxu0 %v9938_v23 }
 0x9be   : > { %9788 = vmatprep.subr.bf16.mxu0 %v9961_v17 }
 0xa40   : > { %v7449_v59 = vpop.f32.mrf.mxu0 }
 0xa42   : > { %v9686_v47 = vpop.f32.mrf.mxu0 }
 0xa44   : > { %v7452_v63 = vpop.f32.mrf.mxu0 }
 0xa46   : > { %v9687_v21 = vpop.f32.mrf.mxu0 }
 0xa47   : > { %v9944_v21 = vld [vmem:[%s12145_s25 + $0x30] sm:$0xff]  }
 0xa52   : > { %v7564_v26 = vpop.f32.mrf.mxu1 }
 0xa53   : > { %v7565_v42 = vadd.f32 %v7564_v26, %v7449_v59  ;;  %v8005_v59 = vrot.slane %v8003_v1, 1  ;;  %v9945_v26 = vld [vmem:[%s12145_s25 + $0x28] sm:$0xff]  }
 0xa54   : > { %v9706_v34 = vpop.f32.mrf.mxu1 }
 0xa55   : > { %v9946_v34 = vld [vmem:[%s12145_s25 + $0x20] sm:$0xff]  }
 0xa56   : > { %v7567_v20 = vpop.f32.mrf.mxu1 }
 0xa57   : > { %v7568_v44 = vadd.f32 %v7567_v20, %v7452_v63  ;;  %v9943_v63 = vld [vmem:[%s12145_s25 + $0x38] sm:$0xff]  }
 0xa58   : > { %v9707_v60 = vpop.f32.mrf.mxu1  ;;  %v9947_v20 = vld [vmem:[%s12145_s25 + $0x18] sm:$0xff]  }
 0xa59   : > { %v9948_v60 = vld [vmem:[%s12145_s25 + $0x10] sm:$0xff]  }
 0xa60   : > { %v7691_v61 = vpop.f32.mrf.mxu0 }
 0xa61   : > { %v7698_v27 = vadd.f32 %v7691_v61, %v7565_v42  ;;  %v9949_v42 = vld [vmem:[%s12145_s25 + $0x8] sm:$0xff]   ;;  %v9950_v61 = vld [vmem:[%s12145_s25] sm:$0xff]  }
 0xa62   : > { %v9726_v49 = vpop.f32.mrf.mxu0 }
 0xa63   : > { %v7707_v55 = vadd.f32 %v8821_v45, %v7698_v27 }
 0xa64   : > { %v7694_v28 = vpop.f32.mrf.mxu0 }
 0xa65   : > { %v7699_v10 = vadd.f32 %v7694_v28, %v7568_v44  ;;  %v7709_v16 = vmax.f32 %v7707_v55, 0.0 }
 0xa66   : > { %v9727_v37 = vpop.f32.mrf.mxu0 }
 0xa67   : > { %v7708_v50 = vadd.f32 %v8821_v45, %v7699_v10 }
 0xa69   : > { %v7710_v18 = vmax.f32 %v7708_v50, 0.0 }
 0xa6b   : > { %v7711_v51 = vpack.c.bf16 %v7710_v18, %v7709_v16  ;;  %v8884_v18 = vld [vmem:[%s12144_s24] ss:$0 sm:$0xff] }
 0xa6d   : > { %8969 = vst [vmem:[#allocation9 + $0x8] sm:$0xff] %v7711_v51   ;;  %9745 = vmatmul.mubr.bf16.vlgmr.msra.gmra.mxu1 %v7711_v51 }
 0xa6e   : > { %9769 = vmatpush3.bf16.msra.mxu1 %v9931_v13  ;;  %9784 = vmatprep.mubr.msk.bf16.mxu1 %vm12282_vm7, %v9961_v17 }
 0xa6f   : > { %9770 = vmatprep.subr.bf16.mxu1 %v9961_v17 }
 0xa72   : > { %9771 = vmatpush3.bf16.msra.mxu1 %v9933_v40 }
 0xa73   : > { %9772 = vmatprep.subr.bf16.mxu1 %v9961_v17 }
 0xa74   : > { %v7722_v35 = vld [vmem:[#allocation9 + $0x8] sm:$0xf]  ;;  %v7723_v9 = vld [vmem:[#allocation9 + $0xc] sm:$0xf] }
 0xa75   : > { %v7728_v24 = vsel %vm11901_vm14, 0, %v7722_v35  ;;  %v7729_v62 = vsel %vm7303_vm11, 0, %v7723_v9  ;;  %v7724_v14 = vld [vmem:[#allocation9 + $0x8] sm:$0xf]  ;;  %v7725_v46 = vld [vmem:[#allocation9 + $0xc] sm:$0xf] }
 0xa76   : > { %9773 = vmatpush3.bf16.msra.mxu1 %v9935_v53  ;;  %v8848_v43 = vcombine.low %v7727_v31, %v7728_v24  ;;  %v8849_v29 = vcombine.low %v7729_v62, %v7729_v62  ;;  %v7730_v2 = vsel %vm7328_vm9, 0, %v7724_v14  ;;  %v7731_v7 = vsel %vm7329_vm12, 0, %v7725_v46  ;;  %v8885_v46 = vld [vmem:[%s12146_s26] ss:$0 sm:$0xff] }
 0xa77   : > { %9774 = vmatprep.subr.bf16.mxu1 %v9961_v17  ;;  %v8874_v56 = vcombine.low %v7730_v2, %v7731_v7  ;;  %v8108_v53 = vunpack.c.l.bf16 %v11883_v57  ;;  %v8109_v62 = vunpack.c.h.bf16 %v11883_v57 }
 0xa78   : > { %v7864_v30 = vshrl.u32 %v8848_v43, 16  ;;  %v7867_v12 = vshll.u32 %v8848_v43, 16  ;;  %v7872_v33 = vshrl.u32 %v8849_v29, 16  ;;  %v7875_v39 = vshll.u32 %v8849_v29, 16 }
 0xa79   : > { %v7998_v54 = vshll.u32 %v8874_v56, 16  ;;  %v7996_v6 = vshrl.u32 %v8874_v56, 16 }
 0xa7a   : > { %9775 = vmatpush3.bf16.msra.mxu1 %v9937_v0  ;;  %v7866_v15 = vrot.slane %v7864_v30, 3  ;;  %v7869_v22 = vrot.slane %v7867_v12, 4  ;;  %v7874_v36 = vrot.slane %v7872_v33, 3  ;;  %v7877_v8 = vrot.slane %v7875_v39, 4 }
 0xa7b   : > { %9776 = vmatprep.subr.bf16.mxu1 %v9961_v17  ;;  %v8000_v38 = vrot.slane %v7998_v54, 1 }
 0xa7c   : > { %v7870_v25 = vor.u32 %v7869_v22, %v7866_v15  ;;  %v7878_v58 = vor.u32 %v7877_v8, %v7874_v36 }
 0xa7d   : > { %v8001_v23 = vor.u32 %v8000_v38, %v7996_v6 }
 0xa7e   : > { %9777 = vmatpush3.bf16.msra.mxu1 %v9939_v11  ;;  %v7879_v19 = vsel %vm1654_vm5, %v7870_v25, %v7878_v58 }
 0xa7f   : > { %9765 = vmatmul.mubr.bf16.vlgmr.msra.gmra.mxu0 %v7879_v19  ;;  %9778 = vmatprep.subr.bf16.mxu1 %v9961_v17  ;;  %v8006_v47 = vsel %vm1904_vm15, %v8001_v23, %v8005_v59 }
 0xa80   : > { %9804 = vmatprep.mubr.msk.bf16.mxu0 %vm12282_vm7, %v9961_v17  ;;  %9789 = vmatpush3.bf16.msra.mxu0 %v9943_v63 }
 0xa81   : > { %9790 = vmatprep.subr.bf16.mxu0 %v9961_v17 }
 0xa82   : > { %9779 = vmatpush3.bf16.msra.mxu1 %v9940_v32 }
 0xa83   : > { %9780 = vmatprep.subr.bf16.mxu1 %v9961_v17 }
 0xa84   : > { %9791 = vmatpush3.bf16.msra.mxu0 %v9944_v21 }
 0xa85   : > { %9792 = vmatprep.subr.bf16.mxu0 %v9961_v17 }
 0xa86   : > { %9781 = vmatpush3.bf16.msra.mxu1 %v9941_v4 }
 0xa87   : > { %9782 = vmatprep.subr.bf16.mxu1 %v9961_v17 }
 0xa88   : > { %9793 = vmatpush3.bf16.msra.mxu0 %v9945_v26 }
 0xa89   : > { %9794 = vmatprep.subr.bf16.mxu0 %v9961_v17 }
 0xa8a   : > { %9783 = vmatpush3.bf16.msra.mxu1 %v9942_v52 }
 0xa8c   : > { %9795 = vmatpush3.bf16.msra.mxu0 %v9946_v34 }
 0xa8d   : > { %9785 = vmatmul.mubr.bf16.vlgmr.msra.gmra.mxu1 %v8006_v47  ;;  %9796 = vmatprep.subr.bf16.mxu0 %v9961_v17 }
 0xa90   : > { %9797 = vmatpush3.bf16.msra.mxu0 %v9947_v20 }
 0xa91   : > { %9798 = vmatprep.subr.bf16.mxu0 %v9961_v17 }
 0xa94   : > { %9799 = vmatpush3.bf16.msra.mxu0 %v9948_v60 }
 0xa95   : > { %9800 = vmatprep.subr.bf16.mxu0 %v9961_v17 }
 0xa98   : > { %9801 = vmatpush3.bf16.msra.mxu0 %v9949_v42 }
 0xa99   : > { %9802 = vmatprep.subr.bf16.mxu0 %v9961_v17 }
 0xa9c   : > { %9803 = vmatpush3.bf16.msra.mxu0 %v9950_v61 }
 0xb2d   : > { %v7848_v27 = vpop.f32.mrf.mxu1 }
 0xb2f   : > { %v9746_v45 = vpop.f32.mrf.mxu1 }
 0xb31   : > { %v7851_v49 = vpop.f32.mrf.mxu1 }
 0xb33   : > { %v9747_v44 = vpop.f32.mrf.mxu1 }
 0xb3f   : > { %v7963_v28 = vpop.f32.mrf.mxu0 }
 0xb40   : > { %v7964_v50 = vadd.f32 %v7963_v28, %v7848_v27 }
 0xb41   : > { %v9766_v55 = vpop.f32.mrf.mxu0 }
 0xb43   : > { %v7966_v10 = vpop.f32.mrf.mxu0 }
 0xb44   : > { %v7967_v40 = vadd.f32 %v7966_v10, %v7851_v49 }
 0xb45   : > { %v9767_v37 = vpop.f32.mrf.mxu0 }
 0xb4d   : > { %v8090_v16 = vpop.f32.mrf.mxu1 }
 0xb4e   : > { %v8097_v13 = vadd.f32 %v8090_v16, %v7964_v50 }
 0xb4f   : > { %v9786_v51 = vpop.f32.mrf.mxu1 }
 0xb50   : > { %v8106_v17 = vadd.f32 %v8884_v18, %v8097_v13 }
 0xb51   : > { %v8093_v48 = vpop.f32.mrf.mxu1 }
 0xb52   : > { %v8098_v31 = vadd.f32 %v8093_v48, %v7967_v40  ;;  %v8110_v9 = vadd.f32 %v8108_v53, %v8106_v17 }
 0xb53   : > { %v9787_v35 = vpop.f32.mrf.mxu1 }
 0xb54   : > { %v8107_v24 = vadd.f32 %v8884_v18, %v8098_v31  ;;  %v8112_v43 = vmax.f32 %v8110_v9, 0.0 }
 0xb56   : > { %v8111_v0 = vadd.f32 %v8109_v62, %v8107_v24 }
 0xb58   : > { %v8113_v29 = vmax.f32 %v8111_v0, 0.0 }
 0xb5a   : > { %v8114_v14 = vpack.c.bf16 %v8113_v29, %v8112_v43 }
 0xb5c   : > { %9805 = vmatmul.mubr.bf16.vlgmr.msra.gmra.mxu0 %v8114_v14 }
 0xc1c   : > { %v8220_v30 = vpop.f32.mrf.mxu0 }
 0xc1d   : > { %v8221_v12 = vadd.f32 %v8885_v46, %v8220_v30 }
 0xc1e   : > { %v9806_v33 = vpop.f32.mrf.mxu0 }
 0xc1f   : > { %8227 = vst [vmem:[%s818_s1] sm:$0xff] %v8221_v12 }
 0xc20   : > { %v8223_v39 = vpop.f32.mrf.mxu0 }
 0xc21   : > { %v8224_v57 = vadd.f32 %v8885_v46, %v8223_v39 }
 0xc22   : > { %v9807_v11 = vpop.f32.mrf.mxu0 }
 0xc23   : > { %8228 = vst [vmem:[%s818_s1 + $0x8] sm:$0xff] %v8224_v57 }
 0xc24 PF: > { %s37_s7 = sadd.s32 1, %s9957_s7  }
 0xc25   : > { %p34_p4 = scmp.ge.s32.totalorder %s37_s7, 4  }
 0xc27   :  { %36 = sbr.rel (!%p34_p4) target bundleno = 13 (0xd), region = 241 }

</bundles_post_ra>
